<compile_context>
chip_gen: v7x
topology: tpu7x:2x2x1
jax: 0.10.0
libtpu: 0.0.40
codegen_flags: <defaults>
</compile_context>

<pallas_src>
import functools
import math

import jax
import jax.numpy as jnp
import numpy as np
from jax.experimental import pallas as pl
from jax.experimental.pallas import tpu as pltpu

_NEG = -1e30  # large-negative stand-in for -inf (safe under exp / max)


# ----------------------- in-kernel building blocks -------------------------

def _layernorm(x, g, b, eps=1e-5):
    mu = jnp.mean(x, axis=-1, keepdims=True)
    var = jnp.mean(jnp.square(x - mu), axis=-1, keepdims=True)
    return (x - mu) * jax.lax.rsqrt(var + eps) * g + b


def _softmax_rows(s):
    s = s - jnp.max(s, axis=-1, keepdims=True)
    p = jnp.exp(s)
    return p * pl.reciprocal(jnp.sum(p, axis=-1, keepdims=True), approx=True)


def _mha(q, k, v, out_w, out_b, nhead, causal):
    """Multi-head attention on lane-dense (S, D) slabs.

    The 1/sqrt(Dh) scale is assumed already folded into q.  Per-head attention
    outputs are re-assembled into one lane-contiguous (S, D) slab and projected
    with a single (S,D)x(D,D) matmul.
    """
    S, D = q.shape
    Dh = D // nhead
    heads = []
    for h in range(nhead):                          # static unroll; nhead tiny
        lo = h * Dh
        qh, kh, vh = q[:, lo:lo + Dh], k[:, lo:lo + Dh], v[:, lo:lo + Dh]
        s = jax.lax.dot_general(qh, kh, (((1,), (1,)), ((), ())),
                                preferred_element_type=jnp.float32)
        if causal is not None:
            s = jnp.where(causal, s, _NEG)
        p = _softmax_rows(s)
        heads.append(jnp.dot(p, vh, preferred_element_type=jnp.float32))
    cat = jnp.concatenate(heads, axis=1)            # (S, D) lane-contiguous
    return jnp.dot(cat, out_w, preferred_element_type=jnp.float32) + out_b


def _attention_block(x_q, x_kv, in_w, in_b, out_w, out_b, nhead, causal,
                     self_attn):
    """Fused QKV in-projection + multi-head attention + out-projection."""
    D = x_q.shape[-1]
    scale = 1.0 / math.sqrt(D // nhead)
    if self_attn:
        qkv = jnp.dot(x_q, in_w, preferred_element_type=jnp.float32) + in_b
        q = qkv[:, :D] * scale                      # scale folded into q once
        k = qkv[:, D:2 * D]
        v = qkv[:, 2 * D:]
    else:
        q = (jnp.dot(x_q, in_w[:, :D], preferred_element_type=jnp.float32)
             + in_b[:, :D]) * scale
        kv = (jnp.dot(x_kv, in_w[:, D:], preferred_element_type=jnp.float32)
              + in_b[:, D:])
        k, v = kv[:, :D], kv[:, D:]
    return _mha(q, k, v, out_w, out_b, nhead, causal)


# ------------------------------ fused kernel --------------------------------

def _age_fused_kernel(
        xy_ref, lab_ref, emask_ref, embed_w, embed_b,
        e_in_w, e_in_b, e_out_w, e_out_b, e_ln1g, e_ln1b,
        e_w1, e_b1, e_w2, e_b2, e_ln2g, e_ln2b,
        d_sa_in_w, d_sa_in_b, d_sa_out_w, d_sa_out_b, d_ln1g, d_ln1b,
        d_ca_in_w, d_ca_in_b, d_ca_out_w, d_ca_out_b, d_ln2g, d_ln2b,
        d_w1, d_b1, d_w2, d_b2, d_ln3g, d_ln3b,
        out_w, out_b,
        loss_ref, *, nhead, n_enc, n_dec, n):
    Sx, Sy = n, n - 1

    # ---- shared embedding: ONE matmul on the stacked (Sx+Sy, n) slab --------
    emb = (jnp.dot(xy_ref[...], embed_w[...],
                   preferred_element_type=jnp.float32) + embed_b[...])
    xe = emb[:Sx, :]                                 # encoder activations
    ye = emb[Sx:, :]                                 # decoder activations

    # ---- encoder stack (weights stacked on leading L axis, static unroll) ---
    for l in range(n_enc):
        att = _attention_block(xe, xe, e_in_w[l], e_in_b[l],
                               e_out_w[l], e_out_b[l], nhead, None, True)
        y1 = _layernorm(xe + att, e_ln1g[l], e_ln1b[l])
        h = jnp.maximum(jnp.dot(y1, e_w1[l], preferred_element_type=jnp.float32)
                        + e_b1[l], 0.0)
        ff = jnp.dot(h, e_w2[l], preferred_element_type=jnp.float32) + e_b2[l]
        xe = _layernorm(y1 + ff, e_ln2g[l], e_ln2b[l])

    # ---- causal target mask generated in-kernel (no HBM input) --------------
    rows = jax.lax.broadcasted_iota(jnp.int32, (Sy, Sy), 0)
    cols = jax.lax.broadcasted_iota(jnp.int32, (Sy, Sy), 1)
    causal = cols <= rows

    # ---- decoder stack -------------------------------------------------------
    for l in range(n_dec):
        att = _attention_block(ye, ye, d_sa_in_w[l], d_sa_in_b[l],
                               d_sa_out_w[l], d_sa_out_b[l], nhead, causal,
                               True)
        y1 = _layernorm(ye + att, d_ln1g[l], d_ln1b[l])
        catt = _attention_block(y1, xe, d_ca_in_w[l], d_ca_in_b[l],
                                d_ca_out_w[l], d_ca_out_b[l], nhead, None,
                                False)
        y2 = _layernorm(y1 + catt, d_ln2g[l], d_ln2b[l])
        h = jnp.maximum(jnp.dot(y2, d_w1[l], preferred_element_type=jnp.float32)
                        + d_b1[l], 0.0)
        ff = jnp.dot(h, d_w2[l], preferred_element_type=jnp.float32) + d_b2[l]
        ye = _layernorm(y2 + ff, d_ln3g[l], d_ln3b[l])

    # ---- out_lin + masked BCE-with-logits, reduced to a per-batch scalar ----
    logits = (jnp.dot(ye, out_w[...], preferred_element_type=jnp.float32)
              + out_b[...])                          # (Sy, n)
    lab = lab_ref[...]                               # labels scattered to (Sy, n)
    bce = (jnp.maximum(logits, 0.0) - logits * lab
           + jnp.log1p(jnp.exp(-jnp.abs(logits)))) * emask_ref[...]
    loss_ref[...] = jnp.sum(jnp.sum(bce, axis=0, keepdims=True),
                            axis=1, keepdims=True)   # (1, 1) per batch


# ----------------------------- pallas wrapper --------------------------------

def _rep(shape):
    """Replicated (grid-constant) block spec covering the full array."""
    zero = (0,) * len(shape)
    return pl.BlockSpec(shape, lambda b: zero)


def age_forward(params, x, y, y_lab, idx_i, idx_j, nhead):
    """AGE.forward (training branch): returns scalar BCE-with-logits loss."""
    B, Sx, n = x.shape
    Sy = y.shape[1]                                  # = n - 1
    D = params["embed_w"].shape[1]
    enc, dec = params["enc"], params["dec"]
    Le = enc["in_w"].shape[0]
    Ld = dec["sa_in_w"].shape[0]
    F = enc["w1"].shape[2]
    E = idx_i.shape[0]

    # stack encoder input and shifted target for a single shared-embed matmul
    xy = jnp.concatenate([x, y], axis=1)                         # (B, Sx+Sy, n)
    # scatter edge labels into the (Sy, n) logits layout; constant edge mask
    lab_full = jnp.zeros((B, Sy, n), jnp.float32).at[:, idx_i, idx_j].set(y_lab)
    emask = jnp.zeros((Sy, n), jnp.float32).at[idx_i, idx_j].set(1.0)

    kernel = functools.partial(_age_fused_kernel, nhead=nhead,
                               n_enc=Le, n_dec=Ld, n=n)
    loss_sums = pl.pallas_call(
        kernel,
        out_shape=jax.ShapeDtypeStruct((B, 1, 1), jnp.float32),
        grid=(B,),
        in_specs=[
            pl.BlockSpec((None, Sx + Sy, n), lambda b: (b, 0, 0)),   # xy
            pl.BlockSpec((None, Sy, n), lambda b: (b, 0, 0)),        # lab_full
            _rep((Sy, n)),                                           # emask
            _rep((n, D)), _rep((1, D)),                              # embed
            # encoder stack (leading layer axis)
            _rep((Le, D, 3 * D)), _rep((Le, 1, 3 * D)),
            _rep((Le, D, D)), _rep((Le, 1, D)),
            _rep((Le, 1, D)), _rep((Le, 1, D)),
            _rep((Le, D, F)), _rep((Le, 1, F)),
            _rep((Le, F, D)), _rep((Le, 1, D)),
            _rep((Le, 1, D)), _rep((Le, 1, D)),
            # decoder stack (leading layer axis)
            _rep((Ld, D, 3 * D)), _rep((Ld, 1, 3 * D)),
            _rep((Ld, D, D)), _rep((Ld, 1, D)),
            _rep((Ld, 1, D)), _rep((Ld, 1, D)),
            _rep((Ld, D, 3 * D)), _rep((Ld, 1, 3 * D)),
            _rep((Ld, D, D)), _rep((Ld, 1, D)),
            _rep((Ld, 1, D)), _rep((Ld, 1, D)),
            _rep((Ld, D, F)), _rep((Ld, 1, F)),
            _rep((Ld, F, D)), _rep((Ld, 1, D)),
            _rep((Ld, 1, D)), _rep((Ld, 1, D)),
            # out_lin
            _rep((D, n)), _rep((1, n)),
        ],
        out_specs=pl.BlockSpec((None, 1, 1), lambda b: (b, 0, 0)),
        compiler_params=pltpu.CompilerParams(
            dimension_semantics=("parallel",)),
    )(xy, lab_full, emask,
      params["embed_w"], params["embed_b"],
      enc["in_w"], enc["in_b"], enc["out_w"], enc["out_b"],
      enc["ln1_g"], enc["ln1_b"],
      enc["w1"], enc["b1"], enc["w2"], enc["b2"], enc["ln2_g"], enc["ln2_b"],
      dec["sa_in_w"], dec["sa_in_b"], dec["sa_out_w"], dec["sa_out_b"],
      dec["ln1_g"], dec["ln1_b"],
      dec["ca_in_w"], dec["ca_in_b"], dec["ca_out_w"], dec["ca_out_b"],
      dec["ln2_g"], dec["ln2_b"],
      dec["w1"], dec["b1"], dec["w2"], dec["b2"], dec["ln3_g"], dec["ln3_b"],
      params["out_w"], params["out_b"])

    # per-batch sums -> mean over all B*E edge losses (matches BCE 'mean')
    return jnp.sum(loss_sums) / (B * E)


# --------------------------- deterministic init -------------------------------

def init_params(key, n, D, F, n_enc, n_dec):
    keys = jax.random.split(key, 64)
    it = iter(keys)
    mk = lambda s: 0.1 * jax.random.normal(next(it), s, jnp.float32)
    ones = lambda s: jnp.ones(s, jnp.float32)
    zeros = lambda s: jnp.zeros(s, jnp.float32)

    enc = dict(
        in_w=mk((n_enc, D, 3 * D)), in_b=mk((n_enc, 1, 3 * D)),
        out_w=mk((n_enc, D, D)), out_b=mk((n_enc, 1, D)),
        ln1_g=ones((n_enc, 1, D)), ln1_b=zeros((n_enc, 1, D)),
        w1=mk((n_enc, D, F)), b1=mk((n_enc, 1, F)),
        w2=mk((n_enc, F, D)), b2=mk((n_enc, 1, D)),
        ln2_g=ones((n_enc, 1, D)), ln2_b=zeros((n_enc, 1, D)),
    )
    dec = dict(
        sa_in_w=mk((n_dec, D, 3 * D)), sa_in_b=mk((n_dec, 1, 3 * D)),
        sa_out_w=mk((n_dec, D, D)), sa_out_b=mk((n_dec, 1, D)),
        ln1_g=ones((n_dec, 1, D)), ln1_b=zeros((n_dec, 1, D)),
        ca_in_w=mk((n_dec, D, 3 * D)), ca_in_b=mk((n_dec, 1, 3 * D)),
        ca_out_w=mk((n_dec, D, D)), ca_out_b=mk((n_dec, 1, D)),
        ln2_g=ones((n_dec, 1, D)), ln2_b=zeros((n_dec, 1, D)),
        w1=mk((n_dec, D, F)), b1=mk((n_dec, 1, F)),
        w2=mk((n_dec, F, D)), b2=mk((n_dec, 1, D)),
        ln3_g=ones((n_dec, 1, D)), ln3_b=zeros((n_dec, 1, D)),
    )
    return dict(embed_w=mk((n, D)), embed_b=mk((1, D)),
                out_w=mk((D, n)), out_b=mk((1, n)),
                enc=enc, dec=dec)


# --------------------------------- main ---------------------------------------

if __name__ == "__main__":
    B = 2          # batch
    n = 8          # args.model.input_size (number of nodes)
    D = 32         # hidden_size
    F = 64         # dim_feedforward
    nhead = 4      # num_attn_heads (head_dim = 8)
    n_enc = 2      # encoder num_layers
    n_dec = 2      # decoder num_layers

    key = jax.random.PRNGKey(0)
    kp, kx, ky, kl = jax.random.split(key, 4)

    params = init_params(kp, n, D, F, n_enc, n_dec)

    # data['x'] : encoder input sequence    (B, n,   n)
    # data['y'] : shifted target adjacency  (B, n-1, n)
    # data['y_lab'] : edge labels at idx pairs (B, n*(n-1)//2)
    x = jax.random.normal(kx, (B, n, n), jnp.float32)
    y = (jax.random.uniform(ky, (B, n - 1, n)) > 0.5).astype(jnp.float32)

    idx = np.array([[i, j] for i in range(n - 1) for j in range(i + 1)],
                   dtype=np.int32)
    E = idx.shape[0]                                  # = n*(n-1)//2
    y_lab = (jax.random.uniform(kl, (B, E)) > 0.5).astype(jnp.float32)
    idx_i = jnp.asarray(idx[:, 0])
    idx_j = jnp.asarray(idx[:, 1])

    fwd = jax.jit(functools.partial(age_forward, nhead=nhead))
    loss = fwd(params, x, y, y_lab, idx_i, idx_j)
    jax.block_until_ready(loss)
    assert loss.shape == () and bool(jnp.isfinite(loss))
    print("KERNEL_OK")
</pallas_src>

<mosaic_0001>
module attributes {stable_mosaic.version = 11 : i64} {
  func.func @_age_fused_kernel(%arg0: i32, %arg1: memref<1x15x8xf32, #tpu.memory_space<vmem>>, %arg2: memref<1x7x8xf32, #tpu.memory_space<vmem>>, %arg3: memref<7x8xf32, #tpu.memory_space<vmem>>, %arg4: memref<8x32xf32, #tpu.memory_space<vmem>>, %arg5: memref<1x32xf32, #tpu.memory_space<vmem>>, %arg6: memref<2x32x96xf32, #tpu.memory_space<vmem>>, %arg7: memref<2x1x96xf32, #tpu.memory_space<vmem>>, %arg8: memref<2x32x32xf32, #tpu.memory_space<vmem>>, %arg9: memref<2x1x32xf32, #tpu.memory_space<vmem>>, %arg10: memref<2x1x32xf32, #tpu.memory_space<vmem>>, %arg11: memref<2x1x32xf32, #tpu.memory_space<vmem>>, %arg12: memref<2x32x64xf32, #tpu.memory_space<vmem>>, %arg13: memref<2x1x64xf32, #tpu.memory_space<vmem>>, %arg14: memref<2x64x32xf32, #tpu.memory_space<vmem>>, %arg15: memref<2x1x32xf32, #tpu.memory_space<vmem>>, %arg16: memref<2x1x32xf32, #tpu.memory_space<vmem>>, %arg17: memref<2x1x32xf32, #tpu.memory_space<vmem>>, %arg18: memref<2x32x96xf32, #tpu.memory_space<vmem>>, %arg19: memref<2x1x96xf32, #tpu.memory_space<vmem>>, %arg20: memref<2x32x32xf32, #tpu.memory_space<vmem>>, %arg21: memref<2x1x32xf32, #tpu.memory_space<vmem>>, %arg22: memref<2x1x32xf32, #tpu.memory_space<vmem>>, %arg23: memref<2x1x32xf32, #tpu.memory_space<vmem>>, %arg24: memref<2x32x96xf32, #tpu.memory_space<vmem>>, %arg25: memref<2x1x96xf32, #tpu.memory_space<vmem>>, %arg26: memref<2x32x32xf32, #tpu.memory_space<vmem>>, %arg27: memref<2x1x32xf32, #tpu.memory_space<vmem>>, %arg28: memref<2x1x32xf32, #tpu.memory_space<vmem>>, %arg29: memref<2x1x32xf32, #tpu.memory_space<vmem>>, %arg30: memref<2x32x64xf32, #tpu.memory_space<vmem>>, %arg31: memref<2x1x64xf32, #tpu.memory_space<vmem>>, %arg32: memref<2x64x32xf32, #tpu.memory_space<vmem>>, %arg33: memref<2x1x32xf32, #tpu.memory_space<vmem>>, %arg34: memref<2x1x32xf32, #tpu.memory_space<vmem>>, %arg35: memref<2x1x32xf32, #tpu.memory_space<vmem>>, %arg36: memref<32x8xf32, #tpu.memory_space<vmem>>, %arg37: memref<1x8xf32, #tpu.memory_space<vmem>>, %arg38: memref<1x1x1xf32, #tpu.memory_space<vmem>>) attributes {dimension_semantics = [#tpu.dimension_semantics<parallel>], iteration_bounds = array<i64: 2>, scalar_prefetch = 0 : i64, scratch_operands = 0 : i64, tpu.core_type = #tpu.core_type<tc>, window_params = [{transform_indices = @transform_0, window_bounds = array<i64: 1, 15, 8>}, {transform_indices = @transform_1, window_bounds = array<i64: 1, 7, 8>}, {pipeline_mode = #tpu.pipeline_mode<synchronous>, transform_indices = @transform_2, window_bounds = array<i64: 7, 8>}, {pipeline_mode = #tpu.pipeline_mode<synchronous>, transform_indices = @transform_3, window_bounds = array<i64: 8, 32>}, {pipeline_mode = #tpu.pipeline_mode<synchronous>, transform_indices = @transform_4, window_bounds = array<i64: 1, 32>}, {pipeline_mode = #tpu.pipeline_mode<synchronous>, transform_indices = @transform_5, window_bounds = array<i64: 2, 32, 96>}, {pipeline_mode = #tpu.pipeline_mode<synchronous>, transform_indices = @transform_6, window_bounds = array<i64: 2, 1, 96>}, {pipeline_mode = #tpu.pipeline_mode<synchronous>, transform_indices = @transform_7, window_bounds = array<i64: 2, 32, 32>}, {pipeline_mode = #tpu.pipeline_mode<synchronous>, transform_indices = @transform_8, window_bounds = array<i64: 2, 1, 32>}, {pipeline_mode = #tpu.pipeline_mode<synchronous>, transform_indices = @transform_9, window_bounds = array<i64: 2, 1, 32>}, {pipeline_mode = #tpu.pipeline_mode<synchronous>, transform_indices = @transform_10, window_bounds = array<i64: 2, 1, 32>}, {pipeline_mode = #tpu.pipeline_mode<synchronous>, transform_indices = @transform_11, window_bounds = array<i64: 2, 32, 64>}, {pipeline_mode = #tpu.pipeline_mode<synchronous>, transform_indices = @transform_12, window_bounds = array<i64: 2, 1, 64>}, {pipeline_mode = #tpu.pipeline_mode<synchronous>, transform_indices = @transform_13, window_bounds = array<i64: 2, 64, 32>}, {pipeline_mode = #tpu.pipeline_mode<synchronous>, transform_indices = @transform_14, window_bounds = array<i64: 2, 1, 32>}, {pipeline_mode = #tpu.pipeline_mode<synchronous>, transform_indices = @transform_15, window_bounds = array<i64: 2, 1, 32>}, {pipeline_mode = #tpu.pipeline_mode<synchronous>, transform_indices = @transform_16, window_bounds = array<i64: 2, 1, 32>}, {pipeline_mode = #tpu.pipeline_mode<synchronous>, transform_indices = @transform_17, window_bounds = array<i64: 2, 32, 96>}, {pipeline_mode = #tpu.pipeline_mode<synchronous>, transform_indices = @transform_18, window_bounds = array<i64: 2, 1, 96>}, {pipeline_mode = #tpu.pipeline_mode<synchronous>, transform_indices = @transform_19, window_bounds = array<i64: 2, 32, 32>}, {pipeline_mode = #tpu.pipeline_mode<synchronous>, transform_indices = @transform_20, window_bounds = array<i64: 2, 1, 32>}, {pipeline_mode = #tpu.pipeline_mode<synchronous>, transform_indices = @transform_21, window_bounds = array<i64: 2, 1, 32>}, {pipeline_mode = #tpu.pipeline_mode<synchronous>, transform_indices = @transform_22, window_bounds = array<i64: 2, 1, 32>}, {pipeline_mode = #tpu.pipeline_mode<synchronous>, transform_indices = @transform_23, window_bounds = array<i64: 2, 32, 96>}, {pipeline_mode = #tpu.pipeline_mode<synchronous>, transform_indices = @transform_24, window_bounds = array<i64: 2, 1, 96>}, {pipeline_mode = #tpu.pipeline_mode<synchronous>, transform_indices = @transform_25, window_bounds = array<i64: 2, 32, 32>}, {pipeline_mode = #tpu.pipeline_mode<synchronous>, transform_indices = @transform_26, window_bounds = array<i64: 2, 1, 32>}, {pipeline_mode = #tpu.pipeline_mode<synchronous>, transform_indices = @transform_27, window_bounds = array<i64: 2, 1, 32>}, {pipeline_mode = #tpu.pipeline_mode<synchronous>, transform_indices = @transform_28, window_bounds = array<i64: 2, 1, 32>}, {pipeline_mode = #tpu.pipeline_mode<synchronous>, transform_indices = @transform_29, window_bounds = array<i64: 2, 32, 64>}, {pipeline_mode = #tpu.pipeline_mode<synchronous>, transform_indices = @transform_30, window_bounds = array<i64: 2, 1, 64>}, {pipeline_mode = #tpu.pipeline_mode<synchronous>, transform_indices = @transform_31, window_bounds = array<i64: 2, 64, 32>}, {pipeline_mode = #tpu.pipeline_mode<synchronous>, transform_indices = @transform_32, window_bounds = array<i64: 2, 1, 32>}, {pipeline_mode = #tpu.pipeline_mode<synchronous>, transform_indices = @transform_33, window_bounds = array<i64: 2, 1, 32>}, {pipeline_mode = #tpu.pipeline_mode<synchronous>, transform_indices = @transform_34, window_bounds = array<i64: 2, 1, 32>}, {pipeline_mode = #tpu.pipeline_mode<synchronous>, transform_indices = @transform_35, window_bounds = array<i64: 32, 8>}, {pipeline_mode = #tpu.pipeline_mode<synchronous>, transform_indices = @transform_36, window_bounds = array<i64: 1, 8>}, {transform_indices = @transform_37, window_bounds = array<i64: 1, 1, 1>}]} {
    %c0 = arith.constant 0 : index
    %c0_0 = arith.constant 0 : index
    %c0_1 = arith.constant 0 : index
    %0 = vector.load %arg1[%c0, %c0_0, %c0_1] : memref<1x15x8xf32, #tpu.memory_space<vmem>>, vector<1x15x8xf32>
    %1 = vector.shape_cast %0 : vector<1x15x8xf32> to vector<15x8xf32>
    %c0_2 = arith.constant 0 : index
    %c0_3 = arith.constant 0 : index
    %2 = vector.load %arg4[%c0_2, %c0_3] : memref<8x32xf32, #tpu.memory_space<vmem>>, vector<8x32xf32>
    %cst = arith.constant dense<0.000000e+00> : vector<15x32xf32>
    %3 = tpu.matmul %1, %2, %cst {dimension_numbers = #tpu.dot_dimension_numbers<[1], [0], [0], [1], [0, 0, 1, 1], [], []>} : vector<15x8xf32>, vector<8x32xf32>, vector<15x32xf32> -> vector<15x32xf32>
    %c0_4 = arith.constant 0 : index
    %c0_5 = arith.constant 0 : index
    %4 = vector.load %arg5[%c0_4, %c0_5] : memref<1x32xf32, #tpu.memory_space<vmem>>, vector<1x32xf32>
    %5 = vector.broadcast %4 : vector<1x32xf32> to vector<15x32xf32>
    %6 = arith.addf %3, %5 : vector<15x32xf32>
    %7 = vector.extract_strided_slice %6 {offsets = [0, 0], sizes = [8, 32], strides = [1, 1]} : vector<15x32xf32> to vector<8x32xf32>
    %8 = vector.extract_strided_slice %6 {offsets = [8, 0], sizes = [7, 32], strides = [1, 1]} : vector<15x32xf32> to vector<7x32xf32>
    %c0_6 = arith.constant 0 : index
    %c0_7 = arith.constant 0 : index
    %c0_8 = arith.constant 0 : index
    %9 = vector.load %arg6[%c0_6, %c0_7, %c0_8] : memref<2x32x96xf32, #tpu.memory_space<vmem>>, vector<1x32x96xf32>
    %10 = vector.shape_cast %9 : vector<1x32x96xf32> to vector<32x96xf32>
    %c0_9 = arith.constant 0 : index
    %c0_10 = arith.constant 0 : index
    %c0_11 = arith.constant 0 : index
    %11 = vector.load %arg7[%c0_9, %c0_10, %c0_11] : memref<2x1x96xf32, #tpu.memory_space<vmem>>, vector<1x1x96xf32>
    %12 = vector.shape_cast %11 : vector<1x1x96xf32> to vector<1x96xf32>
    %c0_12 = arith.constant 0 : index
    %c0_13 = arith.constant 0 : index
    %c0_14 = arith.constant 0 : index
    %13 = vector.load %arg8[%c0_12, %c0_13, %c0_14] : memref<2x32x32xf32, #tpu.memory_space<vmem>>, vector<1x32x32xf32>
    %14 = vector.shape_cast %13 : vector<1x32x32xf32> to vector<32x32xf32>
    %c0_15 = arith.constant 0 : index
    %c0_16 = arith.constant 0 : index
    %c0_17 = arith.constant 0 : index
    %15 = vector.load %arg9[%c0_15, %c0_16, %c0_17] : memref<2x1x32xf32, #tpu.memory_space<vmem>>, vector<1x1x32xf32>
    %16 = vector.shape_cast %15 : vector<1x1x32xf32> to vector<1x32xf32>
    %cst_18 = arith.constant dense<0.000000e+00> : vector<8x96xf32>
    %17 = tpu.matmul %7, %10, %cst_18 {dimension_numbers = #tpu.dot_dimension_numbers<[1], [0], [0], [1], [0, 0, 1, 1], [], []>} : vector<8x32xf32>, vector<32x96xf32>, vector<8x96xf32> -> vector<8x96xf32>
    %18 = vector.broadcast %12 : vector<1x96xf32> to vector<8x96xf32>
    %19 = arith.addf %17, %18 : vector<8x96xf32>
    %20 = vector.extract_strided_slice %19 {offsets = [0, 0], sizes = [8, 32], strides = [1, 1]} : vector<8x96xf32> to vector<8x32xf32>
    %cst_19 = arith.constant 0.353553385 : f32
    %21 = vector.broadcast %cst_19 : f32 to vector<8x32xf32>
    %22 = arith.mulf %20, %21 : vector<8x32xf32>
    %23 = vector.extract_strided_slice %19 {offsets = [0, 32], sizes = [8, 32], strides = [1, 1]} : vector<8x96xf32> to vector<8x32xf32>
    %24 = vector.extract_strided_slice %19 {offsets = [0, 64], sizes = [8, 32], strides = [1, 1]} : vector<8x96xf32> to vector<8x32xf32>
    %25 = vector.extract_strided_slice %22 {offsets = [0, 0], sizes = [8, 8], strides = [1, 1]} : vector<8x32xf32> to vector<8x8xf32>
    %26 = vector.extract_strided_slice %23 {offsets = [0, 0], sizes = [8, 8], strides = [1, 1]} : vector<8x32xf32> to vector<8x8xf32>
    %27 = vector.extract_strided_slice %24 {offsets = [0, 0], sizes = [8, 8], strides = [1, 1]} : vector<8x32xf32> to vector<8x8xf32>
    %cst_20 = arith.constant dense<0.000000e+00> : vector<8x8xf32>
    %28 = tpu.matmul %25, %26, %cst_20 {dimension_numbers = #tpu.dot_dimension_numbers<[1], [1], [0], [0], [0, 0, 1, 0], [], []>} : vector<8x8xf32>, vector<8x8xf32>, vector<8x8xf32> -> vector<8x8xf32>
    %cst_21 = arith.constant dense<0xFF800000> : vector<8xf32>
    %29 = vector.multi_reduction <maximumf>, %28, %cst_21 [1] : vector<8x8xf32> to vector<8xf32>
    %30 = vector.shape_cast %29 : vector<8xf32> to vector<8x1xf32>
    %31 = vector.broadcast %30 : vector<8x1xf32> to vector<8x8xf32>
    %32 = arith.subf %28, %31 : vector<8x8xf32>
    %33 = math.exp %32 : vector<8x8xf32>
    %cst_22 = arith.constant dense<0.000000e+00> : vector<8xf32>
    %34 = vector.multi_reduction <add>, %33, %cst_22 [1] : vector<8x8xf32> to vector<8xf32>
    %35 = vector.shape_cast %34 : vector<8xf32> to vector<8x1xf32>
    %36 = tpu.reciprocal %35 {approx = true} : vector<8x1xf32> -> vector<8x1xf32>
    %37 = vector.broadcast %36 : vector<8x1xf32> to vector<8x8xf32>
    %38 = arith.mulf %33, %37 : vector<8x8xf32>
    %cst_23 = arith.constant dense<0.000000e+00> : vector<8x8xf32>
    %39 = tpu.matmul %38, %27, %cst_23 {dimension_numbers = #tpu.dot_dimension_numbers<[1], [0], [0], [1], [0, 0, 1, 1], [], []>} : vector<8x8xf32>, vector<8x8xf32>, vector<8x8xf32> -> vector<8x8xf32>
    %40 = vector.extract_strided_slice %22 {offsets = [0, 8], sizes = [8, 8], strides = [1, 1]} : vector<8x32xf32> to vector<8x8xf32>
    %41 = vector.extract_strided_slice %23 {offsets = [0, 8], sizes = [8, 8], strides = [1, 1]} : vector<8x32xf32> to vector<8x8xf32>
    %42 = vector.extract_strided_slice %24 {offsets = [0, 8], sizes = [8, 8], strides = [1, 1]} : vector<8x32xf32> to vector<8x8xf32>
    %cst_24 = arith.constant dense<0.000000e+00> : vector<8x8xf32>
    %43 = tpu.matmul %40, %41, %cst_24 {dimension_numbers = #tpu.dot_dimension_numbers<[1], [1], [0], [0], [0, 0, 1, 0], [], []>} : vector<8x8xf32>, vector<8x8xf32>, vector<8x8xf32> -> vector<8x8xf32>
    %cst_25 = arith.constant dense<0xFF800000> : vector<8xf32>
    %44 = vector.multi_reduction <maximumf>, %43, %cst_25 [1] : vector<8x8xf32> to vector<8xf32>
    %45 = vector.shape_cast %44 : vector<8xf32> to vector<8x1xf32>
    %46 = vector.broadcast %45 : vector<8x1xf32> to vector<8x8xf32>
    %47 = arith.subf %43, %46 : vector<8x8xf32>
    %48 = math.exp %47 : vector<8x8xf32>
    %cst_26 = arith.constant dense<0.000000e+00> : vector<8xf32>
    %49 = vector.multi_reduction <add>, %48, %cst_26 [1] : vector<8x8xf32> to vector<8xf32>
    %50 = vector.shape_cast %49 : vector<8xf32> to vector<8x1xf32>
    %51 = tpu.reciprocal %50 {approx = true} : vector<8x1xf32> -> vector<8x1xf32>
    %52 = vector.broadcast %51 : vector<8x1xf32> to vector<8x8xf32>
    %53 = arith.mulf %48, %52 : vector<8x8xf32>
    %cst_27 = arith.constant dense<0.000000e+00> : vector<8x8xf32>
    %54 = tpu.matmul %53, %42, %cst_27 {dimension_numbers = #tpu.dot_dimension_numbers<[1], [0], [0], [1], [0, 0, 1, 1], [], []>} : vector<8x8xf32>, vector<8x8xf32>, vector<8x8xf32> -> vector<8x8xf32>
    %55 = vector.extract_strided_slice %22 {offsets = [0, 16], sizes = [8, 8], strides = [1, 1]} : vector<8x32xf32> to vector<8x8xf32>
    %56 = vector.extract_strided_slice %23 {offsets = [0, 16], sizes = [8, 8], strides = [1, 1]} : vector<8x32xf32> to vector<8x8xf32>
    %57 = vector.extract_strided_slice %24 {offsets = [0, 16], sizes = [8, 8], strides = [1, 1]} : vector<8x32xf32> to vector<8x8xf32>
    %cst_28 = arith.constant dense<0.000000e+00> : vector<8x8xf32>
    %58 = tpu.matmul %55, %56, %cst_28 {dimension_numbers = #tpu.dot_dimension_numbers<[1], [1], [0], [0], [0, 0, 1, 0], [], []>} : vector<8x8xf32>, vector<8x8xf32>, vector<8x8xf32> -> vector<8x8xf32>
    %cst_29 = arith.constant dense<0xFF800000> : vector<8xf32>
    %59 = vector.multi_reduction <maximumf>, %58, %cst_29 [1] : vector<8x8xf32> to vector<8xf32>
    %60 = vector.shape_cast %59 : vector<8xf32> to vector<8x1xf32>
    %61 = vector.broadcast %60 : vector<8x1xf32> to vector<8x8xf32>
    %62 = arith.subf %58, %61 : vector<8x8xf32>
    %63 = math.exp %62 : vector<8x8xf32>
    %cst_30 = arith.constant dense<0.000000e+00> : vector<8xf32>
    %64 = vector.multi_reduction <add>, %63, %cst_30 [1] : vector<8x8xf32> to vector<8xf32>
    %65 = vector.shape_cast %64 : vector<8xf32> to vector<8x1xf32>
    %66 = tpu.reciprocal %65 {approx = true} : vector<8x1xf32> -> vector<8x1xf32>
    %67 = vector.broadcast %66 : vector<8x1xf32> to vector<8x8xf32>
    %68 = arith.mulf %63, %67 : vector<8x8xf32>
    %cst_31 = arith.constant dense<0.000000e+00> : vector<8x8xf32>
    %69 = tpu.matmul %68, %57, %cst_31 {dimension_numbers = #tpu.dot_dimension_numbers<[1], [0], [0], [1], [0, 0, 1, 1], [], []>} : vector<8x8xf32>, vector<8x8xf32>, vector<8x8xf32> -> vector<8x8xf32>
    %70 = vector.extract_strided_slice %22 {offsets = [0, 24], sizes = [8, 8], strides = [1, 1]} : vector<8x32xf32> to vector<8x8xf32>
    %71 = vector.extract_strided_slice %23 {offsets = [0, 24], sizes = [8, 8], strides = [1, 1]} : vector<8x32xf32> to vector<8x8xf32>
    %72 = vector.extract_strided_slice %24 {offsets = [0, 24], sizes = [8, 8], strides = [1, 1]} : vector<8x32xf32> to vector<8x8xf32>
    %cst_32 = arith.constant dense<0.000000e+00> : vector<8x8xf32>
    %73 = tpu.matmul %70, %71, %cst_32 {dimension_numbers = #tpu.dot_dimension_numbers<[1], [1], [0], [0], [0, 0, 1, 0], [], []>} : vector<8x8xf32>, vector<8x8xf32>, vector<8x8xf32> -> vector<8x8xf32>
    %cst_33 = arith.constant dense<0xFF800000> : vector<8xf32>
    %74 = vector.multi_reduction <maximumf>, %73, %cst_33 [1] : vector<8x8xf32> to vector<8xf32>
    %75 = vector.shape_cast %74 : vector<8xf32> to vector<8x1xf32>
    %76 = vector.broadcast %75 : vector<8x1xf32> to vector<8x8xf32>
    %77 = arith.subf %73, %76 : vector<8x8xf32>
    %78 = math.exp %77 : vector<8x8xf32>
    %cst_34 = arith.constant dense<0.000000e+00> : vector<8xf32>
    %79 = vector.multi_reduction <add>, %78, %cst_34 [1] : vector<8x8xf32> to vector<8xf32>
    %80 = vector.shape_cast %79 : vector<8xf32> to vector<8x1xf32>
    %81 = tpu.reciprocal %80 {approx = true} : vector<8x1xf32> -> vector<8x1xf32>
    %82 = vector.broadcast %81 : vector<8x1xf32> to vector<8x8xf32>
    %83 = arith.mulf %78, %82 : vector<8x8xf32>
    %cst_35 = arith.constant dense<0.000000e+00> : vector<8x8xf32>
    %84 = tpu.matmul %83, %72, %cst_35 {dimension_numbers = #tpu.dot_dimension_numbers<[1], [0], [0], [1], [0, 0, 1, 1], [], []>} : vector<8x8xf32>, vector<8x8xf32>, vector<8x8xf32> -> vector<8x8xf32>
    %85 = tpu.concatenate %39, %54, %69, %84 in 1 : vector<8x8xf32>, vector<8x8xf32>, vector<8x8xf32>, vector<8x8xf32> -> vector<8x32xf32>
    %cst_36 = arith.constant dense<0.000000e+00> : vector<8x32xf32>
    %86 = tpu.matmul %85, %14, %cst_36 {dimension_numbers = #tpu.dot_dimension_numbers<[1], [0], [0], [1], [0, 0, 1, 1], [], []>} : vector<8x32xf32>, vector<32x32xf32>, vector<8x32xf32> -> vector<8x32xf32>
    %87 = vector.broadcast %16 : vector<1x32xf32> to vector<8x32xf32>
    %88 = arith.addf %86, %87 : vector<8x32xf32>
    %89 = arith.addf %7, %88 : vector<8x32xf32>
    %c0_37 = arith.constant 0 : index
    %c0_38 = arith.constant 0 : index
    %c0_39 = arith.constant 0 : index
    %90 = vector.load %arg10[%c0_37, %c0_38, %c0_39] : memref<2x1x32xf32, #tpu.memory_space<vmem>>, vector<1x1x32xf32>
    %91 = vector.shape_cast %90 : vector<1x1x32xf32> to vector<1x32xf32>
    %c0_40 = arith.constant 0 : index
    %c0_41 = arith.constant 0 : index
    %c0_42 = arith.constant 0 : index
    %92 = vector.load %arg11[%c0_40, %c0_41, %c0_42] : memref<2x1x32xf32, #tpu.memory_space<vmem>>, vector<1x1x32xf32>
    %93 = vector.shape_cast %92 : vector<1x1x32xf32> to vector<1x32xf32>
    %cst_43 = arith.constant dense<0.000000e+00> : vector<8xf32>
    %94 = vector.multi_reduction <add>, %89, %cst_43 [1] : vector<8x32xf32> to vector<8xf32>
    %95 = vector.shape_cast %94 : vector<8xf32> to vector<8x1xf32>
    %cst_44 = arith.constant 3.200000e+01 : f32
    %96 = vector.broadcast %cst_44 : f32 to vector<8x1xf32>
    %97 = arith.divf %95, %96 : vector<8x1xf32>
    %98 = vector.broadcast %97 : vector<8x1xf32> to vector<8x32xf32>
    %99 = arith.subf %89, %98 : vector<8x32xf32>
    %100 = arith.mulf %99, %99 : vector<8x32xf32>
    %cst_45 = arith.constant dense<0.000000e+00> : vector<8xf32>
    %101 = vector.multi_reduction <add>, %100, %cst_45 [1] : vector<8x32xf32> to vector<8xf32>
    %102 = vector.shape_cast %101 : vector<8xf32> to vector<8x1xf32>
    %cst_46 = arith.constant 3.200000e+01 : f32
    %103 = vector.broadcast %cst_46 : f32 to vector<8x1xf32>
    %104 = arith.divf %102, %103 : vector<8x1xf32>
    %105 = vector.broadcast %97 : vector<8x1xf32> to vector<8x32xf32>
    %106 = arith.subf %89, %105 : vector<8x32xf32>
    %cst_47 = arith.constant 9.99999974E-6 : f32
    %107 = vector.broadcast %cst_47 : f32 to vector<8x1xf32>
    %108 = arith.addf %104, %107 : vector<8x1xf32>
    %109 = math.rsqrt %108 : vector<8x1xf32>
    %110 = vector.broadcast %109 : vector<8x1xf32> to vector<8x32xf32>
    %111 = arith.mulf %106, %110 : vector<8x32xf32>
    %112 = vector.broadcast %91 : vector<1x32xf32> to vector<8x32xf32>
    %113 = arith.mulf %111, %112 : vector<8x32xf32>
    %114 = vector.broadcast %93 : vector<1x32xf32> to vector<8x32xf32>
    %115 = arith.addf %113, %114 : vector<8x32xf32>
    %c0_48 = arith.constant 0 : index
    %c0_49 = arith.constant 0 : index
    %c0_50 = arith.constant 0 : index
    %116 = vector.load %arg12[%c0_48, %c0_49, %c0_50] : memref<2x32x64xf32, #tpu.memory_space<vmem>>, vector<1x32x64xf32>
    %117 = vector.shape_cast %116 : vector<1x32x64xf32> to vector<32x64xf32>
    %cst_51 = arith.constant dense<0.000000e+00> : vector<8x64xf32>
    %118 = tpu.matmul %115, %117, %cst_51 {dimension_numbers = #tpu.dot_dimension_numbers<[1], [0], [0], [1], [0, 0, 1, 1], [], []>} : vector<8x32xf32>, vector<32x64xf32>, vector<8x64xf32> -> vector<8x64xf32>
    %c0_52 = arith.constant 0 : index
    %c0_53 = arith.constant 0 : index
    %c0_54 = arith.constant 0 : index
    %119 = vector.load %arg13[%c0_52, %c0_53, %c0_54] : memref<2x1x64xf32, #tpu.memory_space<vmem>>, vector<1x1x64xf32>
    %120 = vector.shape_cast %119 : vector<1x1x64xf32> to vector<1x64xf32>
    %121 = vector.broadcast %120 : vector<1x64xf32> to vector<8x64xf32>
    %122 = arith.addf %118, %121 : vector<8x64xf32>
    %cst_55 = arith.constant 0.000000e+00 : f32
    %123 = vector.broadcast %cst_55 : f32 to vector<8x64xf32>
    %124 = arith.maximumf %122, %123 : vector<8x64xf32>
    %c0_56 = arith.constant 0 : index
    %c0_57 = arith.constant 0 : index
    %c0_58 = arith.constant 0 : index
    %125 = vector.load %arg14[%c0_56, %c0_57, %c0_58] : memref<2x64x32xf32, #tpu.memory_space<vmem>>, vector<1x64x32xf32>
    %126 = vector.shape_cast %125 : vector<1x64x32xf32> to vector<64x32xf32>
    %cst_59 = arith.constant dense<0.000000e+00> : vector<8x32xf32>
    %127 = tpu.matmul %124, %126, %cst_59 {dimension_numbers = #tpu.dot_dimension_numbers<[1], [0], [0], [1], [0, 0, 1, 1], [], []>} : vector<8x64xf32>, vector<64x32xf32>, vector<8x32xf32> -> vector<8x32xf32>
    %c0_60 = arith.constant 0 : index
    %c0_61 = arith.constant 0 : index
    %c0_62 = arith.constant 0 : index
    %128 = vector.load %arg15[%c0_60, %c0_61, %c0_62] : memref<2x1x32xf32, #tpu.memory_space<vmem>>, vector<1x1x32xf32>
    %129 = vector.shape_cast %128 : vector<1x1x32xf32> to vector<1x32xf32>
    %130 = vector.broadcast %129 : vector<1x32xf32> to vector<8x32xf32>
    %131 = arith.addf %127, %130 : vector<8x32xf32>
    %132 = arith.addf %115, %131 : vector<8x32xf32>
    %c0_63 = arith.constant 0 : index
    %c0_64 = arith.constant 0 : index
    %c0_65 = arith.constant 0 : index
    %133 = vector.load %arg16[%c0_63, %c0_64, %c0_65] : memref<2x1x32xf32, #tpu.memory_space<vmem>>, vector<1x1x32xf32>
    %134 = vector.shape_cast %133 : vector<1x1x32xf32> to vector<1x32xf32>
    %c0_66 = arith.constant 0 : index
    %c0_67 = arith.constant 0 : index
    %c0_68 = arith.constant 0 : index
    %135 = vector.load %arg17[%c0_66, %c0_67, %c0_68] : memref<2x1x32xf32, #tpu.memory_space<vmem>>, vector<1x1x32xf32>
    %136 = vector.shape_cast %135 : vector<1x1x32xf32> to vector<1x32xf32>
    %cst_69 = arith.constant dense<0.000000e+00> : vector<8xf32>
    %137 = vector.multi_reduction <add>, %132, %cst_69 [1] : vector<8x32xf32> to vector<8xf32>
    %138 = vector.shape_cast %137 : vector<8xf32> to vector<8x1xf32>
    %cst_70 = arith.constant 3.200000e+01 : f32
    %139 = vector.broadcast %cst_70 : f32 to vector<8x1xf32>
    %140 = arith.divf %138, %139 : vector<8x1xf32>
    %141 = vector.broadcast %140 : vector<8x1xf32> to vector<8x32xf32>
    %142 = arith.subf %132, %141 : vector<8x32xf32>
    %143 = arith.mulf %142, %142 : vector<8x32xf32>
    %cst_71 = arith.constant dense<0.000000e+00> : vector<8xf32>
    %144 = vector.multi_reduction <add>, %143, %cst_71 [1] : vector<8x32xf32> to vector<8xf32>
    %145 = vector.shape_cast %144 : vector<8xf32> to vector<8x1xf32>
    %cst_72 = arith.constant 3.200000e+01 : f32
    %146 = vector.broadcast %cst_72 : f32 to vector<8x1xf32>
    %147 = arith.divf %145, %146 : vector<8x1xf32>
    %148 = vector.broadcast %140 : vector<8x1xf32> to vector<8x32xf32>
    %149 = arith.subf %132, %148 : vector<8x32xf32>
    %cst_73 = arith.constant 9.99999974E-6 : f32
    %150 = vector.broadcast %cst_73 : f32 to vector<8x1xf32>
    %151 = arith.addf %147, %150 : vector<8x1xf32>
    %152 = math.rsqrt %151 : vector<8x1xf32>
    %153 = vector.broadcast %152 : vector<8x1xf32> to vector<8x32xf32>
    %154 = arith.mulf %149, %153 : vector<8x32xf32>
    %155 = vector.broadcast %134 : vector<1x32xf32> to vector<8x32xf32>
    %156 = arith.mulf %154, %155 : vector<8x32xf32>
    %157 = vector.broadcast %136 : vector<1x32xf32> to vector<8x32xf32>
    %158 = arith.addf %156, %157 : vector<8x32xf32>
    %c1 = arith.constant 1 : index
    %c0_74 = arith.constant 0 : index
    %c0_75 = arith.constant 0 : index
    %159 = vector.load %arg6[%c1, %c0_74, %c0_75] : memref<2x32x96xf32, #tpu.memory_space<vmem>>, vector<1x32x96xf32>
    %160 = vector.shape_cast %159 : vector<1x32x96xf32> to vector<32x96xf32>
    %c1_76 = arith.constant 1 : index
    %c0_77 = arith.constant 0 : index
    %c0_78 = arith.constant 0 : index
    %161 = vector.load %arg7[%c1_76, %c0_77, %c0_78] : memref<2x1x96xf32, #tpu.memory_space<vmem>>, vector<1x1x96xf32>
    %162 = vector.shape_cast %161 : vector<1x1x96xf32> to vector<1x96xf32>
    %c1_79 = arith.constant 1 : index
    %c0_80 = arith.constant 0 : index
    %c0_81 = arith.constant 0 : index
    %163 = vector.load %arg8[%c1_79, %c0_80, %c0_81] : memref<2x32x32xf32, #tpu.memory_space<vmem>>, vector<1x32x32xf32>
    %164 = vector.shape_cast %163 : vector<1x32x32xf32> to vector<32x32xf32>
    %c1_82 = arith.constant 1 : index
    %c0_83 = arith.constant 0 : index
    %c0_84 = arith.constant 0 : index
    %165 = vector.load %arg9[%c1_82, %c0_83, %c0_84] : memref<2x1x32xf32, #tpu.memory_space<vmem>>, vector<1x1x32xf32>
    %166 = vector.shape_cast %165 : vector<1x1x32xf32> to vector<1x32xf32>
    %cst_85 = arith.constant dense<0.000000e+00> : vector<8x96xf32>
    %167 = tpu.matmul %158, %160, %cst_85 {dimension_numbers = #tpu.dot_dimension_numbers<[1], [0], [0], [1], [0, 0, 1, 1], [], []>} : vector<8x32xf32>, vector<32x96xf32>, vector<8x96xf32> -> vector<8x96xf32>
    %168 = vector.broadcast %162 : vector<1x96xf32> to vector<8x96xf32>
    %169 = arith.addf %167, %168 : vector<8x96xf32>
    %170 = vector.extract_strided_slice %169 {offsets = [0, 0], sizes = [8, 32], strides = [1, 1]} : vector<8x96xf32> to vector<8x32xf32>
    %cst_86 = arith.constant 0.353553385 : f32
    %171 = vector.broadcast %cst_86 : f32 to vector<8x32xf32>
    %172 = arith.mulf %170, %171 : vector<8x32xf32>
    %173 = vector.extract_strided_slice %169 {offsets = [0, 32], sizes = [8, 32], strides = [1, 1]} : vector<8x96xf32> to vector<8x32xf32>
    %174 = vector.extract_strided_slice %169 {offsets = [0, 64], sizes = [8, 32], strides = [1, 1]} : vector<8x96xf32> to vector<8x32xf32>
    %175 = vector.extract_strided_slice %172 {offsets = [0, 0], sizes = [8, 8], strides = [1, 1]} : vector<8x32xf32> to vector<8x8xf32>
    %176 = vector.extract_strided_slice %173 {offsets = [0, 0], sizes = [8, 8], strides = [1, 1]} : vector<8x32xf32> to vector<8x8xf32>
    %177 = vector.extract_strided_slice %174 {offsets = [0, 0], sizes = [8, 8], strides = [1, 1]} : vector<8x32xf32> to vector<8x8xf32>
    %cst_87 = arith.constant dense<0.000000e+00> : vector<8x8xf32>
    %178 = tpu.matmul %175, %176, %cst_87 {dimension_numbers = #tpu.dot_dimension_numbers<[1], [1], [0], [0], [0, 0, 1, 0], [], []>} : vector<8x8xf32>, vector<8x8xf32>, vector<8x8xf32> -> vector<8x8xf32>
    %cst_88 = arith.constant dense<0xFF800000> : vector<8xf32>
    %179 = vector.multi_reduction <maximumf>, %178, %cst_88 [1] : vector<8x8xf32> to vector<8xf32>
    %180 = vector.shape_cast %179 : vector<8xf32> to vector<8x1xf32>
    %181 = vector.broadcast %180 : vector<8x1xf32> to vector<8x8xf32>
    %182 = arith.subf %178, %181 : vector<8x8xf32>
    %183 = math.exp %182 : vector<8x8xf32>
    %cst_89 = arith.constant dense<0.000000e+00> : vector<8xf32>
    %184 = vector.multi_reduction <add>, %183, %cst_89 [1] : vector<8x8xf32> to vector<8xf32>
    %185 = vector.shape_cast %184 : vector<8xf32> to vector<8x1xf32>
    %186 = tpu.reciprocal %185 {approx = true} : vector<8x1xf32> -> vector<8x1xf32>
    %187 = vector.broadcast %186 : vector<8x1xf32> to vector<8x8xf32>
    %188 = arith.mulf %183, %187 : vector<8x8xf32>
    %cst_90 = arith.constant dense<0.000000e+00> : vector<8x8xf32>
    %189 = tpu.matmul %188, %177, %cst_90 {dimension_numbers = #tpu.dot_dimension_numbers<[1], [0], [0], [1], [0, 0, 1, 1], [], []>} : vector<8x8xf32>, vector<8x8xf32>, vector<8x8xf32> -> vector<8x8xf32>
    %190 = vector.extract_strided_slice %172 {offsets = [0, 8], sizes = [8, 8], strides = [1, 1]} : vector<8x32xf32> to vector<8x8xf32>
    %191 = vector.extract_strided_slice %173 {offsets = [0, 8], sizes = [8, 8], strides = [1, 1]} : vector<8x32xf32> to vector<8x8xf32>
    %192 = vector.extract_strided_slice %174 {offsets = [0, 8], sizes = [8, 8], strides = [1, 1]} : vector<8x32xf32> to vector<8x8xf32>
    %cst_91 = arith.constant dense<0.000000e+00> : vector<8x8xf32>
    %193 = tpu.matmul %190, %191, %cst_91 {dimension_numbers = #tpu.dot_dimension_numbers<[1], [1], [0], [0], [0, 0, 1, 0], [], []>} : vector<8x8xf32>, vector<8x8xf32>, vector<8x8xf32> -> vector<8x8xf32>
    %cst_92 = arith.constant dense<0xFF800000> : vector<8xf32>
    %194 = vector.multi_reduction <maximumf>, %193, %cst_92 [1] : vector<8x8xf32> to vector<8xf32>
    %195 = vector.shape_cast %194 : vector<8xf32> to vector<8x1xf32>
    %196 = vector.broadcast %195 : vector<8x1xf32> to vector<8x8xf32>
    %197 = arith.subf %193, %196 : vector<8x8xf32>
    %198 = math.exp %197 : vector<8x8xf32>
    %cst_93 = arith.constant dense<0.000000e+00> : vector<8xf32>
    %199 = vector.multi_reduction <add>, %198, %cst_93 [1] : vector<8x8xf32> to vector<8xf32>
    %200 = vector.shape_cast %199 : vector<8xf32> to vector<8x1xf32>
    %201 = tpu.reciprocal %200 {approx = true} : vector<8x1xf32> -> vector<8x1xf32>
    %202 = vector.broadcast %201 : vector<8x1xf32> to vector<8x8xf32>
    %203 = arith.mulf %198, %202 : vector<8x8xf32>
    %cst_94 = arith.constant dense<0.000000e+00> : vector<8x8xf32>
    %204 = tpu.matmul %203, %192, %cst_94 {dimension_numbers = #tpu.dot_dimension_numbers<[1], [0], [0], [1], [0, 0, 1, 1], [], []>} : vector<8x8xf32>, vector<8x8xf32>, vector<8x8xf32> -> vector<8x8xf32>
    %205 = vector.extract_strided_slice %172 {offsets = [0, 16], sizes = [8, 8], strides = [1, 1]} : vector<8x32xf32> to vector<8x8xf32>
    %206 = vector.extract_strided_slice %173 {offsets = [0, 16], sizes = [8, 8], strides = [1, 1]} : vector<8x32xf32> to vector<8x8xf32>
    %207 = vector.extract_strided_slice %174 {offsets = [0, 16], sizes = [8, 8], strides = [1, 1]} : vector<8x32xf32> to vector<8x8xf32>
    %cst_95 = arith.constant dense<0.000000e+00> : vector<8x8xf32>
    %208 = tpu.matmul %205, %206, %cst_95 {dimension_numbers = #tpu.dot_dimension_numbers<[1], [1], [0], [0], [0, 0, 1, 0], [], []>} : vector<8x8xf32>, vector<8x8xf32>, vector<8x8xf32> -> vector<8x8xf32>
    %cst_96 = arith.constant dense<0xFF800000> : vector<8xf32>
    %209 = vector.multi_reduction <maximumf>, %208, %cst_96 [1] : vector<8x8xf32> to vector<8xf32>
    %210 = vector.shape_cast %209 : vector<8xf32> to vector<8x1xf32>
    %211 = vector.broadcast %210 : vector<8x1xf32> to vector<8x8xf32>
    %212 = arith.subf %208, %211 : vector<8x8xf32>
    %213 = math.exp %212 : vector<8x8xf32>
    %cst_97 = arith.constant dense<0.000000e+00> : vector<8xf32>
    %214 = vector.multi_reduction <add>, %213, %cst_97 [1] : vector<8x8xf32> to vector<8xf32>
    %215 = vector.shape_cast %214 : vector<8xf32> to vector<8x1xf32>
    %216 = tpu.reciprocal %215 {approx = true} : vector<8x1xf32> -> vector<8x1xf32>
    %217 = vector.broadcast %216 : vector<8x1xf32> to vector<8x8xf32>
    %218 = arith.mulf %213, %217 : vector<8x8xf32>
    %cst_98 = arith.constant dense<0.000000e+00> : vector<8x8xf32>
    %219 = tpu.matmul %218, %207, %cst_98 {dimension_numbers = #tpu.dot_dimension_numbers<[1], [0], [0], [1], [0, 0, 1, 1], [], []>} : vector<8x8xf32>, vector<8x8xf32>, vector<8x8xf32> -> vector<8x8xf32>
    %220 = vector.extract_strided_slice %172 {offsets = [0, 24], sizes = [8, 8], strides = [1, 1]} : vector<8x32xf32> to vector<8x8xf32>
    %221 = vector.extract_strided_slice %173 {offsets = [0, 24], sizes = [8, 8], strides = [1, 1]} : vector<8x32xf32> to vector<8x8xf32>
    %222 = vector.extract_strided_slice %174 {offsets = [0, 24], sizes = [8, 8], strides = [1, 1]} : vector<8x32xf32> to vector<8x8xf32>
    %cst_99 = arith.constant dense<0.000000e+00> : vector<8x8xf32>
    %223 = tpu.matmul %220, %221, %cst_99 {dimension_numbers = #tpu.dot_dimension_numbers<[1], [1], [0], [0], [0, 0, 1, 0], [], []>} : vector<8x8xf32>, vector<8x8xf32>, vector<8x8xf32> -> vector<8x8xf32>
    %cst_100 = arith.constant dense<0xFF800000> : vector<8xf32>
    %224 = vector.multi_reduction <maximumf>, %223, %cst_100 [1] : vector<8x8xf32> to vector<8xf32>
    %225 = vector.shape_cast %224 : vector<8xf32> to vector<8x1xf32>
    %226 = vector.broadcast %225 : vector<8x1xf32> to vector<8x8xf32>
    %227 = arith.subf %223, %226 : vector<8x8xf32>
    %228 = math.exp %227 : vector<8x8xf32>
    %cst_101 = arith.constant dense<0.000000e+00> : vector<8xf32>
    %229 = vector.multi_reduction <add>, %228, %cst_101 [1] : vector<8x8xf32> to vector<8xf32>
    %230 = vector.shape_cast %229 : vector<8xf32> to vector<8x1xf32>
    %231 = tpu.reciprocal %230 {approx = true} : vector<8x1xf32> -> vector<8x1xf32>
    %232 = vector.broadcast %231 : vector<8x1xf32> to vector<8x8xf32>
    %233 = arith.mulf %228, %232 : vector<8x8xf32>
    %cst_102 = arith.constant dense<0.000000e+00> : vector<8x8xf32>
    %234 = tpu.matmul %233, %222, %cst_102 {dimension_numbers = #tpu.dot_dimension_numbers<[1], [0], [0], [1], [0, 0, 1, 1], [], []>} : vector<8x8xf32>, vector<8x8xf32>, vector<8x8xf32> -> vector<8x8xf32>
    %235 = tpu.concatenate %189, %204, %219, %234 in 1 : vector<8x8xf32>, vector<8x8xf32>, vector<8x8xf32>, vector<8x8xf32> -> vector<8x32xf32>
    %cst_103 = arith.constant dense<0.000000e+00> : vector<8x32xf32>
    %236 = tpu.matmul %235, %164, %cst_103 {dimension_numbers = #tpu.dot_dimension_numbers<[1], [0], [0], [1], [0, 0, 1, 1], [], []>} : vector<8x32xf32>, vector<32x32xf32>, vector<8x32xf32> -> vector<8x32xf32>
    %237 = vector.broadcast %166 : vector<1x32xf32> to vector<8x32xf32>
    %238 = arith.addf %236, %237 : vector<8x32xf32>
    %239 = arith.addf %158, %238 : vector<8x32xf32>
    %c1_104 = arith.constant 1 : index
    %c0_105 = arith.constant 0 : index
    %c0_106 = arith.constant 0 : index
    %240 = vector.load %arg10[%c1_104, %c0_105, %c0_106] : memref<2x1x32xf32, #tpu.memory_space<vmem>>, vector<1x1x32xf32>
    %241 = vector.shape_cast %240 : vector<1x1x32xf32> to vector<1x32xf32>
    %c1_107 = arith.constant 1 : index
    %c0_108 = arith.constant 0 : index
    %c0_109 = arith.constant 0 : index
    %242 = vector.load %arg11[%c1_107, %c0_108, %c0_109] : memref<2x1x32xf32, #tpu.memory_space<vmem>>, vector<1x1x32xf32>
    %243 = vector.shape_cast %242 : vector<1x1x32xf32> to vector<1x32xf32>
    %cst_110 = arith.constant dense<0.000000e+00> : vector<8xf32>
    %244 = vector.multi_reduction <add>, %239, %cst_110 [1] : vector<8x32xf32> to vector<8xf32>
    %245 = vector.shape_cast %244 : vector<8xf32> to vector<8x1xf32>
    %cst_111 = arith.constant 3.200000e+01 : f32
    %246 = vector.broadcast %cst_111 : f32 to vector<8x1xf32>
    %247 = arith.divf %245, %246 : vector<8x1xf32>
    %248 = vector.broadcast %247 : vector<8x1xf32> to vector<8x32xf32>
    %249 = arith.subf %239, %248 : vector<8x32xf32>
    %250 = arith.mulf %249, %249 : vector<8x32xf32>
    %cst_112 = arith.constant dense<0.000000e+00> : vector<8xf32>
    %251 = vector.multi_reduction <add>, %250, %cst_112 [1] : vector<8x32xf32> to vector<8xf32>
    %252 = vector.shape_cast %251 : vector<8xf32> to vector<8x1xf32>
    %cst_113 = arith.constant 3.200000e+01 : f32
    %253 = vector.broadcast %cst_113 : f32 to vector<8x1xf32>
    %254 = arith.divf %252, %253 : vector<8x1xf32>
    %255 = vector.broadcast %247 : vector<8x1xf32> to vector<8x32xf32>
    %256 = arith.subf %239, %255 : vector<8x32xf32>
    %cst_114 = arith.constant 9.99999974E-6 : f32
    %257 = vector.broadcast %cst_114 : f32 to vector<8x1xf32>
    %258 = arith.addf %254, %257 : vector<8x1xf32>
    %259 = math.rsqrt %258 : vector<8x1xf32>
    %260 = vector.broadcast %259 : vector<8x1xf32> to vector<8x32xf32>
    %261 = arith.mulf %256, %260 : vector<8x32xf32>
    %262 = vector.broadcast %241 : vector<1x32xf32> to vector<8x32xf32>
    %263 = arith.mulf %261, %262 : vector<8x32xf32>
    %264 = vector.broadcast %243 : vector<1x32xf32> to vector<8x32xf32>
    %265 = arith.addf %263, %264 : vector<8x32xf32>
    %c1_115 = arith.constant 1 : index
    %c0_116 = arith.constant 0 : index
    %c0_117 = arith.constant 0 : index
    %266 = vector.load %arg12[%c1_115, %c0_116, %c0_117] : memref<2x32x64xf32, #tpu.memory_space<vmem>>, vector<1x32x64xf32>
    %267 = vector.shape_cast %266 : vector<1x32x64xf32> to vector<32x64xf32>
    %cst_118 = arith.constant dense<0.000000e+00> : vector<8x64xf32>
    %268 = tpu.matmul %265, %267, %cst_118 {dimension_numbers = #tpu.dot_dimension_numbers<[1], [0], [0], [1], [0, 0, 1, 1], [], []>} : vector<8x32xf32>, vector<32x64xf32>, vector<8x64xf32> -> vector<8x64xf32>
    %c1_119 = arith.constant 1 : index
    %c0_120 = arith.constant 0 : index
    %c0_121 = arith.constant 0 : index
    %269 = vector.load %arg13[%c1_119, %c0_120, %c0_121] : memref<2x1x64xf32, #tpu.memory_space<vmem>>, vector<1x1x64xf32>
    %270 = vector.shape_cast %269 : vector<1x1x64xf32> to vector<1x64xf32>
    %271 = vector.broadcast %270 : vector<1x64xf32> to vector<8x64xf32>
    %272 = arith.addf %268, %271 : vector<8x64xf32>
    %cst_122 = arith.constant 0.000000e+00 : f32
    %273 = vector.broadcast %cst_122 : f32 to vector<8x64xf32>
    %274 = arith.maximumf %272, %273 : vector<8x64xf32>
    %c1_123 = arith.constant 1 : index
    %c0_124 = arith.constant 0 : index
    %c0_125 = arith.constant 0 : index
    %275 = vector.load %arg14[%c1_123, %c0_124, %c0_125] : memref<2x64x32xf32, #tpu.memory_space<vmem>>, vector<1x64x32xf32>
    %276 = vector.shape_cast %275 : vector<1x64x32xf32> to vector<64x32xf32>
    %cst_126 = arith.constant dense<0.000000e+00> : vector<8x32xf32>
    %277 = tpu.matmul %274, %276, %cst_126 {dimension_numbers = #tpu.dot_dimension_numbers<[1], [0], [0], [1], [0, 0, 1, 1], [], []>} : vector<8x64xf32>, vector<64x32xf32>, vector<8x32xf32> -> vector<8x32xf32>
    %c1_127 = arith.constant 1 : index
    %c0_128 = arith.constant 0 : index
    %c0_129 = arith.constant 0 : index
    %278 = vector.load %arg15[%c1_127, %c0_128, %c0_129] : memref<2x1x32xf32, #tpu.memory_space<vmem>>, vector<1x1x32xf32>
    %279 = vector.shape_cast %278 : vector<1x1x32xf32> to vector<1x32xf32>
    %280 = vector.broadcast %279 : vector<1x32xf32> to vector<8x32xf32>
    %281 = arith.addf %277, %280 : vector<8x32xf32>
    %282 = arith.addf %265, %281 : vector<8x32xf32>
    %c1_130 = arith.constant 1 : index
    %c0_131 = arith.constant 0 : index
    %c0_132 = arith.constant 0 : index
    %283 = vector.load %arg16[%c1_130, %c0_131, %c0_132] : memref<2x1x32xf32, #tpu.memory_space<vmem>>, vector<1x1x32xf32>
    %284 = vector.shape_cast %283 : vector<1x1x32xf32> to vector<1x32xf32>
    %c1_133 = arith.constant 1 : index
    %c0_134 = arith.constant 0 : index
    %c0_135 = arith.constant 0 : index
    %285 = vector.load %arg17[%c1_133, %c0_134, %c0_135] : memref<2x1x32xf32, #tpu.memory_space<vmem>>, vector<1x1x32xf32>
    %286 = vector.shape_cast %285 : vector<1x1x32xf32> to vector<1x32xf32>
    %cst_136 = arith.constant dense<0.000000e+00> : vector<8xf32>
    %287 = vector.multi_reduction <add>, %282, %cst_136 [1] : vector<8x32xf32> to vector<8xf32>
    %288 = vector.shape_cast %287 : vector<8xf32> to vector<8x1xf32>
    %cst_137 = arith.constant 3.200000e+01 : f32
    %289 = vector.broadcast %cst_137 : f32 to vector<8x1xf32>
    %290 = arith.divf %288, %289 : vector<8x1xf32>
    %291 = vector.broadcast %290 : vector<8x1xf32> to vector<8x32xf32>
    %292 = arith.subf %282, %291 : vector<8x32xf32>
    %293 = arith.mulf %292, %292 : vector<8x32xf32>
    %cst_138 = arith.constant dense<0.000000e+00> : vector<8xf32>
    %294 = vector.multi_reduction <add>, %293, %cst_138 [1] : vector<8x32xf32> to vector<8xf32>
    %295 = vector.shape_cast %294 : vector<8xf32> to vector<8x1xf32>
    %cst_139 = arith.constant 3.200000e+01 : f32
    %296 = vector.broadcast %cst_139 : f32 to vector<8x1xf32>
    %297 = arith.divf %295, %296 : vector<8x1xf32>
    %298 = vector.broadcast %290 : vector<8x1xf32> to vector<8x32xf32>
    %299 = arith.subf %282, %298 : vector<8x32xf32>
    %cst_140 = arith.constant 9.99999974E-6 : f32
    %300 = vector.broadcast %cst_140 : f32 to vector<8x1xf32>
    %301 = arith.addf %297, %300 : vector<8x1xf32>
    %302 = math.rsqrt %301 : vector<8x1xf32>
    %303 = vector.broadcast %302 : vector<8x1xf32> to vector<8x32xf32>
    %304 = arith.mulf %299, %303 : vector<8x32xf32>
    %305 = vector.broadcast %284 : vector<1x32xf32> to vector<8x32xf32>
    %306 = arith.mulf %304, %305 : vector<8x32xf32>
    %307 = vector.broadcast %286 : vector<1x32xf32> to vector<8x32xf32>
    %308 = arith.addf %306, %307 : vector<8x32xf32>
    %309 = tpu.iota {dimensions = array<i32: 0>} : vector<7x7xi32>
    %310 = tpu.iota {dimensions = array<i32: 1>} : vector<7x7xi32>
    %311 = arith.cmpi sle, %310, %309 : vector<7x7xi32>
    %c0_141 = arith.constant 0 : index
    %c0_142 = arith.constant 0 : index
    %c0_143 = arith.constant 0 : index
    %312 = vector.load %arg18[%c0_141, %c0_142, %c0_143] : memref<2x32x96xf32, #tpu.memory_space<vmem>>, vector<1x32x96xf32>
    %313 = vector.shape_cast %312 : vector<1x32x96xf32> to vector<32x96xf32>
    %c0_144 = arith.constant 0 : index
    %c0_145 = arith.constant 0 : index
    %c0_146 = arith.constant 0 : index
    %314 = vector.load %arg19[%c0_144, %c0_145, %c0_146] : memref<2x1x96xf32, #tpu.memory_space<vmem>>, vector<1x1x96xf32>
    %315 = vector.shape_cast %314 : vector<1x1x96xf32> to vector<1x96xf32>
    %c0_147 = arith.constant 0 : index
    %c0_148 = arith.constant 0 : index
    %c0_149 = arith.constant 0 : index
    %316 = vector.load %arg20[%c0_147, %c0_148, %c0_149] : memref<2x32x32xf32, #tpu.memory_space<vmem>>, vector<1x32x32xf32>
    %317 = vector.shape_cast %316 : vector<1x32x32xf32> to vector<32x32xf32>
    %c0_150 = arith.constant 0 : index
    %c0_151 = arith.constant 0 : index
    %c0_152 = arith.constant 0 : index
    %318 = vector.load %arg21[%c0_150, %c0_151, %c0_152] : memref<2x1x32xf32, #tpu.memory_space<vmem>>, vector<1x1x32xf32>
    %319 = vector.shape_cast %318 : vector<1x1x32xf32> to vector<1x32xf32>
    %cst_153 = arith.constant dense<0.000000e+00> : vector<7x96xf32>
    %320 = tpu.matmul %8, %313, %cst_153 {dimension_numbers = #tpu.dot_dimension_numbers<[1], [0], [0], [1], [0, 0, 1, 1], [], []>} : vector<7x32xf32>, vector<32x96xf32>, vector<7x96xf32> -> vector<7x96xf32>
    %321 = vector.broadcast %315 : vector<1x96xf32> to vector<7x96xf32>
    %322 = arith.addf %320, %321 : vector<7x96xf32>
    %323 = vector.extract_strided_slice %322 {offsets = [0, 0], sizes = [7, 32], strides = [1, 1]} : vector<7x96xf32> to vector<7x32xf32>
    %cst_154 = arith.constant 0.353553385 : f32
    %324 = vector.broadcast %cst_154 : f32 to vector<7x32xf32>
    %325 = arith.mulf %323, %324 : vector<7x32xf32>
    %326 = vector.extract_strided_slice %322 {offsets = [0, 32], sizes = [7, 32], strides = [1, 1]} : vector<7x96xf32> to vector<7x32xf32>
    %327 = vector.extract_strided_slice %322 {offsets = [0, 64], sizes = [7, 32], strides = [1, 1]} : vector<7x96xf32> to vector<7x32xf32>
    %328 = vector.extract_strided_slice %325 {offsets = [0, 0], sizes = [7, 8], strides = [1, 1]} : vector<7x32xf32> to vector<7x8xf32>
    %329 = vector.extract_strided_slice %326 {offsets = [0, 0], sizes = [7, 8], strides = [1, 1]} : vector<7x32xf32> to vector<7x8xf32>
    %330 = vector.extract_strided_slice %327 {offsets = [0, 0], sizes = [7, 8], strides = [1, 1]} : vector<7x32xf32> to vector<7x8xf32>
    %cst_155 = arith.constant dense<0.000000e+00> : vector<7x7xf32>
    %331 = tpu.matmul %328, %329, %cst_155 {dimension_numbers = #tpu.dot_dimension_numbers<[1], [1], [0], [0], [0, 0, 1, 0], [], []>} : vector<7x8xf32>, vector<7x8xf32>, vector<7x7xf32> -> vector<7x7xf32>
    %cst_156 = arith.constant -1.000000e+30 : f32
    %332 = vector.broadcast %cst_156 : f32 to vector<7x7xf32>
    %333 = arith.select %311, %331, %332 : vector<7x7xi1>, vector<7x7xf32>
    %cst_157 = arith.constant dense<0xFF800000> : vector<7xf32>
    %334 = vector.multi_reduction <maximumf>, %333, %cst_157 [1] : vector<7x7xf32> to vector<7xf32>
    %335 = vector.shape_cast %334 : vector<7xf32> to vector<7x1xf32>
    %336 = vector.broadcast %335 : vector<7x1xf32> to vector<7x7xf32>
    %337 = arith.subf %333, %336 : vector<7x7xf32>
    %338 = math.exp %337 : vector<7x7xf32>
    %cst_158 = arith.constant dense<0.000000e+00> : vector<7xf32>
    %339 = vector.multi_reduction <add>, %338, %cst_158 [1] : vector<7x7xf32> to vector<7xf32>
    %340 = vector.shape_cast %339 : vector<7xf32> to vector<7x1xf32>
    %341 = tpu.reciprocal %340 {approx = true} : vector<7x1xf32> -> vector<7x1xf32>
    %342 = vector.broadcast %341 : vector<7x1xf32> to vector<7x7xf32>
    %343 = arith.mulf %338, %342 : vector<7x7xf32>
    %cst_159 = arith.constant dense<0.000000e+00> : vector<7x8xf32>
    %344 = tpu.matmul %343, %330, %cst_159 {dimension_numbers = #tpu.dot_dimension_numbers<[1], [0], [0], [1], [0, 0, 1, 1], [], []>} : vector<7x7xf32>, vector<7x8xf32>, vector<7x8xf32> -> vector<7x8xf32>
    %345 = vector.extract_strided_slice %325 {offsets = [0, 8], sizes = [7, 8], strides = [1, 1]} : vector<7x32xf32> to vector<7x8xf32>
    %346 = vector.extract_strided_slice %326 {offsets = [0, 8], sizes = [7, 8], strides = [1, 1]} : vector<7x32xf32> to vector<7x8xf32>
    %347 = vector.extract_strided_slice %327 {offsets = [0, 8], sizes = [7, 8], strides = [1, 1]} : vector<7x32xf32> to vector<7x8xf32>
    %cst_160 = arith.constant dense<0.000000e+00> : vector<7x7xf32>
    %348 = tpu.matmul %345, %346, %cst_160 {dimension_numbers = #tpu.dot_dimension_numbers<[1], [1], [0], [0], [0, 0, 1, 0], [], []>} : vector<7x8xf32>, vector<7x8xf32>, vector<7x7xf32> -> vector<7x7xf32>
    %cst_161 = arith.constant -1.000000e+30 : f32
    %349 = vector.broadcast %cst_161 : f32 to vector<7x7xf32>
    %350 = arith.select %311, %348, %349 : vector<7x7xi1>, vector<7x7xf32>
    %cst_162 = arith.constant dense<0xFF800000> : vector<7xf32>
    %351 = vector.multi_reduction <maximumf>, %350, %cst_162 [1] : vector<7x7xf32> to vector<7xf32>
    %352 = vector.shape_cast %351 : vector<7xf32> to vector<7x1xf32>
    %353 = vector.broadcast %352 : vector<7x1xf32> to vector<7x7xf32>
    %354 = arith.subf %350, %353 : vector<7x7xf32>
    %355 = math.exp %354 : vector<7x7xf32>
    %cst_163 = arith.constant dense<0.000000e+00> : vector<7xf32>
    %356 = vector.multi_reduction <add>, %355, %cst_163 [1] : vector<7x7xf32> to vector<7xf32>
    %357 = vector.shape_cast %356 : vector<7xf32> to vector<7x1xf32>
    %358 = tpu.reciprocal %357 {approx = true} : vector<7x1xf32> -> vector<7x1xf32>
    %359 = vector.broadcast %358 : vector<7x1xf32> to vector<7x7xf32>
    %360 = arith.mulf %355, %359 : vector<7x7xf32>
    %cst_164 = arith.constant dense<0.000000e+00> : vector<7x8xf32>
    %361 = tpu.matmul %360, %347, %cst_164 {dimension_numbers = #tpu.dot_dimension_numbers<[1], [0], [0], [1], [0, 0, 1, 1], [], []>} : vector<7x7xf32>, vector<7x8xf32>, vector<7x8xf32> -> vector<7x8xf32>
    %362 = vector.extract_strided_slice %325 {offsets = [0, 16], sizes = [7, 8], strides = [1, 1]} : vector<7x32xf32> to vector<7x8xf32>
    %363 = vector.extract_strided_slice %326 {offsets = [0, 16], sizes = [7, 8], strides = [1, 1]} : vector<7x32xf32> to vector<7x8xf32>
    %364 = vector.extract_strided_slice %327 {offsets = [0, 16], sizes = [7, 8], strides = [1, 1]} : vector<7x32xf32> to vector<7x8xf32>
    %cst_165 = arith.constant dense<0.000000e+00> : vector<7x7xf32>
    %365 = tpu.matmul %362, %363, %cst_165 {dimension_numbers = #tpu.dot_dimension_numbers<[1], [1], [0], [0], [0, 0, 1, 0], [], []>} : vector<7x8xf32>, vector<7x8xf32>, vector<7x7xf32> -> vector<7x7xf32>
    %cst_166 = arith.constant -1.000000e+30 : f32
    %366 = vector.broadcast %cst_166 : f32 to vector<7x7xf32>
    %367 = arith.select %311, %365, %366 : vector<7x7xi1>, vector<7x7xf32>
    %cst_167 = arith.constant dense<0xFF800000> : vector<7xf32>
    %368 = vector.multi_reduction <maximumf>, %367, %cst_167 [1] : vector<7x7xf32> to vector<7xf32>
    %369 = vector.shape_cast %368 : vector<7xf32> to vector<7x1xf32>
    %370 = vector.broadcast %369 : vector<7x1xf32> to vector<7x7xf32>
    %371 = arith.subf %367, %370 : vector<7x7xf32>
    %372 = math.exp %371 : vector<7x7xf32>
    %cst_168 = arith.constant dense<0.000000e+00> : vector<7xf32>
    %373 = vector.multi_reduction <add>, %372, %cst_168 [1] : vector<7x7xf32> to vector<7xf32>
    %374 = vector.shape_cast %373 : vector<7xf32> to vector<7x1xf32>
    %375 = tpu.reciprocal %374 {approx = true} : vector<7x1xf32> -> vector<7x1xf32>
    %376 = vector.broadcast %375 : vector<7x1xf32> to vector<7x7xf32>
    %377 = arith.mulf %372, %376 : vector<7x7xf32>
    %cst_169 = arith.constant dense<0.000000e+00> : vector<7x8xf32>
    %378 = tpu.matmul %377, %364, %cst_169 {dimension_numbers = #tpu.dot_dimension_numbers<[1], [0], [0], [1], [0, 0, 1, 1], [], []>} : vector<7x7xf32>, vector<7x8xf32>, vector<7x8xf32> -> vector<7x8xf32>
    %379 = vector.extract_strided_slice %325 {offsets = [0, 24], sizes = [7, 8], strides = [1, 1]} : vector<7x32xf32> to vector<7x8xf32>
    %380 = vector.extract_strided_slice %326 {offsets = [0, 24], sizes = [7, 8], strides = [1, 1]} : vector<7x32xf32> to vector<7x8xf32>
    %381 = vector.extract_strided_slice %327 {offsets = [0, 24], sizes = [7, 8], strides = [1, 1]} : vector<7x32xf32> to vector<7x8xf32>
    %cst_170 = arith.constant dense<0.000000e+00> : vector<7x7xf32>
    %382 = tpu.matmul %379, %380, %cst_170 {dimension_numbers = #tpu.dot_dimension_numbers<[1], [1], [0], [0], [0, 0, 1, 0], [], []>} : vector<7x8xf32>, vector<7x8xf32>, vector<7x7xf32> -> vector<7x7xf32>
    %cst_171 = arith.constant -1.000000e+30 : f32
    %383 = vector.broadcast %cst_171 : f32 to vector<7x7xf32>
    %384 = arith.select %311, %382, %383 : vector<7x7xi1>, vector<7x7xf32>
    %cst_172 = arith.constant dense<0xFF800000> : vector<7xf32>
    %385 = vector.multi_reduction <maximumf>, %384, %cst_172 [1] : vector<7x7xf32> to vector<7xf32>
    %386 = vector.shape_cast %385 : vector<7xf32> to vector<7x1xf32>
    %387 = vector.broadcast %386 : vector<7x1xf32> to vector<7x7xf32>
    %388 = arith.subf %384, %387 : vector<7x7xf32>
    %389 = math.exp %388 : vector<7x7xf32>
    %cst_173 = arith.constant dense<0.000000e+00> : vector<7xf32>
    %390 = vector.multi_reduction <add>, %389, %cst_173 [1] : vector<7x7xf32> to vector<7xf32>
    %391 = vector.shape_cast %390 : vector<7xf32> to vector<7x1xf32>
    %392 = tpu.reciprocal %391 {approx = true} : vector<7x1xf32> -> vector<7x1xf32>
    %393 = vector.broadcast %392 : vector<7x1xf32> to vector<7x7xf32>
    %394 = arith.mulf %389, %393 : vector<7x7xf32>
    %cst_174 = arith.constant dense<0.000000e+00> : vector<7x8xf32>
    %395 = tpu.matmul %394, %381, %cst_174 {dimension_numbers = #tpu.dot_dimension_numbers<[1], [0], [0], [1], [0, 0, 1, 1], [], []>} : vector<7x7xf32>, vector<7x8xf32>, vector<7x8xf32> -> vector<7x8xf32>
    %396 = tpu.concatenate %344, %361, %378, %395 in 1 : vector<7x8xf32>, vector<7x8xf32>, vector<7x8xf32>, vector<7x8xf32> -> vector<7x32xf32>
    %cst_175 = arith.constant dense<0.000000e+00> : vector<7x32xf32>
    %397 = tpu.matmul %396, %317, %cst_175 {dimension_numbers = #tpu.dot_dimension_numbers<[1], [0], [0], [1], [0, 0, 1, 1], [], []>} : vector<7x32xf32>, vector<32x32xf32>, vector<7x32xf32> -> vector<7x32xf32>
    %398 = vector.broadcast %319 : vector<1x32xf32> to vector<7x32xf32>
    %399 = arith.addf %397, %398 : vector<7x32xf32>
    %400 = arith.addf %8, %399 : vector<7x32xf32>
    %c0_176 = arith.constant 0 : index
    %c0_177 = arith.constant 0 : index
    %c0_178 = arith.constant 0 : index
    %401 = vector.load %arg22[%c0_176, %c0_177, %c0_178] : memref<2x1x32xf32, #tpu.memory_space<vmem>>, vector<1x1x32xf32>
    %402 = vector.shape_cast %401 : vector<1x1x32xf32> to vector<1x32xf32>
    %c0_179 = arith.constant 0 : index
    %c0_180 = arith.constant 0 : index
    %c0_181 = arith.constant 0 : index
    %403 = vector.load %arg23[%c0_179, %c0_180, %c0_181] : memref<2x1x32xf32, #tpu.memory_space<vmem>>, vector<1x1x32xf32>
    %404 = vector.shape_cast %403 : vector<1x1x32xf32> to vector<1x32xf32>
    %cst_182 = arith.constant dense<0.000000e+00> : vector<7xf32>
    %405 = vector.multi_reduction <add>, %400, %cst_182 [1] : vector<7x32xf32> to vector<7xf32>
    %406 = vector.shape_cast %405 : vector<7xf32> to vector<7x1xf32>
    %cst_183 = arith.constant 3.200000e+01 : f32
    %407 = vector.broadcast %cst_183 : f32 to vector<7x1xf32>
    %408 = arith.divf %406, %407 : vector<7x1xf32>
    %409 = vector.broadcast %408 : vector<7x1xf32> to vector<7x32xf32>
    %410 = arith.subf %400, %409 : vector<7x32xf32>
    %411 = arith.mulf %410, %410 : vector<7x32xf32>
    %cst_184 = arith.constant dense<0.000000e+00> : vector<7xf32>
    %412 = vector.multi_reduction <add>, %411, %cst_184 [1] : vector<7x32xf32> to vector<7xf32>
    %413 = vector.shape_cast %412 : vector<7xf32> to vector<7x1xf32>
    %cst_185 = arith.constant 3.200000e+01 : f32
    %414 = vector.broadcast %cst_185 : f32 to vector<7x1xf32>
    %415 = arith.divf %413, %414 : vector<7x1xf32>
    %416 = vector.broadcast %408 : vector<7x1xf32> to vector<7x32xf32>
    %417 = arith.subf %400, %416 : vector<7x32xf32>
    %cst_186 = arith.constant 9.99999974E-6 : f32
    %418 = vector.broadcast %cst_186 : f32 to vector<7x1xf32>
    %419 = arith.addf %415, %418 : vector<7x1xf32>
    %420 = math.rsqrt %419 : vector<7x1xf32>
    %421 = vector.broadcast %420 : vector<7x1xf32> to vector<7x32xf32>
    %422 = arith.mulf %417, %421 : vector<7x32xf32>
    %423 = vector.broadcast %402 : vector<1x32xf32> to vector<7x32xf32>
    %424 = arith.mulf %422, %423 : vector<7x32xf32>
    %425 = vector.broadcast %404 : vector<1x32xf32> to vector<7x32xf32>
    %426 = arith.addf %424, %425 : vector<7x32xf32>
    %c0_187 = arith.constant 0 : index
    %c0_188 = arith.constant 0 : index
    %c0_189 = arith.constant 0 : index
    %427 = vector.load %arg24[%c0_187, %c0_188, %c0_189] : memref<2x32x96xf32, #tpu.memory_space<vmem>>, vector<1x32x96xf32>
    %428 = vector.shape_cast %427 : vector<1x32x96xf32> to vector<32x96xf32>
    %c0_190 = arith.constant 0 : index
    %c0_191 = arith.constant 0 : index
    %c0_192 = arith.constant 0 : index
    %429 = vector.load %arg25[%c0_190, %c0_191, %c0_192] : memref<2x1x96xf32, #tpu.memory_space<vmem>>, vector<1x1x96xf32>
    %430 = vector.shape_cast %429 : vector<1x1x96xf32> to vector<1x96xf32>
    %c0_193 = arith.constant 0 : index
    %c0_194 = arith.constant 0 : index
    %c0_195 = arith.constant 0 : index
    %431 = vector.load %arg26[%c0_193, %c0_194, %c0_195] : memref<2x32x32xf32, #tpu.memory_space<vmem>>, vector<1x32x32xf32>
    %432 = vector.shape_cast %431 : vector<1x32x32xf32> to vector<32x32xf32>
    %c0_196 = arith.constant 0 : index
    %c0_197 = arith.constant 0 : index
    %c0_198 = arith.constant 0 : index
    %433 = vector.load %arg27[%c0_196, %c0_197, %c0_198] : memref<2x1x32xf32, #tpu.memory_space<vmem>>, vector<1x1x32xf32>
    %434 = vector.shape_cast %433 : vector<1x1x32xf32> to vector<1x32xf32>
    %435 = vector.extract_strided_slice %428 {offsets = [0, 0], sizes = [32, 32], strides = [1, 1]} : vector<32x96xf32> to vector<32x32xf32>
    %cst_199 = arith.constant dense<0.000000e+00> : vector<7x32xf32>
    %436 = tpu.matmul %426, %435, %cst_199 {dimension_numbers = #tpu.dot_dimension_numbers<[1], [0], [0], [1], [0, 0, 1, 1], [], []>} : vector<7x32xf32>, vector<32x32xf32>, vector<7x32xf32> -> vector<7x32xf32>
    %437 = vector.extract_strided_slice %430 {offsets = [0, 0], sizes = [1, 32], strides = [1, 1]} : vector<1x96xf32> to vector<1x32xf32>
    %438 = vector.broadcast %437 : vector<1x32xf32> to vector<7x32xf32>
    %439 = arith.addf %436, %438 : vector<7x32xf32>
    %cst_200 = arith.constant 0.353553385 : f32
    %440 = vector.broadcast %cst_200 : f32 to vector<7x32xf32>
    %441 = arith.mulf %439, %440 : vector<7x32xf32>
    %442 = vector.extract_strided_slice %428 {offsets = [0, 32], sizes = [32, 64], strides = [1, 1]} : vector<32x96xf32> to vector<32x64xf32>
    %cst_201 = arith.constant dense<0.000000e+00> : vector<8x64xf32>
    %443 = tpu.matmul %308, %442, %cst_201 {dimension_numbers = #tpu.dot_dimension_numbers<[1], [0], [0], [1], [0, 0, 1, 1], [], []>} : vector<8x32xf32>, vector<32x64xf32>, vector<8x64xf32> -> vector<8x64xf32>
    %444 = vector.extract_strided_slice %430 {offsets = [0, 32], sizes = [1, 64], strides = [1, 1]} : vector<1x96xf32> to vector<1x64xf32>
    %445 = vector.broadcast %444 : vector<1x64xf32> to vector<8x64xf32>
    %446 = arith.addf %443, %445 : vector<8x64xf32>
    %447 = vector.extract_strided_slice %446 {offsets = [0, 0], sizes = [8, 32], strides = [1, 1]} : vector<8x64xf32> to vector<8x32xf32>
    %448 = vector.extract_strided_slice %446 {offsets = [0, 32], sizes = [8, 32], strides = [1, 1]} : vector<8x64xf32> to vector<8x32xf32>
    %449 = vector.extract_strided_slice %441 {offsets = [0, 0], sizes = [7, 8], strides = [1, 1]} : vector<7x32xf32> to vector<7x8xf32>
    %450 = vector.extract_strided_slice %447 {offsets = [0, 0], sizes = [8, 8], strides = [1, 1]} : vector<8x32xf32> to vector<8x8xf32>
    %451 = vector.extract_strided_slice %448 {offsets = [0, 0], sizes = [8, 8], strides = [1, 1]} : vector<8x32xf32> to vector<8x8xf32>
    %cst_202 = arith.constant dense<0.000000e+00> : vector<7x8xf32>
    %452 = tpu.matmul %449, %450, %cst_202 {dimension_numbers = #tpu.dot_dimension_numbers<[1], [1], [0], [0], [0, 0, 1, 0], [], []>} : vector<7x8xf32>, vector<8x8xf32>, vector<7x8xf32> -> vector<7x8xf32>
    %cst_203 = arith.constant dense<0xFF800000> : vector<7xf32>
    %453 = vector.multi_reduction <maximumf>, %452, %cst_203 [1] : vector<7x8xf32> to vector<7xf32>
    %454 = vector.shape_cast %453 : vector<7xf32> to vector<7x1xf32>
    %455 = vector.broadcast %454 : vector<7x1xf32> to vector<7x8xf32>
    %456 = arith.subf %452, %455 : vector<7x8xf32>
    %457 = math.exp %456 : vector<7x8xf32>
    %cst_204 = arith.constant dense<0.000000e+00> : vector<7xf32>
    %458 = vector.multi_reduction <add>, %457, %cst_204 [1] : vector<7x8xf32> to vector<7xf32>
    %459 = vector.shape_cast %458 : vector<7xf32> to vector<7x1xf32>
    %460 = tpu.reciprocal %459 {approx = true} : vector<7x1xf32> -> vector<7x1xf32>
    %461 = vector.broadcast %460 : vector<7x1xf32> to vector<7x8xf32>
    %462 = arith.mulf %457, %461 : vector<7x8xf32>
    %cst_205 = arith.constant dense<0.000000e+00> : vector<7x8xf32>
    %463 = tpu.matmul %462, %451, %cst_205 {dimension_numbers = #tpu.dot_dimension_numbers<[1], [0], [0], [1], [0, 0, 1, 1], [], []>} : vector<7x8xf32>, vector<8x8xf32>, vector<7x8xf32> -> vector<7x8xf32>
    %464 = vector.extract_strided_slice %441 {offsets = [0, 8], sizes = [7, 8], strides = [1, 1]} : vector<7x32xf32> to vector<7x8xf32>
    %465 = vector.extract_strided_slice %447 {offsets = [0, 8], sizes = [8, 8], strides = [1, 1]} : vector<8x32xf32> to vector<8x8xf32>
    %466 = vector.extract_strided_slice %448 {offsets = [0, 8], sizes = [8, 8], strides = [1, 1]} : vector<8x32xf32> to vector<8x8xf32>
    %cst_206 = arith.constant dense<0.000000e+00> : vector<7x8xf32>
    %467 = tpu.matmul %464, %465, %cst_206 {dimension_numbers = #tpu.dot_dimension_numbers<[1], [1], [0], [0], [0, 0, 1, 0], [], []>} : vector<7x8xf32>, vector<8x8xf32>, vector<7x8xf32> -> vector<7x8xf32>
    %cst_207 = arith.constant dense<0xFF800000> : vector<7xf32>
    %468 = vector.multi_reduction <maximumf>, %467, %cst_207 [1] : vector<7x8xf32> to vector<7xf32>
    %469 = vector.shape_cast %468 : vector<7xf32> to vector<7x1xf32>
    %470 = vector.broadcast %469 : vector<7x1xf32> to vector<7x8xf32>
    %471 = arith.subf %467, %470 : vector<7x8xf32>
    %472 = math.exp %471 : vector<7x8xf32>
    %cst_208 = arith.constant dense<0.000000e+00> : vector<7xf32>
    %473 = vector.multi_reduction <add>, %472, %cst_208 [1] : vector<7x8xf32> to vector<7xf32>
    %474 = vector.shape_cast %473 : vector<7xf32> to vector<7x1xf32>
    %475 = tpu.reciprocal %474 {approx = true} : vector<7x1xf32> -> vector<7x1xf32>
    %476 = vector.broadcast %475 : vector<7x1xf32> to vector<7x8xf32>
    %477 = arith.mulf %472, %476 : vector<7x8xf32>
    %cst_209 = arith.constant dense<0.000000e+00> : vector<7x8xf32>
    %478 = tpu.matmul %477, %466, %cst_209 {dimension_numbers = #tpu.dot_dimension_numbers<[1], [0], [0], [1], [0, 0, 1, 1], [], []>} : vector<7x8xf32>, vector<8x8xf32>, vector<7x8xf32> -> vector<7x8xf32>
    %479 = vector.extract_strided_slice %441 {offsets = [0, 16], sizes = [7, 8], strides = [1, 1]} : vector<7x32xf32> to vector<7x8xf32>
    %480 = vector.extract_strided_slice %447 {offsets = [0, 16], sizes = [8, 8], strides = [1, 1]} : vector<8x32xf32> to vector<8x8xf32>
    %481 = vector.extract_strided_slice %448 {offsets = [0, 16], sizes = [8, 8], strides = [1, 1]} : vector<8x32xf32> to vector<8x8xf32>
    %cst_210 = arith.constant dense<0.000000e+00> : vector<7x8xf32>
    %482 = tpu.matmul %479, %480, %cst_210 {dimension_numbers = #tpu.dot_dimension_numbers<[1], [1], [0], [0], [0, 0, 1, 0], [], []>} : vector<7x8xf32>, vector<8x8xf32>, vector<7x8xf32> -> vector<7x8xf32>
    %cst_211 = arith.constant dense<0xFF800000> : vector<7xf32>
    %483 = vector.multi_reduction <maximumf>, %482, %cst_211 [1] : vector<7x8xf32> to vector<7xf32>
    %484 = vector.shape_cast %483 : vector<7xf32> to vector<7x1xf32>
    %485 = vector.broadcast %484 : vector<7x1xf32> to vector<7x8xf32>
    %486 = arith.subf %482, %485 : vector<7x8xf32>
    %487 = math.exp %486 : vector<7x8xf32>
    %cst_212 = arith.constant dense<0.000000e+00> : vector<7xf32>
    %488 = vector.multi_reduction <add>, %487, %cst_212 [1] : vector<7x8xf32> to vector<7xf32>
    %489 = vector.shape_cast %488 : vector<7xf32> to vector<7x1xf32>
    %490 = tpu.reciprocal %489 {approx = true} : vector<7x1xf32> -> vector<7x1xf32>
    %491 = vector.broadcast %490 : vector<7x1xf32> to vector<7x8xf32>
    %492 = arith.mulf %487, %491 : vector<7x8xf32>
    %cst_213 = arith.constant dense<0.000000e+00> : vector<7x8xf32>
    %493 = tpu.matmul %492, %481, %cst_213 {dimension_numbers = #tpu.dot_dimension_numbers<[1], [0], [0], [1], [0, 0, 1, 1], [], []>} : vector<7x8xf32>, vector<8x8xf32>, vector<7x8xf32> -> vector<7x8xf32>
    %494 = vector.extract_strided_slice %441 {offsets = [0, 24], sizes = [7, 8], strides = [1, 1]} : vector<7x32xf32> to vector<7x8xf32>
    %495 = vector.extract_strided_slice %447 {offsets = [0, 24], sizes = [8, 8], strides = [1, 1]} : vector<8x32xf32> to vector<8x8xf32>
    %496 = vector.extract_strided_slice %448 {offsets = [0, 24], sizes = [8, 8], strides = [1, 1]} : vector<8x32xf32> to vector<8x8xf32>
    %cst_214 = arith.constant dense<0.000000e+00> : vector<7x8xf32>
    %497 = tpu.matmul %494, %495, %cst_214 {dimension_numbers = #tpu.dot_dimension_numbers<[1], [1], [0], [0], [0, 0, 1, 0], [], []>} : vector<7x8xf32>, vector<8x8xf32>, vector<7x8xf32> -> vector<7x8xf32>
    %cst_215 = arith.constant dense<0xFF800000> : vector<7xf32>
    %498 = vector.multi_reduction <maximumf>, %497, %cst_215 [1] : vector<7x8xf32> to vector<7xf32>
    %499 = vector.shape_cast %498 : vector<7xf32> to vector<7x1xf32>
    %500 = vector.broadcast %499 : vector<7x1xf32> to vector<7x8xf32>
    %501 = arith.subf %497, %500 : vector<7x8xf32>
    %502 = math.exp %501 : vector<7x8xf32>
    %cst_216 = arith.constant dense<0.000000e+00> : vector<7xf32>
    %503 = vector.multi_reduction <add>, %502, %cst_216 [1] : vector<7x8xf32> to vector<7xf32>
    %504 = vector.shape_cast %503 : vector<7xf32> to vector<7x1xf32>
    %505 = tpu.reciprocal %504 {approx = true} : vector<7x1xf32> -> vector<7x1xf32>
    %506 = vector.broadcast %505 : vector<7x1xf32> to vector<7x8xf32>
    %507 = arith.mulf %502, %506 : vector<7x8xf32>
    %cst_217 = arith.constant dense<0.000000e+00> : vector<7x8xf32>
    %508 = tpu.matmul %507, %496, %cst_217 {dimension_numbers = #tpu.dot_dimension_numbers<[1], [0], [0], [1], [0, 0, 1, 1], [], []>} : vector<7x8xf32>, vector<8x8xf32>, vector<7x8xf32> -> vector<7x8xf32>
    %509 = tpu.concatenate %463, %478, %493, %508 in 1 : vector<7x8xf32>, vector<7x8xf32>, vector<7x8xf32>, vector<7x8xf32> -> vector<7x32xf32>
    %cst_218 = arith.constant dense<0.000000e+00> : vector<7x32xf32>
    %510 = tpu.matmul %509, %432, %cst_218 {dimension_numbers = #tpu.dot_dimension_numbers<[1], [0], [0], [1], [0, 0, 1, 1], [], []>} : vector<7x32xf32>, vector<32x32xf32>, vector<7x32xf32> -> vector<7x32xf32>
    %511 = vector.broadcast %434 : vector<1x32xf32> to vector<7x32xf32>
    %512 = arith.addf %510, %511 : vector<7x32xf32>
    %513 = arith.addf %426, %512 : vector<7x32xf32>
    %c0_219 = arith.constant 0 : index
    %c0_220 = arith.constant 0 : index
    %c0_221 = arith.constant 0 : index
    %514 = vector.load %arg28[%c0_219, %c0_220, %c0_221] : memref<2x1x32xf32, #tpu.memory_space<vmem>>, vector<1x1x32xf32>
    %515 = vector.shape_cast %514 : vector<1x1x32xf32> to vector<1x32xf32>
    %c0_222 = arith.constant 0 : index
    %c0_223 = arith.constant 0 : index
    %c0_224 = arith.constant 0 : index
    %516 = vector.load %arg29[%c0_222, %c0_223, %c0_224] : memref<2x1x32xf32, #tpu.memory_space<vmem>>, vector<1x1x32xf32>
    %517 = vector.shape_cast %516 : vector<1x1x32xf32> to vector<1x32xf32>
    %cst_225 = arith.constant dense<0.000000e+00> : vector<7xf32>
    %518 = vector.multi_reduction <add>, %513, %cst_225 [1] : vector<7x32xf32> to vector<7xf32>
    %519 = vector.shape_cast %518 : vector<7xf32> to vector<7x1xf32>
    %cst_226 = arith.constant 3.200000e+01 : f32
    %520 = vector.broadcast %cst_226 : f32 to vector<7x1xf32>
    %521 = arith.divf %519, %520 : vector<7x1xf32>
    %522 = vector.broadcast %521 : vector<7x1xf32> to vector<7x32xf32>
    %523 = arith.subf %513, %522 : vector<7x32xf32>
    %524 = arith.mulf %523, %523 : vector<7x32xf32>
    %cst_227 = arith.constant dense<0.000000e+00> : vector<7xf32>
    %525 = vector.multi_reduction <add>, %524, %cst_227 [1] : vector<7x32xf32> to vector<7xf32>
    %526 = vector.shape_cast %525 : vector<7xf32> to vector<7x1xf32>
    %cst_228 = arith.constant 3.200000e+01 : f32
    %527 = vector.broadcast %cst_228 : f32 to vector<7x1xf32>
    %528 = arith.divf %526, %527 : vector<7x1xf32>
    %529 = vector.broadcast %521 : vector<7x1xf32> to vector<7x32xf32>
    %530 = arith.subf %513, %529 : vector<7x32xf32>
    %cst_229 = arith.constant 9.99999974E-6 : f32
    %531 = vector.broadcast %cst_229 : f32 to vector<7x1xf32>
    %532 = arith.addf %528, %531 : vector<7x1xf32>
    %533 = math.rsqrt %532 : vector<7x1xf32>
    %534 = vector.broadcast %533 : vector<7x1xf32> to vector<7x32xf32>
    %535 = arith.mulf %530, %534 : vector<7x32xf32>
    %536 = vector.broadcast %515 : vector<1x32xf32> to vector<7x32xf32>
    %537 = arith.mulf %535, %536 : vector<7x32xf32>
    %538 = vector.broadcast %517 : vector<1x32xf32> to vector<7x32xf32>
    %539 = arith.addf %537, %538 : vector<7x32xf32>
    %c0_230 = arith.constant 0 : index
    %c0_231 = arith.constant 0 : index
    %c0_232 = arith.constant 0 : index
    %540 = vector.load %arg30[%c0_230, %c0_231, %c0_232] : memref<2x32x64xf32, #tpu.memory_space<vmem>>, vector<1x32x64xf32>
    %541 = vector.shape_cast %540 : vector<1x32x64xf32> to vector<32x64xf32>
    %cst_233 = arith.constant dense<0.000000e+00> : vector<7x64xf32>
    %542 = tpu.matmul %539, %541, %cst_233 {dimension_numbers = #tpu.dot_dimension_numbers<[1], [0], [0], [1], [0, 0, 1, 1], [], []>} : vector<7x32xf32>, vector<32x64xf32>, vector<7x64xf32> -> vector<7x64xf32>
    %c0_234 = arith.constant 0 : index
    %c0_235 = arith.constant 0 : index
    %c0_236 = arith.constant 0 : index
    %543 = vector.load %arg31[%c0_234, %c0_235, %c0_236] : memref<2x1x64xf32, #tpu.memory_space<vmem>>, vector<1x1x64xf32>
    %544 = vector.shape_cast %543 : vector<1x1x64xf32> to vector<1x64xf32>
    %545 = vector.broadcast %544 : vector<1x64xf32> to vector<7x64xf32>
    %546 = arith.addf %542, %545 : vector<7x64xf32>
    %cst_237 = arith.constant 0.000000e+00 : f32
    %547 = vector.broadcast %cst_237 : f32 to vector<7x64xf32>
    %548 = arith.maximumf %546, %547 : vector<7x64xf32>
    %c0_238 = arith.constant 0 : index
    %c0_239 = arith.constant 0 : index
    %c0_240 = arith.constant 0 : index
    %549 = vector.load %arg32[%c0_238, %c0_239, %c0_240] : memref<2x64x32xf32, #tpu.memory_space<vmem>>, vector<1x64x32xf32>
    %550 = vector.shape_cast %549 : vector<1x64x32xf32> to vector<64x32xf32>
    %cst_241 = arith.constant dense<0.000000e+00> : vector<7x32xf32>
    %551 = tpu.matmul %548, %550, %cst_241 {dimension_numbers = #tpu.dot_dimension_numbers<[1], [0], [0], [1], [0, 0, 1, 1], [], []>} : vector<7x64xf32>, vector<64x32xf32>, vector<7x32xf32> -> vector<7x32xf32>
    %c0_242 = arith.constant 0 : index
    %c0_243 = arith.constant 0 : index
    %c0_244 = arith.constant 0 : index
    %552 = vector.load %arg33[%c0_242, %c0_243, %c0_244] : memref<2x1x32xf32, #tpu.memory_space<vmem>>, vector<1x1x32xf32>
    %553 = vector.shape_cast %552 : vector<1x1x32xf32> to vector<1x32xf32>
    %554 = vector.broadcast %553 : vector<1x32xf32> to vector<7x32xf32>
    %555 = arith.addf %551, %554 : vector<7x32xf32>
    %556 = arith.addf %539, %555 : vector<7x32xf32>
    %c0_245 = arith.constant 0 : index
    %c0_246 = arith.constant 0 : index
    %c0_247 = arith.constant 0 : index
    %557 = vector.load %arg34[%c0_245, %c0_246, %c0_247] : memref<2x1x32xf32, #tpu.memory_space<vmem>>, vector<1x1x32xf32>
    %558 = vector.shape_cast %557 : vector<1x1x32xf32> to vector<1x32xf32>
    %c0_248 = arith.constant 0 : index
    %c0_249 = arith.constant 0 : index
    %c0_250 = arith.constant 0 : index
    %559 = vector.load %arg35[%c0_248, %c0_249, %c0_250] : memref<2x1x32xf32, #tpu.memory_space<vmem>>, vector<1x1x32xf32>
    %560 = vector.shape_cast %559 : vector<1x1x32xf32> to vector<1x32xf32>
    %cst_251 = arith.constant dense<0.000000e+00> : vector<7xf32>
    %561 = vector.multi_reduction <add>, %556, %cst_251 [1] : vector<7x32xf32> to vector<7xf32>
    %562 = vector.shape_cast %561 : vector<7xf32> to vector<7x1xf32>
    %cst_252 = arith.constant 3.200000e+01 : f32
    %563 = vector.broadcast %cst_252 : f32 to vector<7x1xf32>
    %564 = arith.divf %562, %563 : vector<7x1xf32>
    %565 = vector.broadcast %564 : vector<7x1xf32> to vector<7x32xf32>
    %566 = arith.subf %556, %565 : vector<7x32xf32>
    %567 = arith.mulf %566, %566 : vector<7x32xf32>
    %cst_253 = arith.constant dense<0.000000e+00> : vector<7xf32>
    %568 = vector.multi_reduction <add>, %567, %cst_253 [1] : vector<7x32xf32> to vector<7xf32>
    %569 = vector.shape_cast %568 : vector<7xf32> to vector<7x1xf32>
    %cst_254 = arith.constant 3.200000e+01 : f32
    %570 = vector.broadcast %cst_254 : f32 to vector<7x1xf32>
    %571 = arith.divf %569, %570 : vector<7x1xf32>
    %572 = vector.broadcast %564 : vector<7x1xf32> to vector<7x32xf32>
    %573 = arith.subf %556, %572 : vector<7x32xf32>
    %cst_255 = arith.constant 9.99999974E-6 : f32
    %574 = vector.broadcast %cst_255 : f32 to vector<7x1xf32>
    %575 = arith.addf %571, %574 : vector<7x1xf32>
    %576 = math.rsqrt %575 : vector<7x1xf32>
    %577 = vector.broadcast %576 : vector<7x1xf32> to vector<7x32xf32>
    %578 = arith.mulf %573, %577 : vector<7x32xf32>
    %579 = vector.broadcast %558 : vector<1x32xf32> to vector<7x32xf32>
    %580 = arith.mulf %578, %579 : vector<7x32xf32>
    %581 = vector.broadcast %560 : vector<1x32xf32> to vector<7x32xf32>
    %582 = arith.addf %580, %581 : vector<7x32xf32>
    %c1_256 = arith.constant 1 : index
    %c0_257 = arith.constant 0 : index
    %c0_258 = arith.constant 0 : index
    %583 = vector.load %arg18[%c1_256, %c0_257, %c0_258] : memref<2x32x96xf32, #tpu.memory_space<vmem>>, vector<1x32x96xf32>
    %584 = vector.shape_cast %583 : vector<1x32x96xf32> to vector<32x96xf32>
    %c1_259 = arith.constant 1 : index
    %c0_260 = arith.constant 0 : index
    %c0_261 = arith.constant 0 : index
    %585 = vector.load %arg19[%c1_259, %c0_260, %c0_261] : memref<2x1x96xf32, #tpu.memory_space<vmem>>, vector<1x1x96xf32>
    %586 = vector.shape_cast %585 : vector<1x1x96xf32> to vector<1x96xf32>
    %c1_262 = arith.constant 1 : index
    %c0_263 = arith.constant 0 : index
    %c0_264 = arith.constant 0 : index
    %587 = vector.load %arg20[%c1_262, %c0_263, %c0_264] : memref<2x32x32xf32, #tpu.memory_space<vmem>>, vector<1x32x32xf32>
    %588 = vector.shape_cast %587 : vector<1x32x32xf32> to vector<32x32xf32>
    %c1_265 = arith.constant 1 : index
    %c0_266 = arith.constant 0 : index
    %c0_267 = arith.constant 0 : index
    %589 = vector.load %arg21[%c1_265, %c0_266, %c0_267] : memref<2x1x32xf32, #tpu.memory_space<vmem>>, vector<1x1x32xf32>
    %590 = vector.shape_cast %589 : vector<1x1x32xf32> to vector<1x32xf32>
    %cst_268 = arith.constant dense<0.000000e+00> : vector<7x96xf32>
    %591 = tpu.matmul %582, %584, %cst_268 {dimension_numbers = #tpu.dot_dimension_numbers<[1], [0], [0], [1], [0, 0, 1, 1], [], []>} : vector<7x32xf32>, vector<32x96xf32>, vector<7x96xf32> -> vector<7x96xf32>
    %592 = vector.broadcast %586 : vector<1x96xf32> to vector<7x96xf32>
    %593 = arith.addf %591, %592 : vector<7x96xf32>
    %594 = vector.extract_strided_slice %593 {offsets = [0, 0], sizes = [7, 32], strides = [1, 1]} : vector<7x96xf32> to vector<7x32xf32>
    %cst_269 = arith.constant 0.353553385 : f32
    %595 = vector.broadcast %cst_269 : f32 to vector<7x32xf32>
    %596 = arith.mulf %594, %595 : vector<7x32xf32>
    %597 = vector.extract_strided_slice %593 {offsets = [0, 32], sizes = [7, 32], strides = [1, 1]} : vector<7x96xf32> to vector<7x32xf32>
    %598 = vector.extract_strided_slice %593 {offsets = [0, 64], sizes = [7, 32], strides = [1, 1]} : vector<7x96xf32> to vector<7x32xf32>
    %599 = vector.extract_strided_slice %596 {offsets = [0, 0], sizes = [7, 8], strides = [1, 1]} : vector<7x32xf32> to vector<7x8xf32>
    %600 = vector.extract_strided_slice %597 {offsets = [0, 0], sizes = [7, 8], strides = [1, 1]} : vector<7x32xf32> to vector<7x8xf32>
    %601 = vector.extract_strided_slice %598 {offsets = [0, 0], sizes = [7, 8], strides = [1, 1]} : vector<7x32xf32> to vector<7x8xf32>
    %cst_270 = arith.constant dense<0.000000e+00> : vector<7x7xf32>
    %602 = tpu.matmul %599, %600, %cst_270 {dimension_numbers = #tpu.dot_dimension_numbers<[1], [1], [0], [0], [0, 0, 1, 0], [], []>} : vector<7x8xf32>, vector<7x8xf32>, vector<7x7xf32> -> vector<7x7xf32>
    %cst_271 = arith.constant -1.000000e+30 : f32
    %603 = vector.broadcast %cst_271 : f32 to vector<7x7xf32>
    %604 = arith.select %311, %602, %603 : vector<7x7xi1>, vector<7x7xf32>
    %cst_272 = arith.constant dense<0xFF800000> : vector<7xf32>
    %605 = vector.multi_reduction <maximumf>, %604, %cst_272 [1] : vector<7x7xf32> to vector<7xf32>
    %606 = vector.shape_cast %605 : vector<7xf32> to vector<7x1xf32>
    %607 = vector.broadcast %606 : vector<7x1xf32> to vector<7x7xf32>
    %608 = arith.subf %604, %607 : vector<7x7xf32>
    %609 = math.exp %608 : vector<7x7xf32>
    %cst_273 = arith.constant dense<0.000000e+00> : vector<7xf32>
    %610 = vector.multi_reduction <add>, %609, %cst_273 [1] : vector<7x7xf32> to vector<7xf32>
    %611 = vector.shape_cast %610 : vector<7xf32> to vector<7x1xf32>
    %612 = tpu.reciprocal %611 {approx = true} : vector<7x1xf32> -> vector<7x1xf32>
    %613 = vector.broadcast %612 : vector<7x1xf32> to vector<7x7xf32>
    %614 = arith.mulf %609, %613 : vector<7x7xf32>
    %cst_274 = arith.constant dense<0.000000e+00> : vector<7x8xf32>
    %615 = tpu.matmul %614, %601, %cst_274 {dimension_numbers = #tpu.dot_dimension_numbers<[1], [0], [0], [1], [0, 0, 1, 1], [], []>} : vector<7x7xf32>, vector<7x8xf32>, vector<7x8xf32> -> vector<7x8xf32>
    %616 = vector.extract_strided_slice %596 {offsets = [0, 8], sizes = [7, 8], strides = [1, 1]} : vector<7x32xf32> to vector<7x8xf32>
    %617 = vector.extract_strided_slice %597 {offsets = [0, 8], sizes = [7, 8], strides = [1, 1]} : vector<7x32xf32> to vector<7x8xf32>
    %618 = vector.extract_strided_slice %598 {offsets = [0, 8], sizes = [7, 8], strides = [1, 1]} : vector<7x32xf32> to vector<7x8xf32>
    %cst_275 = arith.constant dense<0.000000e+00> : vector<7x7xf32>
    %619 = tpu.matmul %616, %617, %cst_275 {dimension_numbers = #tpu.dot_dimension_numbers<[1], [1], [0], [0], [0, 0, 1, 0], [], []>} : vector<7x8xf32>, vector<7x8xf32>, vector<7x7xf32> -> vector<7x7xf32>
    %cst_276 = arith.constant -1.000000e+30 : f32
    %620 = vector.broadcast %cst_276 : f32 to vector<7x7xf32>
    %621 = arith.select %311, %619, %620 : vector<7x7xi1>, vector<7x7xf32>
    %cst_277 = arith.constant dense<0xFF800000> : vector<7xf32>
    %622 = vector.multi_reduction <maximumf>, %621, %cst_277 [1] : vector<7x7xf32> to vector<7xf32>
    %623 = vector.shape_cast %622 : vector<7xf32> to vector<7x1xf32>
    %624 = vector.broadcast %623 : vector<7x1xf32> to vector<7x7xf32>
    %625 = arith.subf %621, %624 : vector<7x7xf32>
    %626 = math.exp %625 : vector<7x7xf32>
    %cst_278 = arith.constant dense<0.000000e+00> : vector<7xf32>
    %627 = vector.multi_reduction <add>, %626, %cst_278 [1] : vector<7x7xf32> to vector<7xf32>
    %628 = vector.shape_cast %627 : vector<7xf32> to vector<7x1xf32>
    %629 = tpu.reciprocal %628 {approx = true} : vector<7x1xf32> -> vector<7x1xf32>
    %630 = vector.broadcast %629 : vector<7x1xf32> to vector<7x7xf32>
    %631 = arith.mulf %626, %630 : vector<7x7xf32>
    %cst_279 = arith.constant dense<0.000000e+00> : vector<7x8xf32>
    %632 = tpu.matmul %631, %618, %cst_279 {dimension_numbers = #tpu.dot_dimension_numbers<[1], [0], [0], [1], [0, 0, 1, 1], [], []>} : vector<7x7xf32>, vector<7x8xf32>, vector<7x8xf32> -> vector<7x8xf32>
    %633 = vector.extract_strided_slice %596 {offsets = [0, 16], sizes = [7, 8], strides = [1, 1]} : vector<7x32xf32> to vector<7x8xf32>
    %634 = vector.extract_strided_slice %597 {offsets = [0, 16], sizes = [7, 8], strides = [1, 1]} : vector<7x32xf32> to vector<7x8xf32>
    %635 = vector.extract_strided_slice %598 {offsets = [0, 16], sizes = [7, 8], strides = [1, 1]} : vector<7x32xf32> to vector<7x8xf32>
    %cst_280 = arith.constant dense<0.000000e+00> : vector<7x7xf32>
    %636 = tpu.matmul %633, %634, %cst_280 {dimension_numbers = #tpu.dot_dimension_numbers<[1], [1], [0], [0], [0, 0, 1, 0], [], []>} : vector<7x8xf32>, vector<7x8xf32>, vector<7x7xf32> -> vector<7x7xf32>
    %cst_281 = arith.constant -1.000000e+30 : f32
    %637 = vector.broadcast %cst_281 : f32 to vector<7x7xf32>
    %638 = arith.select %311, %636, %637 : vector<7x7xi1>, vector<7x7xf32>
    %cst_282 = arith.constant dense<0xFF800000> : vector<7xf32>
    %639 = vector.multi_reduction <maximumf>, %638, %cst_282 [1] : vector<7x7xf32> to vector<7xf32>
    %640 = vector.shape_cast %639 : vector<7xf32> to vector<7x1xf32>
    %641 = vector.broadcast %640 : vector<7x1xf32> to vector<7x7xf32>
    %642 = arith.subf %638, %641 : vector<7x7xf32>
    %643 = math.exp %642 : vector<7x7xf32>
    %cst_283 = arith.constant dense<0.000000e+00> : vector<7xf32>
    %644 = vector.multi_reduction <add>, %643, %cst_283 [1] : vector<7x7xf32> to vector<7xf32>
    %645 = vector.shape_cast %644 : vector<7xf32> to vector<7x1xf32>
    %646 = tpu.reciprocal %645 {approx = true} : vector<7x1xf32> -> vector<7x1xf32>
    %647 = vector.broadcast %646 : vector<7x1xf32> to vector<7x7xf32>
    %648 = arith.mulf %643, %647 : vector<7x7xf32>
    %cst_284 = arith.constant dense<0.000000e+00> : vector<7x8xf32>
    %649 = tpu.matmul %648, %635, %cst_284 {dimension_numbers = #tpu.dot_dimension_numbers<[1], [0], [0], [1], [0, 0, 1, 1], [], []>} : vector<7x7xf32>, vector<7x8xf32>, vector<7x8xf32> -> vector<7x8xf32>
    %650 = vector.extract_strided_slice %596 {offsets = [0, 24], sizes = [7, 8], strides = [1, 1]} : vector<7x32xf32> to vector<7x8xf32>
    %651 = vector.extract_strided_slice %597 {offsets = [0, 24], sizes = [7, 8], strides = [1, 1]} : vector<7x32xf32> to vector<7x8xf32>
    %652 = vector.extract_strided_slice %598 {offsets = [0, 24], sizes = [7, 8], strides = [1, 1]} : vector<7x32xf32> to vector<7x8xf32>
    %cst_285 = arith.constant dense<0.000000e+00> : vector<7x7xf32>
    %653 = tpu.matmul %650, %651, %cst_285 {dimension_numbers = #tpu.dot_dimension_numbers<[1], [1], [0], [0], [0, 0, 1, 0], [], []>} : vector<7x8xf32>, vector<7x8xf32>, vector<7x7xf32> -> vector<7x7xf32>
    %cst_286 = arith.constant -1.000000e+30 : f32
    %654 = vector.broadcast %cst_286 : f32 to vector<7x7xf32>
    %655 = arith.select %311, %653, %654 : vector<7x7xi1>, vector<7x7xf32>
    %cst_287 = arith.constant dense<0xFF800000> : vector<7xf32>
    %656 = vector.multi_reduction <maximumf>, %655, %cst_287 [1] : vector<7x7xf32> to vector<7xf32>
    %657 = vector.shape_cast %656 : vector<7xf32> to vector<7x1xf32>
    %658 = vector.broadcast %657 : vector<7x1xf32> to vector<7x7xf32>
    %659 = arith.subf %655, %658 : vector<7x7xf32>
    %660 = math.exp %659 : vector<7x7xf32>
    %cst_288 = arith.constant dense<0.000000e+00> : vector<7xf32>
    %661 = vector.multi_reduction <add>, %660, %cst_288 [1] : vector<7x7xf32> to vector<7xf32>
    %662 = vector.shape_cast %661 : vector<7xf32> to vector<7x1xf32>
    %663 = tpu.reciprocal %662 {approx = true} : vector<7x1xf32> -> vector<7x1xf32>
    %664 = vector.broadcast %663 : vector<7x1xf32> to vector<7x7xf32>
    %665 = arith.mulf %660, %664 : vector<7x7xf32>
    %cst_289 = arith.constant dense<0.000000e+00> : vector<7x8xf32>
    %666 = tpu.matmul %665, %652, %cst_289 {dimension_numbers = #tpu.dot_dimension_numbers<[1], [0], [0], [1], [0, 0, 1, 1], [], []>} : vector<7x7xf32>, vector<7x8xf32>, vector<7x8xf32> -> vector<7x8xf32>
    %667 = tpu.concatenate %615, %632, %649, %666 in 1 : vector<7x8xf32>, vector<7x8xf32>, vector<7x8xf32>, vector<7x8xf32> -> vector<7x32xf32>
    %cst_290 = arith.constant dense<0.000000e+00> : vector<7x32xf32>
    %668 = tpu.matmul %667, %588, %cst_290 {dimension_numbers = #tpu.dot_dimension_numbers<[1], [0], [0], [1], [0, 0, 1, 1], [], []>} : vector<7x32xf32>, vector<32x32xf32>, vector<7x32xf32> -> vector<7x32xf32>
    %669 = vector.broadcast %590 : vector<1x32xf32> to vector<7x32xf32>
    %670 = arith.addf %668, %669 : vector<7x32xf32>
    %671 = arith.addf %582, %670 : vector<7x32xf32>
    %c1_291 = arith.constant 1 : index
    %c0_292 = arith.constant 0 : index
    %c0_293 = arith.constant 0 : index
    %672 = vector.load %arg22[%c1_291, %c0_292, %c0_293] : memref<2x1x32xf32, #tpu.memory_space<vmem>>, vector<1x1x32xf32>
    %673 = vector.shape_cast %672 : vector<1x1x32xf32> to vector<1x32xf32>
    %c1_294 = arith.constant 1 : index
    %c0_295 = arith.constant 0 : index
    %c0_296 = arith.constant 0 : index
    %674 = vector.load %arg23[%c1_294, %c0_295, %c0_296] : memref<2x1x32xf32, #tpu.memory_space<vmem>>, vector<1x1x32xf32>
    %675 = vector.shape_cast %674 : vector<1x1x32xf32> to vector<1x32xf32>
    %cst_297 = arith.constant dense<0.000000e+00> : vector<7xf32>
    %676 = vector.multi_reduction <add>, %671, %cst_297 [1] : vector<7x32xf32> to vector<7xf32>
    %677 = vector.shape_cast %676 : vector<7xf32> to vector<7x1xf32>
    %cst_298 = arith.constant 3.200000e+01 : f32
    %678 = vector.broadcast %cst_298 : f32 to vector<7x1xf32>
    %679 = arith.divf %677, %678 : vector<7x1xf32>
    %680 = vector.broadcast %679 : vector<7x1xf32> to vector<7x32xf32>
    %681 = arith.subf %671, %680 : vector<7x32xf32>
    %682 = arith.mulf %681, %681 : vector<7x32xf32>
    %cst_299 = arith.constant dense<0.000000e+00> : vector<7xf32>
    %683 = vector.multi_reduction <add>, %682, %cst_299 [1] : vector<7x32xf32> to vector<7xf32>
    %684 = vector.shape_cast %683 : vector<7xf32> to vector<7x1xf32>
    %cst_300 = arith.constant 3.200000e+01 : f32
    %685 = vector.broadcast %cst_300 : f32 to vector<7x1xf32>
    %686 = arith.divf %684, %685 : vector<7x1xf32>
    %687 = vector.broadcast %679 : vector<7x1xf32> to vector<7x32xf32>
    %688 = arith.subf %671, %687 : vector<7x32xf32>
    %cst_301 = arith.constant 9.99999974E-6 : f32
    %689 = vector.broadcast %cst_301 : f32 to vector<7x1xf32>
    %690 = arith.addf %686, %689 : vector<7x1xf32>
    %691 = math.rsqrt %690 : vector<7x1xf32>
    %692 = vector.broadcast %691 : vector<7x1xf32> to vector<7x32xf32>
    %693 = arith.mulf %688, %692 : vector<7x32xf32>
    %694 = vector.broadcast %673 : vector<1x32xf32> to vector<7x32xf32>
    %695 = arith.mulf %693, %694 : vector<7x32xf32>
    %696 = vector.broadcast %675 : vector<1x32xf32> to vector<7x32xf32>
    %697 = arith.addf %695, %696 : vector<7x32xf32>
    %c1_302 = arith.constant 1 : index
    %c0_303 = arith.constant 0 : index
    %c0_304 = arith.constant 0 : index
    %698 = vector.load %arg24[%c1_302, %c0_303, %c0_304] : memref<2x32x96xf32, #tpu.memory_space<vmem>>, vector<1x32x96xf32>
    %699 = vector.shape_cast %698 : vector<1x32x96xf32> to vector<32x96xf32>
    %c1_305 = arith.constant 1 : index
    %c0_306 = arith.constant 0 : index
    %c0_307 = arith.constant 0 : index
    %700 = vector.load %arg25[%c1_305, %c0_306, %c0_307] : memref<2x1x96xf32, #tpu.memory_space<vmem>>, vector<1x1x96xf32>
    %701 = vector.shape_cast %700 : vector<1x1x96xf32> to vector<1x96xf32>
    %c1_308 = arith.constant 1 : index
    %c0_309 = arith.constant 0 : index
    %c0_310 = arith.constant 0 : index
    %702 = vector.load %arg26[%c1_308, %c0_309, %c0_310] : memref<2x32x32xf32, #tpu.memory_space<vmem>>, vector<1x32x32xf32>
    %703 = vector.shape_cast %702 : vector<1x32x32xf32> to vector<32x32xf32>
    %c1_311 = arith.constant 1 : index
    %c0_312 = arith.constant 0 : index
    %c0_313 = arith.constant 0 : index
    %704 = vector.load %arg27[%c1_311, %c0_312, %c0_313] : memref<2x1x32xf32, #tpu.memory_space<vmem>>, vector<1x1x32xf32>
    %705 = vector.shape_cast %704 : vector<1x1x32xf32> to vector<1x32xf32>
    %706 = vector.extract_strided_slice %699 {offsets = [0, 0], sizes = [32, 32], strides = [1, 1]} : vector<32x96xf32> to vector<32x32xf32>
    %cst_314 = arith.constant dense<0.000000e+00> : vector<7x32xf32>
    %707 = tpu.matmul %697, %706, %cst_314 {dimension_numbers = #tpu.dot_dimension_numbers<[1], [0], [0], [1], [0, 0, 1, 1], [], []>} : vector<7x32xf32>, vector<32x32xf32>, vector<7x32xf32> -> vector<7x32xf32>
    %708 = vector.extract_strided_slice %701 {offsets = [0, 0], sizes = [1, 32], strides = [1, 1]} : vector<1x96xf32> to vector<1x32xf32>
    %709 = vector.broadcast %708 : vector<1x32xf32> to vector<7x32xf32>
    %710 = arith.addf %707, %709 : vector<7x32xf32>
    %cst_315 = arith.constant 0.353553385 : f32
    %711 = vector.broadcast %cst_315 : f32 to vector<7x32xf32>
    %712 = arith.mulf %710, %711 : vector<7x32xf32>
    %713 = vector.extract_strided_slice %699 {offsets = [0, 32], sizes = [32, 64], strides = [1, 1]} : vector<32x96xf32> to vector<32x64xf32>
    %cst_316 = arith.constant dense<0.000000e+00> : vector<8x64xf32>
    %714 = tpu.matmul %308, %713, %cst_316 {dimension_numbers = #tpu.dot_dimension_numbers<[1], [0], [0], [1], [0, 0, 1, 1], [], []>} : vector<8x32xf32>, vector<32x64xf32>, vector<8x64xf32> -> vector<8x64xf32>
    %715 = vector.extract_strided_slice %701 {offsets = [0, 32], sizes = [1, 64], strides = [1, 1]} : vector<1x96xf32> to vector<1x64xf32>
    %716 = vector.broadcast %715 : vector<1x64xf32> to vector<8x64xf32>
    %717 = arith.addf %714, %716 : vector<8x64xf32>
    %718 = vector.extract_strided_slice %717 {offsets = [0, 0], sizes = [8, 32], strides = [1, 1]} : vector<8x64xf32> to vector<8x32xf32>
    %719 = vector.extract_strided_slice %717 {offsets = [0, 32], sizes = [8, 32], strides = [1, 1]} : vector<8x64xf32> to vector<8x32xf32>
    %720 = vector.extract_strided_slice %712 {offsets = [0, 0], sizes = [7, 8], strides = [1, 1]} : vector<7x32xf32> to vector<7x8xf32>
    %721 = vector.extract_strided_slice %718 {offsets = [0, 0], sizes = [8, 8], strides = [1, 1]} : vector<8x32xf32> to vector<8x8xf32>
    %722 = vector.extract_strided_slice %719 {offsets = [0, 0], sizes = [8, 8], strides = [1, 1]} : vector<8x32xf32> to vector<8x8xf32>
    %cst_317 = arith.constant dense<0.000000e+00> : vector<7x8xf32>
    %723 = tpu.matmul %720, %721, %cst_317 {dimension_numbers = #tpu.dot_dimension_numbers<[1], [1], [0], [0], [0, 0, 1, 0], [], []>} : vector<7x8xf32>, vector<8x8xf32>, vector<7x8xf32> -> vector<7x8xf32>
    %cst_318 = arith.constant dense<0xFF800000> : vector<7xf32>
    %724 = vector.multi_reduction <maximumf>, %723, %cst_318 [1] : vector<7x8xf32> to vector<7xf32>
    %725 = vector.shape_cast %724 : vector<7xf32> to vector<7x1xf32>
    %726 = vector.broadcast %725 : vector<7x1xf32> to vector<7x8xf32>
    %727 = arith.subf %723, %726 : vector<7x8xf32>
    %728 = math.exp %727 : vector<7x8xf32>
    %cst_319 = arith.constant dense<0.000000e+00> : vector<7xf32>
    %729 = vector.multi_reduction <add>, %728, %cst_319 [1] : vector<7x8xf32> to vector<7xf32>
    %730 = vector.shape_cast %729 : vector<7xf32> to vector<7x1xf32>
    %731 = tpu.reciprocal %730 {approx = true} : vector<7x1xf32> -> vector<7x1xf32>
    %732 = vector.broadcast %731 : vector<7x1xf32> to vector<7x8xf32>
    %733 = arith.mulf %728, %732 : vector<7x8xf32>
    %cst_320 = arith.constant dense<0.000000e+00> : vector<7x8xf32>
    %734 = tpu.matmul %733, %722, %cst_320 {dimension_numbers = #tpu.dot_dimension_numbers<[1], [0], [0], [1], [0, 0, 1, 1], [], []>} : vector<7x8xf32>, vector<8x8xf32>, vector<7x8xf32> -> vector<7x8xf32>
    %735 = vector.extract_strided_slice %712 {offsets = [0, 8], sizes = [7, 8], strides = [1, 1]} : vector<7x32xf32> to vector<7x8xf32>
    %736 = vector.extract_strided_slice %718 {offsets = [0, 8], sizes = [8, 8], strides = [1, 1]} : vector<8x32xf32> to vector<8x8xf32>
    %737 = vector.extract_strided_slice %719 {offsets = [0, 8], sizes = [8, 8], strides = [1, 1]} : vector<8x32xf32> to vector<8x8xf32>
    %cst_321 = arith.constant dense<0.000000e+00> : vector<7x8xf32>
    %738 = tpu.matmul %735, %736, %cst_321 {dimension_numbers = #tpu.dot_dimension_numbers<[1], [1], [0], [0], [0, 0, 1, 0], [], []>} : vector<7x8xf32>, vector<8x8xf32>, vector<7x8xf32> -> vector<7x8xf32>
    %cst_322 = arith.constant dense<0xFF800000> : vector<7xf32>
    %739 = vector.multi_reduction <maximumf>, %738, %cst_322 [1] : vector<7x8xf32> to vector<7xf32>
    %740 = vector.shape_cast %739 : vector<7xf32> to vector<7x1xf32>
    %741 = vector.broadcast %740 : vector<7x1xf32> to vector<7x8xf32>
    %742 = arith.subf %738, %741 : vector<7x8xf32>
    %743 = math.exp %742 : vector<7x8xf32>
    %cst_323 = arith.constant dense<0.000000e+00> : vector<7xf32>
    %744 = vector.multi_reduction <add>, %743, %cst_323 [1] : vector<7x8xf32> to vector<7xf32>
    %745 = vector.shape_cast %744 : vector<7xf32> to vector<7x1xf32>
    %746 = tpu.reciprocal %745 {approx = true} : vector<7x1xf32> -> vector<7x1xf32>
    %747 = vector.broadcast %746 : vector<7x1xf32> to vector<7x8xf32>
    %748 = arith.mulf %743, %747 : vector<7x8xf32>
    %cst_324 = arith.constant dense<0.000000e+00> : vector<7x8xf32>
    %749 = tpu.matmul %748, %737, %cst_324 {dimension_numbers = #tpu.dot_dimension_numbers<[1], [0], [0], [1], [0, 0, 1, 1], [], []>} : vector<7x8xf32>, vector<8x8xf32>, vector<7x8xf32> -> vector<7x8xf32>
    %750 = vector.extract_strided_slice %712 {offsets = [0, 16], sizes = [7, 8], strides = [1, 1]} : vector<7x32xf32> to vector<7x8xf32>
    %751 = vector.extract_strided_slice %718 {offsets = [0, 16], sizes = [8, 8], strides = [1, 1]} : vector<8x32xf32> to vector<8x8xf32>
    %752 = vector.extract_strided_slice %719 {offsets = [0, 16], sizes = [8, 8], strides = [1, 1]} : vector<8x32xf32> to vector<8x8xf32>
    %cst_325 = arith.constant dense<0.000000e+00> : vector<7x8xf32>
    %753 = tpu.matmul %750, %751, %cst_325 {dimension_numbers = #tpu.dot_dimension_numbers<[1], [1], [0], [0], [0, 0, 1, 0], [], []>} : vector<7x8xf32>, vector<8x8xf32>, vector<7x8xf32> -> vector<7x8xf32>
    %cst_326 = arith.constant dense<0xFF800000> : vector<7xf32>
    %754 = vector.multi_reduction <maximumf>, %753, %cst_326 [1] : vector<7x8xf32> to vector<7xf32>
    %755 = vector.shape_cast %754 : vector<7xf32> to vector<7x1xf32>
    %756 = vector.broadcast %755 : vector<7x1xf32> to vector<7x8xf32>
    %757 = arith.subf %753, %756 : vector<7x8xf32>
    %758 = math.exp %757 : vector<7x8xf32>
    %cst_327 = arith.constant dense<0.000000e+00> : vector<7xf32>
    %759 = vector.multi_reduction <add>, %758, %cst_327 [1] : vector<7x8xf32> to vector<7xf32>
    %760 = vector.shape_cast %759 : vector<7xf32> to vector<7x1xf32>
    %761 = tpu.reciprocal %760 {approx = true} : vector<7x1xf32> -> vector<7x1xf32>
    %762 = vector.broadcast %761 : vector<7x1xf32> to vector<7x8xf32>
    %763 = arith.mulf %758, %762 : vector<7x8xf32>
    %cst_328 = arith.constant dense<0.000000e+00> : vector<7x8xf32>
    %764 = tpu.matmul %763, %752, %cst_328 {dimension_numbers = #tpu.dot_dimension_numbers<[1], [0], [0], [1], [0, 0, 1, 1], [], []>} : vector<7x8xf32>, vector<8x8xf32>, vector<7x8xf32> -> vector<7x8xf32>
    %765 = vector.extract_strided_slice %712 {offsets = [0, 24], sizes = [7, 8], strides = [1, 1]} : vector<7x32xf32> to vector<7x8xf32>
    %766 = vector.extract_strided_slice %718 {offsets = [0, 24], sizes = [8, 8], strides = [1, 1]} : vector<8x32xf32> to vector<8x8xf32>
    %767 = vector.extract_strided_slice %719 {offsets = [0, 24], sizes = [8, 8], strides = [1, 1]} : vector<8x32xf32> to vector<8x8xf32>
    %cst_329 = arith.constant dense<0.000000e+00> : vector<7x8xf32>
    %768 = tpu.matmul %765, %766, %cst_329 {dimension_numbers = #tpu.dot_dimension_numbers<[1], [1], [0], [0], [0, 0, 1, 0], [], []>} : vector<7x8xf32>, vector<8x8xf32>, vector<7x8xf32> -> vector<7x8xf32>
    %cst_330 = arith.constant dense<0xFF800000> : vector<7xf32>
    %769 = vector.multi_reduction <maximumf>, %768, %cst_330 [1] : vector<7x8xf32> to vector<7xf32>
    %770 = vector.shape_cast %769 : vector<7xf32> to vector<7x1xf32>
    %771 = vector.broadcast %770 : vector<7x1xf32> to vector<7x8xf32>
    %772 = arith.subf %768, %771 : vector<7x8xf32>
    %773 = math.exp %772 : vector<7x8xf32>
    %cst_331 = arith.constant dense<0.000000e+00> : vector<7xf32>
    %774 = vector.multi_reduction <add>, %773, %cst_331 [1] : vector<7x8xf32> to vector<7xf32>
    %775 = vector.shape_cast %774 : vector<7xf32> to vector<7x1xf32>
    %776 = tpu.reciprocal %775 {approx = true} : vector<7x1xf32> -> vector<7x1xf32>
    %777 = vector.broadcast %776 : vector<7x1xf32> to vector<7x8xf32>
    %778 = arith.mulf %773, %777 : vector<7x8xf32>
    %cst_332 = arith.constant dense<0.000000e+00> : vector<7x8xf32>
    %779 = tpu.matmul %778, %767, %cst_332 {dimension_numbers = #tpu.dot_dimension_numbers<[1], [0], [0], [1], [0, 0, 1, 1], [], []>} : vector<7x8xf32>, vector<8x8xf32>, vector<7x8xf32> -> vector<7x8xf32>
    %780 = tpu.concatenate %734, %749, %764, %779 in 1 : vector<7x8xf32>, vector<7x8xf32>, vector<7x8xf32>, vector<7x8xf32> -> vector<7x32xf32>
    %cst_333 = arith.constant dense<0.000000e+00> : vector<7x32xf32>
    %781 = tpu.matmul %780, %703, %cst_333 {dimension_numbers = #tpu.dot_dimension_numbers<[1], [0], [0], [1], [0, 0, 1, 1], [], []>} : vector<7x32xf32>, vector<32x32xf32>, vector<7x32xf32> -> vector<7x32xf32>
    %782 = vector.broadcast %705 : vector<1x32xf32> to vector<7x32xf32>
    %783 = arith.addf %781, %782 : vector<7x32xf32>
    %784 = arith.addf %697, %783 : vector<7x32xf32>
    %c1_334 = arith.constant 1 : index
    %c0_335 = arith.constant 0 : index
    %c0_336 = arith.constant 0 : index
    %785 = vector.load %arg28[%c1_334, %c0_335, %c0_336] : memref<2x1x32xf32, #tpu.memory_space<vmem>>, vector<1x1x32xf32>
    %786 = vector.shape_cast %785 : vector<1x1x32xf32> to vector<1x32xf32>
    %c1_337 = arith.constant 1 : index
    %c0_338 = arith.constant 0 : index
    %c0_339 = arith.constant 0 : index
    %787 = vector.load %arg29[%c1_337, %c0_338, %c0_339] : memref<2x1x32xf32, #tpu.memory_space<vmem>>, vector<1x1x32xf32>
    %788 = vector.shape_cast %787 : vector<1x1x32xf32> to vector<1x32xf32>
    %cst_340 = arith.constant dense<0.000000e+00> : vector<7xf32>
    %789 = vector.multi_reduction <add>, %784, %cst_340 [1] : vector<7x32xf32> to vector<7xf32>
    %790 = vector.shape_cast %789 : vector<7xf32> to vector<7x1xf32>
    %cst_341 = arith.constant 3.200000e+01 : f32
    %791 = vector.broadcast %cst_341 : f32 to vector<7x1xf32>
    %792 = arith.divf %790, %791 : vector<7x1xf32>
    %793 = vector.broadcast %792 : vector<7x1xf32> to vector<7x32xf32>
    %794 = arith.subf %784, %793 : vector<7x32xf32>
    %795 = arith.mulf %794, %794 : vector<7x32xf32>
    %cst_342 = arith.constant dense<0.000000e+00> : vector<7xf32>
    %796 = vector.multi_reduction <add>, %795, %cst_342 [1] : vector<7x32xf32> to vector<7xf32>
    %797 = vector.shape_cast %796 : vector<7xf32> to vector<7x1xf32>
    %cst_343 = arith.constant 3.200000e+01 : f32
    %798 = vector.broadcast %cst_343 : f32 to vector<7x1xf32>
    %799 = arith.divf %797, %798 : vector<7x1xf32>
    %800 = vector.broadcast %792 : vector<7x1xf32> to vector<7x32xf32>
    %801 = arith.subf %784, %800 : vector<7x32xf32>
    %cst_344 = arith.constant 9.99999974E-6 : f32
    %802 = vector.broadcast %cst_344 : f32 to vector<7x1xf32>
    %803 = arith.addf %799, %802 : vector<7x1xf32>
    %804 = math.rsqrt %803 : vector<7x1xf32>
    %805 = vector.broadcast %804 : vector<7x1xf32> to vector<7x32xf32>
    %806 = arith.mulf %801, %805 : vector<7x32xf32>
    %807 = vector.broadcast %786 : vector<1x32xf32> to vector<7x32xf32>
    %808 = arith.mulf %806, %807 : vector<7x32xf32>
    %809 = vector.broadcast %788 : vector<1x32xf32> to vector<7x32xf32>
    %810 = arith.addf %808, %809 : vector<7x32xf32>
    %c1_345 = arith.constant 1 : index
    %c0_346 = arith.constant 0 : index
    %c0_347 = arith.constant 0 : index
    %811 = vector.load %arg30[%c1_345, %c0_346, %c0_347] : memref<2x32x64xf32, #tpu.memory_space<vmem>>, vector<1x32x64xf32>
    %812 = vector.shape_cast %811 : vector<1x32x64xf32> to vector<32x64xf32>
    %cst_348 = arith.constant dense<0.000000e+00> : vector<7x64xf32>
    %813 = tpu.matmul %810, %812, %cst_348 {dimension_numbers = #tpu.dot_dimension_numbers<[1], [0], [0], [1], [0, 0, 1, 1], [], []>} : vector<7x32xf32>, vector<32x64xf32>, vector<7x64xf32> -> vector<7x64xf32>
    %c1_349 = arith.constant 1 : index
    %c0_350 = arith.constant 0 : index
    %c0_351 = arith.constant 0 : index
    %814 = vector.load %arg31[%c1_349, %c0_350, %c0_351] : memref<2x1x64xf32, #tpu.memory_space<vmem>>, vector<1x1x64xf32>
    %815 = vector.shape_cast %814 : vector<1x1x64xf32> to vector<1x64xf32>
    %816 = vector.broadcast %815 : vector<1x64xf32> to vector<7x64xf32>
    %817 = arith.addf %813, %816 : vector<7x64xf32>
    %cst_352 = arith.constant 0.000000e+00 : f32
    %818 = vector.broadcast %cst_352 : f32 to vector<7x64xf32>
    %819 = arith.maximumf %817, %818 : vector<7x64xf32>
    %c1_353 = arith.constant 1 : index
    %c0_354 = arith.constant 0 : index
    %c0_355 = arith.constant 0 : index
    %820 = vector.load %arg32[%c1_353, %c0_354, %c0_355] : memref<2x64x32xf32, #tpu.memory_space<vmem>>, vector<1x64x32xf32>
    %821 = vector.shape_cast %820 : vector<1x64x32xf32> to vector<64x32xf32>
    %cst_356 = arith.constant dense<0.000000e+00> : vector<7x32xf32>
    %822 = tpu.matmul %819, %821, %cst_356 {dimension_numbers = #tpu.dot_dimension_numbers<[1], [0], [0], [1], [0, 0, 1, 1], [], []>} : vector<7x64xf32>, vector<64x32xf32>, vector<7x32xf32> -> vector<7x32xf32>
    %c1_357 = arith.constant 1 : index
    %c0_358 = arith.constant 0 : index
    %c0_359 = arith.constant 0 : index
    %823 = vector.load %arg33[%c1_357, %c0_358, %c0_359] : memref<2x1x32xf32, #tpu.memory_space<vmem>>, vector<1x1x32xf32>
    %824 = vector.shape_cast %823 : vector<1x1x32xf32> to vector<1x32xf32>
    %825 = vector.broadcast %824 : vector<1x32xf32> to vector<7x32xf32>
    %826 = arith.addf %822, %825 : vector<7x32xf32>
    %827 = arith.addf %810, %826 : vector<7x32xf32>
    %c1_360 = arith.constant 1 : index
    %c0_361 = arith.constant 0 : index
    %c0_362 = arith.constant 0 : index
    %828 = vector.load %arg34[%c1_360, %c0_361, %c0_362] : memref<2x1x32xf32, #tpu.memory_space<vmem>>, vector<1x1x32xf32>
    %829 = vector.shape_cast %828 : vector<1x1x32xf32> to vector<1x32xf32>
    %c1_363 = arith.constant 1 : index
    %c0_364 = arith.constant 0 : index
    %c0_365 = arith.constant 0 : index
    %830 = vector.load %arg35[%c1_363, %c0_364, %c0_365] : memref<2x1x32xf32, #tpu.memory_space<vmem>>, vector<1x1x32xf32>
    %831 = vector.shape_cast %830 : vector<1x1x32xf32> to vector<1x32xf32>
    %cst_366 = arith.constant dense<0.000000e+00> : vector<7xf32>
    %832 = vector.multi_reduction <add>, %827, %cst_366 [1] : vector<7x32xf32> to vector<7xf32>
    %833 = vector.shape_cast %832 : vector<7xf32> to vector<7x1xf32>
    %cst_367 = arith.constant 3.200000e+01 : f32
    %834 = vector.broadcast %cst_367 : f32 to vector<7x1xf32>
    %835 = arith.divf %833, %834 : vector<7x1xf32>
    %836 = vector.broadcast %835 : vector<7x1xf32> to vector<7x32xf32>
    %837 = arith.subf %827, %836 : vector<7x32xf32>
    %838 = arith.mulf %837, %837 : vector<7x32xf32>
    %cst_368 = arith.constant dense<0.000000e+00> : vector<7xf32>
    %839 = vector.multi_reduction <add>, %838, %cst_368 [1] : vector<7x32xf32> to vector<7xf32>
    %840 = vector.shape_cast %839 : vector<7xf32> to vector<7x1xf32>
    %cst_369 = arith.constant 3.200000e+01 : f32
    %841 = vector.broadcast %cst_369 : f32 to vector<7x1xf32>
    %842 = arith.divf %840, %841 : vector<7x1xf32>
    %843 = vector.broadcast %835 : vector<7x1xf32> to vector<7x32xf32>
    %844 = arith.subf %827, %843 : vector<7x32xf32>
    %cst_370 = arith.constant 9.99999974E-6 : f32
    %845 = vector.broadcast %cst_370 : f32 to vector<7x1xf32>
    %846 = arith.addf %842, %845 : vector<7x1xf32>
    %847 = math.rsqrt %846 : vector<7x1xf32>
    %848 = vector.broadcast %847 : vector<7x1xf32> to vector<7x32xf32>
    %849 = arith.mulf %844, %848 : vector<7x32xf32>
    %850 = vector.broadcast %829 : vector<1x32xf32> to vector<7x32xf32>
    %851 = arith.mulf %849, %850 : vector<7x32xf32>
    %852 = vector.broadcast %831 : vector<1x32xf32> to vector<7x32xf32>
    %853 = arith.addf %851, %852 : vector<7x32xf32>
    %c0_371 = arith.constant 0 : index
    %c0_372 = arith.constant 0 : index
    %854 = vector.load %arg36[%c0_371, %c0_372] : memref<32x8xf32, #tpu.memory_space<vmem>>, vector<32x8xf32>
    %cst_373 = arith.constant dense<0.000000e+00> : vector<7x8xf32>
    %855 = tpu.matmul %853, %854, %cst_373 {dimension_numbers = #tpu.dot_dimension_numbers<[1], [0], [0], [1], [0, 0, 1, 1], [], []>} : vector<7x32xf32>, vector<32x8xf32>, vector<7x8xf32> -> vector<7x8xf32>
    %c0_374 = arith.constant 0 : index
    %c0_375 = arith.constant 0 : index
    %856 = vector.load %arg37[%c0_374, %c0_375] : memref<1x8xf32, #tpu.memory_space<vmem>>, vector<1x8xf32>
    %857 = vector.broadcast %856 : vector<1x8xf32> to vector<7x8xf32>
    %858 = arith.addf %855, %857 : vector<7x8xf32>
    %c0_376 = arith.constant 0 : index
    %c0_377 = arith.constant 0 : index
    %c0_378 = arith.constant 0 : index
    %859 = vector.load %arg2[%c0_376, %c0_377, %c0_378] : memref<1x7x8xf32, #tpu.memory_space<vmem>>, vector<1x7x8xf32>
    %860 = vector.shape_cast %859 : vector<1x7x8xf32> to vector<7x8xf32>
    %cst_379 = arith.constant 0.000000e+00 : f32
    %861 = vector.broadcast %cst_379 : f32 to vector<7x8xf32>
    %862 = arith.maximumf %858, %861 : vector<7x8xf32>
    %863 = arith.mulf %858, %860 : vector<7x8xf32>
    %864 = arith.subf %862, %863 : vector<7x8xf32>
    %865 = math.absf %858 : vector<7x8xf32>
    %cst_380 = arith.constant 0.000000e+00 : f32
    %866 = vector.broadcast %cst_380 : f32 to vector<7x8xf32>
    %867 = arith.subf %866, %865 : vector<7x8xf32>
    %868 = math.exp %867 : vector<7x8xf32>
    %869 = math.log1p %868 : vector<7x8xf32>
    %870 = arith.addf %864, %869 : vector<7x8xf32>
    %c0_381 = arith.constant 0 : index
    %c0_382 = arith.constant 0 : index
    %871 = vector.load %arg3[%c0_381, %c0_382] : memref<7x8xf32, #tpu.memory_space<vmem>>, vector<7x8xf32>
    %872 = arith.mulf %870, %871 : vector<7x8xf32>
    %cst_383 = arith.constant dense<0.000000e+00> : vector<8xf32>
    %873 = vector.multi_reduction <add>, %872, %cst_383 [0] : vector<7x8xf32> to vector<8xf32>
    %874 = vector.shape_cast %873 : vector<8xf32> to vector<1x8xf32>
    %cst_384 = arith.constant dense<0.000000e+00> : vector<1xf32>
    %875 = vector.multi_reduction <add>, %874, %cst_384 [1] : vector<1x8xf32> to vector<1xf32>
    %876 = vector.shape_cast %875 : vector<1xf32> to vector<1x1xf32>
    %c0_385 = arith.constant 0 : index
    %c0_386 = arith.constant 0 : index
    %c0_387 = arith.constant 0 : index
    %877 = vector.load %arg38[%c0_385, %c0_386, %c0_387] : memref<1x1x1xf32, #tpu.memory_space<vmem>>, vector<1x1x1xf32>
    %878 = vector.shape_cast %877 : vector<1x1x1xf32> to vector<1x1xf32>
    %879 = vector.shape_cast %876 : vector<1x1xf32> to vector<1x1x1xf32>
    tpu.vector_store %arg38[%c0_385, %c0_386, %c0_387], %879 {strides = array<i32>} : memref<1x1x1xf32, #tpu.memory_space<vmem>>, vector<1x1x1xf32>,
    return
  }
  func.func @transform_0(%arg0: i32) -> (i32, i32, i32) {
    %c0_i32 = arith.constant 0 : i32
    %c0_i32_0 = arith.constant 0 : i32
    %c0_i32_1 = arith.constant 0 : i32
    return %arg0, %c0_i32, %c0_i32_0 : i32, i32, i32
  }
  func.func @transform_1(%arg0: i32) -> (i32, i32, i32) {
    %c0_i32 = arith.constant 0 : i32
    %c0_i32_0 = arith.constant 0 : i32
    %c0_i32_1 = arith.constant 0 : i32
    return %arg0, %c0_i32, %c0_i32_0 : i32, i32, i32
  }
  func.func @transform_2(%arg0: i32) -> (i32, i32) {
    %c0_i32 = arith.constant 0 : i32
    %c0_i32_0 = arith.constant 0 : i32
    %c0_i32_1 = arith.constant 0 : i32
    return %c0_i32, %c0_i32_0 : i32, i32
  }
  func.func @transform_3(%arg0: i32) -> (i32, i32) {
    %c0_i32 = arith.constant 0 : i32
    %c0_i32_0 = arith.constant 0 : i32
    %c0_i32_1 = arith.constant 0 : i32
    return %c0_i32, %c0_i32_0 : i32, i32
  }
  func.func @transform_4(%arg0: i32) -> (i32, i32) {
    %c0_i32 = arith.constant 0 : i32
    %c0_i32_0 = arith.constant 0 : i32
    %c0_i32_1 = arith.constant 0 : i32
    return %c0_i32, %c0_i32_0 : i32, i32
  }
  func.func @transform_5(%arg0: i32) -> (i32, i32, i32) {
    %c0_i32 = arith.constant 0 : i32
    %c0_i32_0 = arith.constant 0 : i32
    %c0_i32_1 = arith.constant 0 : i32
    %c0_i32_2 = arith.constant 0 : i32
    return %c0_i32, %c0_i32_0, %c0_i32_1 : i32, i32, i32
  }
  func.func @transform_6(%arg0: i32) -> (i32, i32, i32) {
    %c0_i32 = arith.constant 0 : i32
    %c0_i32_0 = arith.constant 0 : i32
    %c0_i32_1 = arith.constant 0 : i32
    %c0_i32_2 = arith.constant 0 : i32
    return %c0_i32, %c0_i32_0, %c0_i32_1 : i32, i32, i32
  }
  func.func @transform_7(%arg0: i32) -> (i32, i32, i32) {
    %c0_i32 = arith.constant 0 : i32
    %c0_i32_0 = arith.constant 0 : i32
    %c0_i32_1 = arith.constant 0 : i32
    %c0_i32_2 = arith.constant 0 : i32
    return %c0_i32, %c0_i32_0, %c0_i32_1 : i32, i32, i32
  }
  func.func @transform_8(%arg0: i32) -> (i32, i32, i32) {
    %c0_i32 = arith.constant 0 : i32
    %c0_i32_0 = arith.constant 0 : i32
    %c0_i32_1 = arith.constant 0 : i32
    %c0_i32_2 = arith.constant 0 : i32
    return %c0_i32, %c0_i32_0, %c0_i32_1 : i32, i32, i32
  }
  func.func @transform_9(%arg0: i32) -> (i32, i32, i32) {
    %c0_i32 = arith.constant 0 : i32
    %c0_i32_0 = arith.constant 0 : i32
    %c0_i32_1 = arith.constant 0 : i32
    %c0_i32_2 = arith.constant 0 : i32
    return %c0_i32, %c0_i32_0, %c0_i32_1 : i32, i32, i32
  }
  func.func @transform_10(%arg0: i32) -> (i32, i32, i32) {
    %c0_i32 = arith.constant 0 : i32
    %c0_i32_0 = arith.constant 0 : i32
    %c0_i32_1 = arith.constant 0 : i32
    %c0_i32_2 = arith.constant 0 : i32
    return %c0_i32, %c0_i32_0, %c0_i32_1 : i32, i32, i32
  }
  func.func @transform_11(%arg0: i32) -> (i32, i32, i32) {
    %c0_i32 = arith.constant 0 : i32
    %c0_i32_0 = arith.constant 0 : i32
    %c0_i32_1 = arith.constant 0 : i32
    %c0_i32_2 = arith.constant 0 : i32
    return %c0_i32, %c0_i32_0, %c0_i32_1 : i32, i32, i32
  }
  func.func @transform_12(%arg0: i32) -> (i32, i32, i32) {
    %c0_i32 = arith.constant 0 : i32
    %c0_i32_0 = arith.constant 0 : i32
    %c0_i32_1 = arith.constant 0 : i32
    %c0_i32_2 = arith.constant 0 : i32
    return %c0_i32, %c0_i32_0, %c0_i32_1 : i32, i32, i32
  }
  func.func @transform_13(%arg0: i32) -> (i32, i32, i32) {
    %c0_i32 = arith.constant 0 : i32
    %c0_i32_0 = arith.constant 0 : i32
    %c0_i32_1 = arith.constant 0 : i32
    %c0_i32_2 = arith.constant 0 : i32
    return %c0_i32, %c0_i32_0, %c0_i32_1 : i32, i32, i32
  }
  func.func @transform_14(%arg0: i32) -> (i32, i32, i32) {
    %c0_i32 = arith.constant 0 : i32
    %c0_i32_0 = arith.constant 0 : i32
    %c0_i32_1 = arith.constant 0 : i32
    %c0_i32_2 = arith.constant 0 : i32
    return %c0_i32, %c0_i32_0, %c0_i32_1 : i32, i32, i32
  }
  func.func @transform_15(%arg0: i32) -> (i32, i32, i32) {
    %c0_i32 = arith.constant 0 : i32
    %c0_i32_0 = arith.constant 0 : i32
    %c0_i32_1 = arith.constant 0 : i32
    %c0_i32_2 = arith.constant 0 : i32
    return %c0_i32, %c0_i32_0, %c0_i32_1 : i32, i32, i32
  }
  func.func @transform_16(%arg0: i32) -> (i32, i32, i32) {
    %c0_i32 = arith.constant 0 : i32
    %c0_i32_0 = arith.constant 0 : i32
    %c0_i32_1 = arith.constant 0 : i32
    %c0_i32_2 = arith.constant 0 : i32
    return %c0_i32, %c0_i32_0, %c0_i32_1 : i32, i32, i32
  }
  func.func @transform_17(%arg0: i32) -> (i32, i32, i32) {
    %c0_i32 = arith.constant 0 : i32
    %c0_i32_0 = arith.constant 0 : i32
    %c0_i32_1 = arith.constant 0 : i32
    %c0_i32_2 = arith.constant 0 : i32
    return %c0_i32, %c0_i32_0, %c0_i32_1 : i32, i32, i32
  }
  func.func @transform_18(%arg0: i32) -> (i32, i32, i32) {
    %c0_i32 = arith.constant 0 : i32
    %c0_i32_0 = arith.constant 0 : i32
    %c0_i32_1 = arith.constant 0 : i32
    %c0_i32_2 = arith.constant 0 : i32
    return %c0_i32, %c0_i32_0, %c0_i32_1 : i32, i32, i32
  }
  func.func @transform_19(%arg0: i32) -> (i32, i32, i32) {
    %c0_i32 = arith.constant 0 : i32
    %c0_i32_0 = arith.constant 0 : i32
    %c0_i32_1 = arith.constant 0 : i32
    %c0_i32_2 = arith.constant 0 : i32
    return %c0_i32, %c0_i32_0, %c0_i32_1 : i32, i32, i32
  }
  func.func @transform_20(%arg0: i32) -> (i32, i32, i32) {
    %c0_i32 = arith.constant 0 : i32
    %c0_i32_0 = arith.constant 0 : i32
    %c0_i32_1 = arith.constant 0 : i32
    %c0_i32_2 = arith.constant 0 : i32
    return %c0_i32, %c0_i32_0, %c0_i32_1 : i32, i32, i32
  }
  func.func @transform_21(%arg0: i32) -> (i32, i32, i32) {
    %c0_i32 = arith.constant 0 : i32
    %c0_i32_0 = arith.constant 0 : i32
    %c0_i32_1 = arith.constant 0 : i32
    %c0_i32_2 = arith.constant 0 : i32
    return %c0_i32, %c0_i32_0, %c0_i32_1 : i32, i32, i32
  }
  func.func @transform_22(%arg0: i32) -> (i32, i32, i32) {
    %c0_i32 = arith.constant 0 : i32
    %c0_i32_0 = arith.constant 0 : i32
    %c0_i32_1 = arith.constant 0 : i32
    %c0_i32_2 = arith.constant 0 : i32
    return %c0_i32, %c0_i32_0, %c0_i32_1 : i32, i32, i32
  }
  func.func @transform_23(%arg0: i32) -> (i32, i32, i32) {
    %c0_i32 = arith.constant 0 : i32
    %c0_i32_0 = arith.constant 0 : i32
    %c0_i32_1 = arith.constant 0 : i32
    %c0_i32_2 = arith.constant 0 : i32
    return %c0_i32, %c0_i32_0, %c0_i32_1 : i32, i32, i32
  }
  func.func @transform_24(%arg0: i32) -> (i32, i32, i32) {
    %c0_i32 = arith.constant 0 : i32
    %c0_i32_0 = arith.constant 0 : i32
    %c0_i32_1 = arith.constant 0 : i32
    %c0_i32_2 = arith.constant 0 : i32
    return %c0_i32, %c0_i32_0, %c0_i32_1 : i32, i32, i32
  }
  func.func @transform_25(%arg0: i32) -> (i32, i32, i32) {
    %c0_i32 = arith.constant 0 : i32
    %c0_i32_0 = arith.constant 0 : i32
    %c0_i32_1 = arith.constant 0 : i32
    %c0_i32_2 = arith.constant 0 : i32
    return %c0_i32, %c0_i32_0, %c0_i32_1 : i32, i32, i32
  }
  func.func @transform_26(%arg0: i32) -> (i32, i32, i32) {
    %c0_i32 = arith.constant 0 : i32
    %c0_i32_0 = arith.constant 0 : i32
    %c0_i32_1 = arith.constant 0 : i32
    %c0_i32_2 = arith.constant 0 : i32
    return %c0_i32, %c0_i32_0, %c0_i32_1 : i32, i32, i32
  }
  func.func @transform_27(%arg0: i32) -> (i32, i32, i32) {
    %c0_i32 = arith.constant 0 : i32
    %c0_i32_0 = arith.constant 0 : i32
    %c0_i32_1 = arith.constant 0 : i32
    %c0_i32_2 = arith.constant 0 : i32
    return %c0_i32, %c0_i32_0, %c0_i32_1 : i32, i32, i32
  }
  func.func @transform_28(%arg0: i32) -> (i32, i32, i32) {
    %c0_i32 = arith.constant 0 : i32
    %c0_i32_0 = arith.constant 0 : i32
    %c0_i32_1 = arith.constant 0 : i32
    %c0_i32_2 = arith.constant 0 : i32
    return %c0_i32, %c0_i32_0, %c0_i32_1 : i32, i32, i32
  }
  func.func @transform_29(%arg0: i32) -> (i32, i32, i32) {
    %c0_i32 = arith.constant 0 : i32
    %c0_i32_0 = arith.constant 0 : i32
    %c0_i32_1 = arith.constant 0 : i32
    %c0_i32_2 = arith.constant 0 : i32
    return %c0_i32, %c0_i32_0, %c0_i32_1 : i32, i32, i32
  }
  func.func @transform_30(%arg0: i32) -> (i32, i32, i32) {
    %c0_i32 = arith.constant 0 : i32
    %c0_i32_0 = arith.constant 0 : i32
    %c0_i32_1 = arith.constant 0 : i32
    %c0_i32_2 = arith.constant 0 : i32
    return %c0_i32, %c0_i32_0, %c0_i32_1 : i32, i32, i32
  }
  func.func @transform_31(%arg0: i32) -> (i32, i32, i32) {
    %c0_i32 = arith.constant 0 : i32
    %c0_i32_0 = arith.constant 0 : i32
    %c0_i32_1 = arith.constant 0 : i32
    %c0_i32_2 = arith.constant 0 : i32
    return %c0_i32, %c0_i32_0, %c0_i32_1 : i32, i32, i32
  }
  func.func @transform_32(%arg0: i32) -> (i32, i32, i32) {
    %c0_i32 = arith.constant 0 : i32
    %c0_i32_0 = arith.constant 0 : i32
    %c0_i32_1 = arith.constant 0 : i32
    %c0_i32_2 = arith.constant 0 : i32
    return %c0_i32, %c0_i32_0, %c0_i32_1 : i32, i32, i32
  }
  func.func @transform_33(%arg0: i32) -> (i32, i32, i32) {
    %c0_i32 = arith.constant 0 : i32
    %c0_i32_0 = arith.constant 0 : i32
    %c0_i32_1 = arith.constant 0 : i32
    %c0_i32_2 = arith.constant 0 : i32
    return %c0_i32, %c0_i32_0, %c0_i32_1 : i32, i32, i32
  }
  func.func @transform_34(%arg0: i32) -> (i32, i32, i32) {
    %c0_i32 = arith.constant 0 : i32
    %c0_i32_0 = arith.constant 0 : i32
    %c0_i32_1 = arith.constant 0 : i32
    %c0_i32_2 = arith.constant 0 : i32
    return %c0_i32, %c0_i32_0, %c0_i32_1 : i32, i32, i32
  }
  func.func @transform_35(%arg0: i32) -> (i32, i32) {
    %c0_i32 = arith.constant 0 : i32
    %c0_i32_0 = arith.constant 0 : i32
    %c0_i32_1 = arith.constant 0 : i32
    return %c0_i32, %c0_i32_0 : i32, i32
  }
  func.func @transform_36(%arg0: i32) -> (i32, i32) {
    %c0_i32 = arith.constant 0 : i32
    %c0_i32_0 = arith.constant 0 : i32
    %c0_i32_1 = arith.constant 0 : i32
    return %c0_i32, %c0_i32_0 : i32, i32
  }
  func.func @transform_37(%arg0: i32) -> (i32, i32, i32) {
    %c0_i32 = arith.constant 0 : i32
    %c0_i32_0 = arith.constant 0 : i32
    %c0_i32_1 = arith.constant 0 : i32
    return %arg0, %c0_i32, %c0_i32_0 : i32, i32, i32
  }
}

</mosaic_0001>

<bundles_post_ra>
// kernel: age_forward.1
= control target key start
LH: loop header
LB: loop body
LE: loop exit
PB: predicated region body
PF: predicated region fallthrough
CT: control target
= control target key end

     0   :  { %s9096_s6 = smov 1   ;;  %s9097_s10 = smov 2   ;;  %s10155_s0 = inlined_call_operand.smem [shape: u32[38], index: -1, kind: input, shape index: {}] }
   0x1   :  { %s9158_s5 = sld [smem:[%s10155_s0]]   ;;  %s9098_s14 = smov 3  }
   0x2   :  { %s9163_s9 = sld [smem:[%s10155_s0 + %s9096_s6]]   ;;  %s9099_s18 = smov 4  }
   0x3   :  { %s9168_s13 = sld [smem:[%s10155_s0 + %s9097_s10]]   ;;  %s9100_s22 = smov 5  }
   0x4   :  { %s9173_s17 = sld [smem:[%s10155_s0 + %s9098_s14]]   ;;  %s9101_s26 = smov 6  }
   0x5   :  { %s9178_s21 = sld [smem:[%s10155_s0 + %s9099_s18]]   ;;  %s9102_s30 = smov 7  }
   0x6   :  { %s9183_s25 = sld [smem:[%s10155_s0 + %s9100_s22]]   ;;  %s9103_s4 = smov 8  }
   0x7   :  { %10219 = sst [smem:[#allocation2_spill]] %s9158_s5  ;;  %s9104_s10 = smov 9  }
   0x8   :  { %10220 = sst [smem:[#allocation3_spill]] %s9163_s9  ;;  %s9105_s15 = smov 10  }
   0x9   :  { %10221 = sst [smem:[#allocation4_spill]] %s9168_s13  ;;  %s9106_s20 = smov 11  }
   0xa   :  { %10222 = sst [smem:[#allocation5_spill]] %s9173_s17  ;;  %s9108_s1 = smov 13  }
   0xb   :  { %10223 = sst [smem:[#allocation6_spill]] %s9178_s21  ;;  %s9109_s7 = smov 14  }
   0xc   :  { %10224 = sst [smem:[#allocation7_spill]] %s9183_s25  ;;  %s9111_s22 = smov 16  }
   0xd   :  { %s9188_s29 = sld [smem:[%s10155_s0 + %s9101_s26]]   ;;  %s9107_s26 = smov 12  }
   0xe   :  { %s9193_s3 = sld [smem:[%s10155_s0 + %s9102_s30]]   ;;  %s9112_s28 = smov 17  }
   0xf   :  { %s9198_s8 = sld [smem:[%s10155_s0 + %s9103_s4]]  }
  0x10   :  { %s9203_s14 = sld [smem:[%s10155_s0 + %s9104_s10]]  }
  0x11   :  { %s9208_s19 = sld [smem:[%s10155_s0 + %s9105_s15]]   ;;  %s9110_s15 = smov 15  }
  0x12   :  { %s9213_s24 = sld [smem:[%s10155_s0 + %s9106_s20]]  }
  0x13   :  { %10225 = sst [smem:[#allocation8_spill]] %s9188_s29 }
  0x14   :  { %10226 = sst [smem:[#allocation9_spill]] %s9193_s3 }
  0x15   :  { %10227 = sst [smem:[#allocation10_spill]] %s9198_s8 }
  0x16   :  { %10228 = sst [smem:[#allocation11_spill]] %s9203_s14 }
  0x17   :  { %10229 = sst [smem:[#allocation12_spill]] %s9208_s19 }
  0x18   :  { %10230 = sst [smem:[#allocation13_spill]] %s9213_s24 }
  0x19   :  { %s9218_s30 = sld [smem:[%s10155_s0 + %s9107_s26]]  }
  0x1a   :  { %s9223_s6 = sld [smem:[%s10155_s0 + %s9108_s1]]  }
  0x1b   :  { %s9228_s12 = sld [smem:[%s10155_s0 + %s9109_s7]]   ;;  %s9113_s7 = smov 18  }
  0x1c   :  { %s9233_s20 = sld [smem:[%s10155_s0 + %s9110_s15]]   ;;  %s9114_s15 = smov 19  }
  0x1d   :  { %s9238_s27 = sld [smem:[%s10155_s0 + %s9111_s22]]   ;;  %s9115_s22 = smov 20  }
  0x1e   :  { %s9243_s4 = sld [smem:[%s10155_s0 + %s9112_s28]]   ;;  %s9116_s28 = smov 21  }
  0x1f   :  { %10231 = sst [smem:[#allocation14_spill]] %s9218_s30 }
  0x20   :  { %10232 = sst [smem:[#allocation15_spill]] %s9223_s6 }
  0x21   :  { %10233 = sst [smem:[#allocation16_spill]] %s9228_s12 }
  0x22   :  { %10234 = sst [smem:[#allocation17_spill]] %s9233_s20 }
  0x23   :  { %10235 = sst [smem:[#allocation18_spill]] %s9238_s27 }
  0x24   :  { %10236 = sst [smem:[#allocation19_spill]] %s9243_s4 }
  0x25   :  { %s9248_s13 = sld [smem:[%s10155_s0 + %s9113_s7]]   ;;  %s9117_s7 = smov 22  }
  0x26   :  { %s9253_s9 = sld [smem:[%s10155_s0 + %s9114_s15]]   ;;  %s9118_s15 = smov 23  }
  0x27   :  { %s9258_s27 = sld [smem:[%s10155_s0 + %s9115_s22]]   ;;  %s9119_s22 = smov 24  }
  0x28   :  { %s9263_s4 = sld [smem:[%s10155_s0 + %s9116_s28]]   ;;  %s9120_s28 = smov 25  }
  0x2b   :  { %10237 = sst [smem:[#allocation20_spill]] %s9248_s13 }
  0x2c   :  { %10238 = sst [smem:[#allocation21_spill]] %s9253_s9 }
  0x2d   :  { %10239 = sst [smem:[#allocation22_spill]] %s9258_s27 }
  0x2e   :  { %10240 = sst [smem:[#allocation23_spill]] %s9263_s4 }
  0x2f   :  { %s9268_s13 = sld [smem:[%s10155_s0 + %s9117_s7]]   ;;  %s9121_s7 = smov 26  }
  0x30   :  { %s9273_s9 = sld [smem:[%s10155_s0 + %s9118_s15]]   ;;  %s9122_s15 = smov 27  }
  0x31   :  { %s9278_s27 = sld [smem:[%s10155_s0 + %s9119_s22]]   ;;  %s9123_s22 = smov 28  }
  0x32   :  { %s9283_s4 = sld [smem:[%s10155_s0 + %s9120_s28]]   ;;  %s9124_s28 = smov 29  }
  0x35   :  { %10241 = sst [smem:[#allocation24_spill]] %s9268_s13 }
  0x36   :  { %10242 = sst [smem:[#allocation25_spill]] %s9273_s9 }
  0x37   :  { %10243 = sst [smem:[#allocation26_spill]] %s9278_s27 }
  0x38   :  { %10244 = sst [smem:[#allocation27_spill]] %s9283_s4 }
  0x39   :  { %s9288_s13 = sld [smem:[%s10155_s0 + %s9121_s7]]   ;;  %s9125_s7 = smov 30  }
  0x3a   :  { %s9293_s9 = sld [smem:[%s10155_s0 + %s9122_s15]]   ;;  %s9126_s15 = smov 31  }
  0x3b   :  { %s9298_s27 = sld [smem:[%s10155_s0 + %s9123_s22]]   ;;  %s9127_s22 = smov 32  }
  0x3c   :  { %s9303_s4 = sld [smem:[%s10155_s0 + %s9124_s28]]   ;;  %s9128_s28 = smov 33  }
  0x3f   :  { %10245 = sst [smem:[#allocation28_spill]] %s9288_s13 }
  0x40   :  { %10246 = sst [smem:[#allocation29_spill]] %s9293_s9 }
  0x41   :  { %10247 = sst [smem:[#allocation30_spill]] %s9298_s27 }
  0x42   :  { %10248 = sst [smem:[#allocation31_spill]] %s9303_s4 }
  0x43   :  { %s9308_s13 = sld [smem:[%s10155_s0 + %s9125_s7]]   ;;  %s9129_s7 = smov 34  }
  0x44   :  { %s9313_s9 = sld [smem:[%s10155_s0 + %s9126_s15]]   ;;  %s9130_s15 = smov 35  }
  0x45   :  { %s9318_s27 = sld [smem:[%s10155_s0 + %s9127_s22]]   ;;  %s9131_s22 = smov 36  }
  0x46   :  { %s9323_s4 = sld [smem:[%s10155_s0 + %s9128_s28]]   ;;  %s9132_s28 = smov 37  }
  0x49   :  { %10249 = sst [smem:[#allocation32_spill]] %s9308_s13 }
  0x4a   :  { %10250 = sst [smem:[#allocation33_spill]] %s9313_s9 }
  0x4b   :  { %10251 = sst [smem:[#allocation34_spill]] %s9318_s27 }
  0x4c   :  { %10252 = sst [smem:[#allocation35_spill]] %s9323_s4 }
  0x4d   :  { %s9328_s13 = sld [smem:[%s10155_s0 + %s9129_s7]]   ;;  %s9345_s7 = smov 0  }
  0x4e   :  { %s9333_s9 = sld [smem:[%s10155_s0 + %s9130_s15]]  }
  0x4f   :  { %s9338_s27 = sld [smem:[%s10155_s0 + %s9131_s22]]  }
  0x50   :  { %s9343_s4 = sld [smem:[%s10155_s0 + %s9132_s28]]  }
  0x54   :  { %10253 = sst [smem:[#allocation36_spill]] %s9333_s9 }
  0x55   :  { %10254 = sst [smem:[#allocation37_spill]] %s9338_s27 }
  0x56   :  { %10255 = sst [smem:[#allocation38_spill]] %s9343_s4 }
  0x57 LB: > { %s10256_s30 = sld [smem:[#allocation14_spill]]  ;;  %s10257_s29 = sld [smem:[#allocation8_spill]]  ;;  %s9094_s7 = sphi %s9345_s7, %s85_s7  }
  0x58   : > { %s10258_s25 = sld [smem:[#allocation7_spill]]  ;;  %s10259_s24 = sld [smem:[#allocation13_spill]] }
  0x59   : > { %s10260_s20 = sld [smem:[#allocation17_spill]]  ;;  %s10261_s19 = sld [smem:[#allocation12_spill]] }
  0x5a   : > { %s10262_s14 = sld [smem:[#allocation11_spill]]  ;;  %s10263_s12 = sld [smem:[#allocation16_spill]] }
  0x5b   : > { %s10264_s8 = sld [smem:[#allocation10_spill]]  ;;  %s10265_s6 = sld [smem:[#allocation15_spill]] }
  0x5c   : > { %s10266_s3 = sld [smem:[#allocation9_spill]]  ;;  %10267 = sst [smem:[#allocation39_spill]] %s9094_s7 }
  0x5d   : > { %s7738_s10 = sadd.s32 4294967295, %s9094_s7   ;;  %p7742_p0 = scmp.ge.s32.totalorder %s9094_s7, 1 }
  0x5e   : > { %p1034_p1 = scmp.lt.s32.totalorder %s9094_s7, 3 }
  0x60   : > { %p1035_p2 = pnand %p7742_p0, %p1034_p1 }
  0x62   : > { %1038 = sbr.rel (%p1035_p2) target bundleno = 14035 (0x36d3), region = 168 }
  0x69   : > { %s10268_s17 = sld [smem:[#allocation5_spill]]  ;;  %s10269_s5 = sld [smem:[#allocation2_spill]]  ;;  %v1232_v1 = vld [vmem:[%s10258_s25] sm:$0xff]  ;;  %v1233_v2 = vld [vmem:[%s10258_s25 + $0x8] sm:$0xff]  ;;  %v9133_v3 = vmov 0.0|0.0   ;;  %vm1150_vm0 = vcmask 64512  }
  0x6a   : > { %p1128_p3 = scmp.lt.s32.totalorder %s7738_s10, 1  ;;  %8724 = vmatprep.subr.bf16.mxu1 %v9133_v3  ;;  %v8725_v4 = vpack.c.bf16 %v1233_v2, %v1232_v1  ;;  %s10271_s21 = sld [smem:[#allocation6_spill]]  ;;  %v1234_v7 = vld [vmem:[%s10258_s25 + $0x10] sm:$0xff]  ;;  %v1235_v8 = vld [vmem:[%s10258_s25 + $0x18] sm:$0xff]  ;;  %vm9134_vm1 = vmmov 0   ;;  %v9135_v10 = vmov 0.0  }
  0x6b   : > { %v8728_v9 = vpack.c.bf16 %v1235_v8, %v1234_v7  ;;  %8207 = vmatprep.mubr.msk.f32.mxu1 %vm9134_vm1, %v9135_v10  ;;  %vm1248_vm2 = vcmask 261120   ;;  %v7749_v16 = vld [vmem:[%s10257_s29] ss:$0 sm:$0xff]  ;;  %s10178_s15 = smov 64   ;;  %s10202_s16 = smov 96   ;;  %vm1996_vm3 = vcmask 130048  }
  0x6c   : > { %s10318_s10 = smov (!%p1128_p3, %s7738_s10), 1  ;;  %8726 = vmatpush3.bf16.msra.mxu1 %v8725_v4  ;;  %s10198_s18 = smov 88   ;;  %vm1998_vm4 = vcmask 195584   ;;  %vm2210_vm5 = vcmask 523264   ;;  %vm3577_vm7 = vcmask 55296   ;;  %vm3595_vm8 = vcmask 1046528  }
  0x6d   : > { %10270 = sst [smem:[#allocation40_spill]] %s10318_s10  ;;  %s7963_s0 = sshll.u32 %s10318_s10, 4  ;;  %8727 = vmatprep.subr.bf16.mxu1 %v9133_v3  ;;  %vm3591_vm9 = vcmask 56320   ;;  %vm4266_vm10 = vcmask 260096   ;;  %vm4552_vm11 = vcmask 63488   ;;  %vm7640_vm13 = vcmask 0  }
  0x6e   : > { %s10200_s22 = smov 120   ;;  %s10196_s23 = smov 80  }
  0x6f   : > { %v1142_v0 = vld [vmem:[%s10268_s17] sm:$0xff]  ;;  %s1132_s11 = scalar_lea.vmem %s10269_s5, %s7963_s0  ;;  %s10188_s26 = smov 72  }
  0x70   : > { %8194 = vmatprep.subr.mxu0 %v1142_v0  ;;  %v1140_v5 = vld [vmem:[%s1132_s11] sm:$0xff]  ;;  %v1141_v6 = vld [vmem:[%s1132_s11 + $0x8] sm:$0x7f]  ;;  %8729 = vmatpush3.bf16.msra.mxu1 %v8728_v9  ;;  %s10186_s28 = smov 112   ;;  %s10184_s1 = smov 104  }
  0x71   : > { %8195 = vmatpush3.msra.mxu0 %v1142_v0  ;;  %8196 = vmatprep.mubr.msk.f32.mxu0 %vm1150_vm0, %v1140_v5  ;;  %v7746_v11 = vld [vmem:[%s10271_s21] ss:$0 sm:$0xff]  ;;  %s10182_s2 = smov 56   ;;  %s10176_s0 = smov 48  }
  0x72   : > { %8197 = vmatmul.mubr.msk.f32.vlgmr.msra.gmra.mrb[0].mxu0 %vm1150_vm0, %v1141_v6  ;;  %8210 = vmatprep.subr.mxu0 %v9135_v10  ;;  %s10174_s11 = smov 40   ;;  %s10280_s5 = smov 112  }
  0x73   : > { %8212 = vmatprep.mubr.msk.f32.mxu0 %vm9134_vm1, %v9135_v10  ;;  %8230 = vmatprep.subr.mxu1 %v9135_v10  ;;  %s10291_s17 = sld [smem:[#allocation26_spill]]  ;;  %s10293_s21 = sld [smem:[#allocation24_spill]] }
  0x74   : > { %s10300_s7 = sld [smem:[#allocation33_spill]]  ;;  %s10302_s10 = sld [smem:[#allocation29_spill]] }
  0x75   : > { %s10303_s27 = sld [smem:[#allocation30_spill]] }
  0x7a   : > { %s10301_s4 = smov %s10300_s7 }
 0x145   : > { %v8198_v12 = vpop.f32.mrb[0].mxu0 }
 0x146   : > { %v9373_v13 = vadd.f32 %v8198_v12, %v7746_v11  ;;  %v1223_v14 = vpop.f32.mrb[1].mxu0 }
 0x147   : > { %v9375_v15 = vadd.f32 %v7746_v11, %v1223_v14 }
 0x149   : > { %8208 = vmatmul.mubr.msk.f32.vlgmr.msra.gmra.mrb[0].mxu1 %vm1248_vm2, %v9375_v15 }
 0x14a   : > { %8232 = vmatprep.mubr.msk.f32.mxu1 %vm9134_vm1, %v9135_v10 }
 0x21c   : > { %v1318_v17 = vpop.f32.mrb[0].mxu1 }
 0x21d   : > { %v9382_v18 = vadd.f32 %v7749_v16, %v1318_v17  ;;  %v8209_v19 = vpop.f32.mrb[1].mxu1 }
 0x21e   : > { %v1238_v19 = vld [vmem:[%s10266_s3 + $0x8] sm:$0xff] }
 0x21f   : > { %1412 = vrot.lane.b32.xlu1 %v9382_v18, %s10178_s15  ;;  %1324 = vrot.lane.b32.xlu0 %v9382_v18, %s10202_s16  ;;  %v1322_v20 = vmul.f32 0.35355338, %v9382_v18  ;;  %s10180_s15 = smov 24  }
 0x223   : > { %1490 = vrot.lane.b32.xlu1 %v9382_v18, %s10198_s18 }
 0x227   : > { %1488 = vrot.lane.b32.xlu1 %v1322_v20, %s10200_s22 }
 0x22b   : > { %1655 = vrot.lane.b32.xlu1 %v9382_v18, %s10196_s23 }
 0x291   : > { %v1413_v21 = vpop.permute.xlu1 %1412  ;;  %v1325_v22 = vpop.permute.xlu0 %1324 }
 0x292   : > { %8211 = vmatpush3.xpose.msk.msra.mxu0 %vm1150_vm0, %v1325_v22  ;;  %v1240_v22 = vld [vmem:[%s10266_s3 + $0x18] sm:$0xff] }
 0x293   : > { %8215 = vmatprep.subr.mxu0 %v9135_v10 }
 0x295   : > { %v1491_v23 = vpop.permute.xlu1 %1490  ;;  %8213 = vmatmul.mubr.msk.f32.vlgmr.msra.gmra.mrb[2].mxu0 %vm1150_vm0, %v1322_v20 }
 0x296   : > { %8216 = vmatpush3.msra.mxu0 %v1413_v21  ;;  %8217 = vmatprep.mubr.msk.f32.mxu0 %vm9134_vm1, %v9135_v10  ;;  %v1239_v21 = vld [vmem:[%s10266_s3 + $0x10] sm:$0xff] }
 0x297   : > { %8220 = vmatprep.subr.mxu0 %v9135_v10 }
 0x299   : > { %v1489_v24 = vpop.permute.xlu1 %1488 }
 0x29d   : > { %v1656_v25 = vpop.permute.xlu1 %1655 }
 0x29e   : > { %8231 = vmatpush3.xpose.msk.msra.mxu1 %vm1150_vm0, %v1656_v25 }
 0x29f   : > { %8240 = vmatprep.subr.mxu1 %v9135_v10 }
 0x368   : > { %v1397_v26 = vpop.f32.mrb[2].mxu0 }
 0x369   : > { %v8214_v27 = vpop.f32.mrb[3].mxu0  ;;  %v1401_v28 = vsel %vm1150_vm0, %v1397_v26, -inf }
 0x36a   : > { %1402 = vmax.xlane.f32.xlu0 %v1401_v28 }
 0x380   : > { %1820 = vrot.lane.b32.xlu0 %v9382_v18, %s10188_s26 }
 0x3f7   : > { %v1403_v29 = vpop.xlane.xlu0 %1402 }
 0x3f8   : > { %v1404_v30 = vsub.f32 %v1397_v26, %v1403_v29 }
 0x3fa   : > { %v1405_v31 = vmul.f32 1.442695, %v1404_v30 }
 0x3fb   : > { %v1821_v36 = vpop.permute.xlu0 %1820 }
 0x3fc   : > { %8968 = vpow2.f32 %v1405_v31 }
 0x406   : > { %v8969_v32 = vpop.eup %8968 }
 0x407   : > { %v1407_v33 = vsel %vm1150_vm0, %v8969_v32, 0.0 }
 0x408   : > { %1408 = vadd.xlane.f32.xlu1 %v1407_v33 }
 0x419   : > { %1653 = vrot.lane.b32.xlu1 %v1322_v20, %s10186_s28 }
 0x41d   : > { %1818 = vrot.lane.b32.xlu1 %v1322_v20, %s10184_s1 }
 0x495   : > { %v1409_v34 = vpop.xlane.xlu1 %1408 }
 0x496   : > { %8970 = vrcp.f32 %v1409_v34 }
 0x499   : > { %v1654_v35 = vpop.permute.xlu1 %1653 }
 0x49a   : > { %8233 = vmatmul.mubr.msk.f32.vlgmr.msra.gmra.mrb[2].mxu1 %vm1150_vm0, %v1654_v35 }
 0x49b   : > { %8241 = vmatpush3.xpose.msk.msra.mxu1 %vm1150_vm0, %v1821_v36  ;;  %8242 = vmatprep.mubr.msk.f32.mxu1 %vm9134_vm1, %v9135_v10  ;;  %v7763_v36 = vld [vmem:[%s10264_s8] ss:$0 sm:$0xff] }
 0x49c   : > { %8730 = vmatprep.subr.bf16.mxu1 %v9133_v3 }
 0x49d   : > { %v1819_v37 = vpop.permute.xlu1 %1818 }
 0x49e   : > { %8243 = vmatmul.mubr.msk.f32.vlgmr.msra.gmra.mrb[4].mxu1 %vm1150_vm0, %v1819_v37 }
 0x49f   : > { %8258 = vmatprep.mubr.msk.f32.mxu1 %vm9134_vm1, %v9135_v10 }
 0x4a0   : > { %v8971_v38 = vpop.eup %8970 }
 0x4a1   : > { %v1411_v39 = vmul.f32 %v8971_v38, %v8969_v32 }
 0x4a3   : > { %8218 = vmatmul.mubr.msk.f32.vlgmr.msra.gmra.mrb[4].mxu0 %vm1150_vm0, %v1411_v39 }
 0x4a4   : > { %8221 = vmatpush3.xpose.msk.msra.mxu0 %vm1150_vm0, %v1491_v23  ;;  %8222 = vmatprep.mubr.msk.f32.mxu0 %vm9134_vm1, %v9135_v10  ;;  %v8734_v23 = vpack.c.bf16 %v1240_v22, %v1239_v21 }
 0x4a5   : > { %8225 = vmatprep.subr.mxu0 %v9135_v10 }
 0x4a7   : > { %8223 = vmatmul.mubr.msk.f32.vlgmr.msra.gmra.mrb[6].mxu0 %vm1150_vm0, %v1489_v24 }
 0x4a8   : > { %8227 = vmatprep.mubr.msk.f32.mxu0 %vm9134_vm1, %v9135_v10 }
 0x56d   : > { %v1727_v40 = vpop.f32.mrb[2].mxu1 }
 0x56e   : > { %v8234_v41 = vpop.f32.mrb[3].mxu1  ;;  %v1731_v42 = vsel %vm1150_vm0, %v1727_v40, -inf }
 0x56f   : > { %1732 = vmax.xlane.f32.xlu0 %v1731_v42 }
 0x571   : > { %v1892_v43 = vpop.f32.mrb[4].mxu1 }
 0x572   : > { %v8244_v44 = vpop.f32.mrb[5].mxu1  ;;  %v1896_v50 = vsel %vm1150_vm0, %v1892_v43, -inf }
 0x576   : > { %v9425_v45 = vpop.f32.mrb[4].mxu0 }
 0x577   : > { %v8219_v46 = vpop.f32.mrb[5].mxu0 }
 0x57a   : > { %v1562_v47 = vpop.f32.mrb[6].mxu0 }
 0x57b   : > { %v8224_v48 = vpop.f32.mrb[7].mxu0  ;;  %v1566_v49 = vsel %vm1150_vm0, %v1562_v47, -inf }
 0x57c   : > { %1567 = vmax.xlane.f32.xlu1 %v1566_v49  ;;  %v2111_v48 = vld [vmem:[%s10259_s24 + $0x8] sm:$0xff] }
 0x580   : > { %1897 = vmax.xlane.f32.xlu1 %v1896_v50  ;;  %v2113_v50 = vld [vmem:[%s10259_s24 + $0x18] sm:$0xff] }
 0x5fc   : > { %v1733_v51 = vpop.xlane.xlu0 %1732 }
 0x5fd   : > { %v1734_v52 = vsub.f32 %v1727_v40, %v1733_v51 }
 0x5ff   : > { %v1735_v53 = vmul.f32 1.442695, %v1734_v52  ;;  %v2195_v52 = vld [vmem:[%s10265_s6] sm:$0xff] }
 0x601   : > { %8972 = vpow2.f32 %v1735_v53  ;;  %v2196_v53 = vld [vmem:[%s10265_s6 + $0x8] sm:$0xff] }
 0x609   : > { %v1568_v54 = vpop.xlane.xlu1 %1567 }
 0x60a   : > { %v1569_v62 = vsub.f32 %v1562_v47, %v1568_v54  ;;  %v2110_v47 = vld [vmem:[%s10259_s24] sm:$0xff]  ;;  %v2197_v54 = vld [vmem:[%s10265_s6 + $0x10] sm:$0xff] }
 0x60b   : > { %v8973_v55 = vpop.eup %8972  ;;  %v8737_v49 = vpack.c.bf16 %v2111_v48, %v2110_v47 }
 0x60c   : > { %v1737_v56 = vsel %vm1150_vm0, %v8973_v55, 0.0  ;;  %v1570_v63 = vmul.f32 1.442695, %v1569_v62 }
 0x60d   : > { %1738 = vadd.xlane.f32.xlu1 %v1737_v56  ;;  %v1898_v57 = vpop.xlane.xlu1 %1897  ;;  %v2198_v56 = vld [vmem:[%s10265_s6 + $0x18] sm:$0xff] }
 0x60e   : > { %v1899_v58 = vsub.f32 %v1892_v43, %v1898_v57  ;;  %v8746_v57 = vpack.c.bf16 %v2198_v56, %v2197_v54 }
 0x610   : > { %v1900_v59 = vmul.f32 1.442695, %v1899_v58  ;;  %v2199_v58 = vld [vmem:[%s10265_s6 + $0x20] sm:$0xff] }
 0x612   : > { %8974 = vpow2.f32 %v1900_v59  ;;  %v2200_v59 = vld [vmem:[%s10265_s6 + $0x28] sm:$0xff] }
 0x613   : > { %8976 = vpow2.f32 %v1570_v63 }
 0x61c   : > { %v8975_v60 = vpop.eup %8974 }
 0x61d   : > { %v1902_v61 = vsel %vm1150_vm0, %v8975_v60, 0.0  ;;  %v8977_v0 = vpop.eup %8976 }
 0x61e   : > { %1577 = vrot.lane.b32.xlu1 %v9382_v18, %s10182_s2  ;;  %1903 = vadd.xlane.f32.xlu0 %v1902_v61  ;;  %v1572_v1 = vsel %vm1150_vm0, %v8977_v0, 0.0 }
 0x634   : > { %1742 = vrot.lane.b32.xlu0 %v9382_v18, %s10176_s0  ;;  %s10190_s0 = smov 16  }
 0x642   : > { %1573 = vadd.xlane.f32.xlu1 %v1572_v1  ;;  %v7765_v1 = vld [vmem:[%s10262_s14] ss:$0 sm:$0xff] }
 0x653   : > { %1907 = vrot.lane.b32.xlu1 %v9382_v18, %s10174_s11  ;;  %v1237_v18 = vld [vmem:[%s10266_s3] sm:$0xff]  ;;  %s10192_s11 = smov 8  }
 0x654   : > { %v8731_v20 = vpack.c.bf16 %v1238_v19, %v1237_v18  ;;  %v7769_v18 = vld [vmem:[%s10263_s12] ss:$0 sm:$0xff] }
 0x656   : > { %8732 = vmatpush3.bf16.msra.mxu1 %v8731_v20 }
 0x657   : > { %8733 = vmatprep.subr.bf16.mxu1 %v9133_v3 }
 0x65a   : > { %8735 = vmatpush3.bf16.msra.mxu1 %v8734_v23 }
 0x65b   : > { %8742 = vmatprep.subr.bf16.mxu1 %v9133_v3 }
 0x69a   : > { %v1739_v2 = vpop.xlane.xlu1 %1738 }
 0x69e   : > { %v1578_v4 = vpop.permute.xlu1 %1577 }
 0x69f   : > { %8226 = vmatpush3.msra.mxu0 %v1578_v4  ;;  %v7766_v4 = vld [vmem:[%s10261_s19] ss:$0 sm:$0xff] }
 0x6a0   : > { %8235 = vmatprep.subr.mxu0 %v9135_v10 }
 0x6ab   : > { %v1904_v6 = vpop.xlane.xlu0 %1903 }
 0x6af   : > { %v1743_v11 = vpop.permute.xlu0 %1742 }
 0x6cf   : > { %v1574_v5 = vpop.xlane.xlu1 %1573 }
 0x6d0   : > { %8978 = vrcp.f32 %v1574_v5 }
 0x6d1   : > { %8980 = vrcp.f32 %v1739_v2 }
 0x6d2   : > { %8982 = vrcp.f32 %v1904_v6 }
 0x6d3   : > { %v1908_v16 = vpop.permute.xlu1 %1907 }
 0x6da   : > { %v8979_v7 = vpop.eup %8978 }
 0x6db   : > { %v1576_v8 = vmul.f32 %v8979_v7, %v8977_v0  ;;  %v8981_v9 = vpop.eup %8980  ;;  %v2201_v7 = vld [vmem:[%s10265_s6 + $0x30] sm:$0xff] }
 0x6dc   : > { %v1741_v12 = vmul.f32 %v8981_v9, %v8973_v55  ;;  %v8983_v14 = vpop.eup %8982  ;;  %v8743_v55 = vpack.c.bf16 %v2196_v53, %v2195_v52 }
 0x6dd   : > { %8228 = vmatmul.mubr.msk.f32.vlgmr.msra.gmra.mrb[8].mxu0 %vm1150_vm0, %v1576_v8  ;;  %v1906_v17 = vmul.f32 %v8983_v14, %v8975_v60  ;;  %v8749_v60 = vpack.c.bf16 %v2200_v59, %v2199_v58  ;;  %v2202_v8 = vld [vmem:[%s10265_s6 + $0x38] sm:$0xff] }
 0x6de   : > { %8236 = vmatpush3.msra.mxu0 %v1743_v11  ;;  %8237 = vmatprep.mubr.msk.f32.mxu0 %vm9134_vm1, %v9135_v10  ;;  %v8752_v9 = vpack.c.bf16 %v2202_v8, %v2201_v7  ;;  %v7767_v11 = vld [vmem:[%s10256_s30] ss:$0 sm:$0xff] }
 0x6df   : > { %8245 = vmatprep.subr.mxu0 %v9135_v10 }
 0x6e1   : > { %8238 = vmatmul.mubr.msk.f32.vlgmr.msra.gmra.mrb[10].mxu0 %vm1150_vm0, %v1741_v12 }
 0x6e2   : > { %8246 = vmatpush3.msra.mxu0 %v1908_v16  ;;  %8247 = vmatprep.mubr.msk.f32.mxu0 %vm9134_vm1, %v9135_v10 }
 0x6e3   : > { %8736 = vmatprep.subr.bf16.mxu0 %v9133_v3 }
 0x6e5   : > { %8248 = vmatmul.mubr.msk.f32.vlgmr.msra.gmra.mrb[12].mxu0 %vm1150_vm0, %v1906_v17 }
 0x6e6   : > { %8269 = vmatprep.mubr.msk.f32.mxu0 %vm9134_vm1, %v9135_v10  ;;  %8738 = vmatpush3.bf16.msra.mxu0 %v8737_v49 }
 0x6e7   : > { %8739 = vmatprep.subr.bf16.mxu0 %v9133_v3 }
 0x7b0   : > { %v1649_v24 = vpop.f32.mrb[8].mxu0 }
 0x7b1   : > { %1984 = vrot.lane.b32.xlu1 %v1649_v24, %s10192_s11  ;;  %v8229_v25 = vpop.f32.mrb[9].mxu0 }
 0x7b4   : > { %v1814_v26 = vpop.f32.mrb[10].mxu0 }
 0x7b5   : > { %1988 = vrot.lane.b32.xlu0 %v1814_v26, %s10190_s0  ;;  %v8239_v27 = vpop.f32.mrb[11].mxu0 }
 0x7b8   : > { %v1979_v28 = vpop.f32.mrb[12].mxu0 }
 0x7b9   : > { %1992 = vrot.lane.b32.xlu1 %v1979_v28, %s10180_s15  ;;  %v8249_v29 = vpop.f32.mrb[13].mxu0  ;;  %s10272_s15 = sld [smem:[#allocation18_spill]] }
 0x7ba   : > { %v7773_v29 = vld [vmem:[%s10258_s25 + $0x20] sm:$0xff] }
 0x823   : > { %v1985_v30 = vpop.permute.xlu1 %1984 }
 0x824   : > { %v1995_v32 = vsel %vm1150_vm0, %v9425_v45, %v1985_v30  ;;  %v7774_v30 = vld [vmem:[%s10258_s25 + $0x28] sm:$0xff] }
 0x827   : > { %v1989_v31 = vpop.permute.xlu0 %1988 }
 0x828   : > { %v1997_v33 = vsel %vm1996_vm3, %v1995_v32, %v1989_v31  ;;  %v8755_v31 = vpack.c.bf16 %v7774_v30, %v7773_v29  ;;  %v7775_v32 = vld [vmem:[%s10258_s25 + $0x30] sm:$0xff] }
 0x82b   : > { %v1993_v34 = vpop.permute.xlu1 %1992 }
 0x82c   : > { %v1999_v35 = vsel %vm1998_vm4, %v1997_v33, %v1993_v34  ;;  %v7776_v33 = vld [vmem:[%s10258_s25 + $0x38] sm:$0xff]  ;;  %s10297_s25 = sld [smem:[#allocation27_spill]] }
 0x82d   : > { %8259 = vmatmul.mubr.msk.f32.vlgmr.msra.gmra.mrb[6].mxu1 %vm1248_vm2, %v1999_v35  ;;  %v8758_v34 = vpack.c.bf16 %v7776_v33, %v7775_v32 }
 0x82e   : > { %8288 = vmatprep.mubr.msk.f32.mxu1 %vm9134_vm1, %v9135_v10  ;;  %8744 = vmatpush3.bf16.msra.mxu1 %v8743_v55 }
 0x82f   : > { %8745 = vmatprep.subr.bf16.mxu1 %v9133_v3 }
 0x832   : > { %8747 = vmatpush3.bf16.msra.mxu1 %v8746_v57 }
 0x833   : > { %8748 = vmatprep.subr.bf16.mxu1 %v9133_v3 }
 0x836   : > { %8750 = vmatpush3.bf16.msra.mxu1 %v8749_v60 }
 0x837   : > { %8751 = vmatprep.subr.bf16.mxu1 %v9133_v3 }
 0x83a   : > { %8753 = vmatpush3.bf16.msra.mxu1 %v8752_v9 }
 0x83b   : > { %8312 = vmatprep.subr.mxu1 %v9135_v10 }
 0x900   : > { %v2075_v37 = vpop.f32.mrb[6].mxu1 }
 0x901   : > { %v2076_v38 = vadd.f32 %v7763_v36, %v2075_v37  ;;  %v8260_v39 = vpop.f32.mrb[7].mxu1 }
 0x902   : > { %v7771_v39 = vld [vmem:[%s10260_s20] ss:$0 sm:$0xff] }
 0x903   : > { %v2079_v40 = vadd.f32 %v2076_v38, %v9375_v15  ;;  %v2112_v15 = vld [vmem:[%s10259_s24 + $0x10] sm:$0xff] }
 0x904   : > { %v8740_v51 = vpack.c.bf16 %v2113_v50, %v2112_v15 }
 0x905   : > { %v2082_v41 = vsel %vm1248_vm2, %v2079_v40, 0.0 }
 0x906   : > { %2083 = vadd.xlane.f32.xlu0 %v2082_v41  ;;  %8741 = vmatpush3.bf16.msra.mxu0 %v8740_v51  ;;  %v7772_v41 = vld [vmem:[%s10272_s15] ss:$0 sm:$0xff] }
 0x907   : > { %8754 = vmatprep.subr.bf16.mxu0 %v9133_v3 }
 0x993   : > { %v2084_v42 = vpop.xlane.xlu0 %2083 }
 0x994   : > { %v2086_v43 = vmul.f32 0.03125, %v2084_v42 }
 0x996   : > { %v2087_v44 = vsub.f32 %v2079_v40, %v2086_v43 }
 0x998   : > { %v2088_v45 = vmul.f32 %v2087_v44, %v2087_v44 }
 0x99a   : > { %v2089_v46 = vsel %vm1248_vm2, %v2088_v45, 0.0 }
 0x99b   : > { %2090 = vadd.xlane.f32.xlu1 %v2089_v46 }
 0xa28   : > { %v2091_v61 = vpop.xlane.xlu1 %2090 }
 0xa29   : > { %v2092_v62 = vmul.f32 0.03125, %v2091_v61 }
 0xa2b   : > { %v2093_v63 = vadd.f32 1e-05, %v2092_v62 }
 0xa2d   : > { %8984 = vrsqrt.f32 %v2093_v63 }
 0xa37   : > { %v8985_v0 = vpop.eup %8984 }
 0xa38   : > { %v2095_v2 = vmul.f32 %v8985_v0, %v2087_v44  ;;  %v7783_v44 = vld [vmem:[%s10257_s29 + $0x1] ss:$0 sm:$0xff]  ;;  %s10298_s29 = sld [smem:[#allocation28_spill]] }
 0xa3a   : > { %v2102_v5 = vmul.f32 %v7765_v1, %v2095_v2 }
 0xa3c   : > { %v2109_v6 = vadd.f32 %v7766_v4, %v2102_v5 }
 0xa3e   : > { %8270 = vmatmul.mubr.msk.f32.vlgmr.msra.gmra.mrb[14].mxu0 %vm1248_vm2, %v2109_v6 }
 0xa3f   : > { %8299 = vmatprep.mubr.msk.f32.mxu0 %vm9134_vm1, %v9135_v10  ;;  %8756 = vmatpush3.bf16.msra.mxu0 %v8755_v31 }
 0xa40   : > { %8757 = vmatprep.subr.bf16.mxu0 %v9133_v3 }
 0xa43   : > { %8759 = vmatpush3.bf16.msra.mxu0 %v8758_v34 }
 0xa44   : > { %8302 = vmatprep.subr.mxu0 %v9135_v10 }
 0xb11   : > { %v2190_v12 = vpop.f32.mrb[14].mxu0 }
 0xb12   : > { %v2191_v14 = vadd.f32 %v7767_v11, %v2190_v12  ;;  %v8271_v16 = vpop.f32.mrb[15].mxu0 }
 0xb14   : > { %v2194_v17 = vmax.f32 %v2191_v14, 0.0 }
 0xb16   : > { %8289 = vmatmul.mubr.msk.f32.vlgmr.msra.gmra.mrb[8].mxu1 %vm2210_vm5, %v2194_v17 }
 0xb17   : > { %8314 = vmatprep.mubr.msk.f32.mxu1 %vm9134_vm1, %v9135_v10 }
 0xbe9   : > { %v2280_v19 = vpop.f32.mrb[8].mxu1 }
 0xbea   : > { %v2281_v20 = vadd.f32 %v7769_v18, %v2280_v19  ;;  %v8290_v21 = vpop.f32.mrb[9].mxu1 }
 0xbec   : > { %v2284_v22 = vadd.f32 %v2281_v20, %v2109_v6 }
 0xbee   : > { %v2287_v23 = vsel %vm1248_vm2, %v2284_v22, 0.0 }
 0xbef   : > { %2288 = vadd.xlane.f32.xlu0 %v2287_v23 }
 0xc7c   : > { %v2289_v24 = vpop.xlane.xlu0 %2288 }
 0xc7d   : > { %v2290_v25 = vmul.f32 0.03125, %v2289_v24 }
 0xc7f   : > { %v2291_v26 = vsub.f32 %v2284_v22, %v2290_v25 }
 0xc81   : > { %v2292_v27 = vmul.f32 %v2291_v26, %v2291_v26 }
 0xc83   : > { %v2293_v28 = vsel %vm1248_vm2, %v2292_v27, 0.0 }
 0xc84   : > { %2294 = vadd.xlane.f32.xlu0 %v2293_v28 }
 0xd11   : > { %v2295_v35 = vpop.xlane.xlu0 %2294 }
 0xd12   : > { %v2296_v36 = vmul.f32 0.03125, %v2295_v35 }
 0xd14   : > { %v2297_v37 = vadd.f32 1e-05, %v2296_v36 }
 0xd16   : > { %8986 = vrsqrt.f32 %v2297_v37 }
 0xd20   : > { %v8987_v38 = vpop.eup %8986 }
 0xd21   : > { %v2299_v40 = vmul.f32 %v8987_v38, %v2291_v26 }
 0xd23   : > { %v2306_v42 = vmul.f32 %v7771_v39, %v2299_v40 }
 0xd25   : > { %v9508_v43 = vadd.f32 %v7772_v41, %v2306_v42 }
 0xd27   : > { %8300 = vmatmul.mubr.msk.f32.vlgmr.msra.gmra.mrb[16].mxu0 %vm1248_vm2, %v9508_v43 }
 0xd28   : > { %8304 = vmatprep.mubr.msk.f32.mxu0 %vm9134_vm1, %v9135_v10 }
 0xdfa   : > { %v2403_v45 = vpop.f32.mrb[16].mxu0 }
 0xdfb   : > { %v9515_v46 = vadd.f32 %v7783_v44, %v2403_v45  ;;  %v8301_v47 = vpop.f32.mrb[17].mxu0  ;;  %v7778_v44 = vld [vmem:[%s10266_s3 + $0x20] sm:$0xff]  ;;  %v7779_v45 = vld [vmem:[%s10266_s3 + $0x28] sm:$0xff] }
 0xdfd   : > { %2575 = vrot.lane.b32.xlu0 %v9515_v46, %s10198_s18  ;;  %2409 = vrot.lane.b32.xlu1 %v9515_v46, %s10202_s16  ;;  %v2407_v48 = vmul.f32 0.35355338, %v9515_v46 }
 0xe01   : > { %2738 = vrot.lane.b32.xlu0 %v2407_v48, %s10186_s28  ;;  %2573 = vrot.lane.b32.xlu1 %v2407_v48, %s10200_s22  ;;  %s10275_s28 = smov 40  }
 0xe05   : > { %2903 = vrot.lane.b32.xlu0 %v2407_v48, %s10184_s1  ;;  %2740 = vrot.lane.b32.xlu1 %v9515_v46, %s10196_s23  ;;  %s10274_s1 = smov 48  }
 0xe09   : > { %2905 = vrot.lane.b32.xlu1 %v9515_v46, %s10188_s26  ;;  %s10276_s26 = smov 24  }
 0xe6f   : > { %v2576_v49 = vpop.permute.xlu0 %2575  ;;  %v2410_v15 = vpop.permute.xlu1 %2409 }
 0xe70   : > { %8303 = vmatpush3.xpose.msk.msra.mxu0 %vm1150_vm0, %v2410_v15  ;;  %8313 = vmatpush3.xpose.msk.msra.mxu1 %vm1150_vm0, %v2576_v49 }
 0xe71   : > { %8322 = vmatprep.subr.mxu1 %v9135_v10  ;;  %8307 = vmatprep.subr.mxu0 %v9135_v10 }
 0xe73   : > { %v2574_v50 = vpop.permute.xlu1 %2573  ;;  %8305 = vmatmul.mubr.msk.f32.vlgmr.msra.gmra.mrb[18].mxu0 %vm1150_vm0, %v2407_v48  ;;  %v2739_v52 = vpop.permute.xlu0 %2738 }
 0xe74   : > { %8315 = vmatmul.mubr.msk.f32.vlgmr.msra.gmra.mrb[10].mxu1 %vm1150_vm0, %v2574_v50  ;;  %8309 = vmatprep.mubr.msk.f32.mxu0 %vm9134_vm1, %v9135_v10  ;;  %v7780_v50 = vld [vmem:[%s10266_s3 + $0x30] sm:$0xff] }
 0xe75   : > { %8324 = vmatprep.mubr.msk.f32.mxu1 %vm9134_vm1, %v9135_v10 }
 0xe77   : > { %v2741_v51 = vpop.permute.xlu1 %2740  ;;  %v2904_v54 = vpop.permute.xlu0 %2903 }
 0xe78   : > { %8323 = vmatpush3.xpose.msk.msra.mxu1 %vm1150_vm0, %v2741_v51  ;;  %v7781_v51 = vld [vmem:[%s10266_s3 + $0x38] sm:$0xff]  ;;  %s10279_s3 = smov 72  }
 0xe79   : > { %8332 = vmatprep.subr.mxu1 %v9135_v10 }
 0xe7b   : > { %8325 = vmatmul.mubr.msk.f32.vlgmr.msra.gmra.mrb[12].mxu1 %vm1150_vm0, %v2739_v52  ;;  %v2906_v53 = vpop.permute.xlu1 %2905  ;;  %v8764_v52 = vpack.c.bf16 %v7781_v51, %v7780_v50 }
 0xe7c   : > { %8333 = vmatpush3.xpose.msk.msra.mxu1 %vm1150_vm0, %v2906_v53  ;;  %8334 = vmatprep.mubr.msk.f32.mxu1 %vm9134_vm1, %v9135_v10 }
 0xe7d   : > { %8760 = vmatprep.subr.bf16.mxu1 %v9133_v3 }
 0xe7f   : > { %8335 = vmatmul.mubr.msk.f32.vlgmr.msra.gmra.mrb[14].mxu1 %vm1150_vm0, %v2904_v54 }
 0xe80   : > { %8350 = vmatprep.mubr.msk.f32.mxu1 %vm9134_vm1, %v9135_v10 }
 0xf46   : > { %v2482_v55 = vpop.f32.mrb[18].mxu0 }
 0xf47   : > { %v8306_v56 = vpop.f32.mrb[19].mxu0  ;;  %v2647_v57 = vpop.f32.mrb[10].mxu1  ;;  %v2486_v58 = vsel %vm1150_vm0, %v2482_v55, -inf }
 0xf48   : > { %2487 = vmax.xlane.f32.xlu1 %v2486_v58  ;;  %v8316_v59 = vpop.f32.mrb[11].mxu1  ;;  %v2651_v60 = vsel %vm1150_vm0, %v2647_v57, -inf }
 0xf49   : > { %2652 = vmax.xlane.f32.xlu0 %v2651_v60 }
 0xf4e   : > { %v2812_v61 = vpop.f32.mrb[12].mxu1 }
 0xf4f   : > { %v8326_v62 = vpop.f32.mrb[13].mxu1  ;;  %v2816_v63 = vsel %vm1150_vm0, %v2812_v61, -inf }
 0xf50   : > { %2817 = vmax.xlane.f32.xlu0 %v2816_v63  ;;  %v7797_v63 = vld [vmem:[%s10264_s8 + $0x1] ss:$0 sm:$0xff]  ;;  %s10288_s8 = sld [smem:[#allocation22_spill]] }
 0xf52   : > { %v2977_v0 = vpop.f32.mrb[14].mxu1 }
 0xf53   : > { %v8336_v1 = vpop.f32.mrb[15].mxu1  ;;  %v2981_v2 = vsel %vm1150_vm0, %v2977_v0, -inf }
 0xf54   : > { %2982 = vmax.xlane.f32.xlu1 %v2981_v2 }
 0xf65   : > { %2662 = vrot.lane.b32.xlu1 %v9515_v46, %s10182_s2  ;;  %s10273_s2 = smov 64  }
 0xfd5   : > { %v2488_v4 = vpop.xlane.xlu1 %2487 }
 0xfd6   : > { %v2489_v5 = vsub.f32 %v2482_v55, %v2488_v4  ;;  %v2653_v6 = vpop.xlane.xlu0 %2652 }
 0xfd7   : > { %v2654_v7 = vsub.f32 %v2647_v57, %v2653_v6 }
 0xfd8   : > { %v2490_v8 = vmul.f32 1.442695, %v2489_v5 }
 0xfd9   : > { %v2655_v9 = vmul.f32 1.442695, %v2654_v7 }
 0xfda   : > { %8988 = vpow2.f32 %v2490_v8 }
 0xfdb   : > { %8990 = vpow2.f32 %v2655_v9 }
 0xfdd   : > { %v2818_v22 = vpop.xlane.xlu0 %2817 }
 0xfde   : > { %v2819_v23 = vsub.f32 %v2812_v61, %v2818_v22 }
 0xfe0   : > { %v2820_v24 = vmul.f32 1.442695, %v2819_v23  ;;  %v7813_v23 = vld [vmem:[%s10265_s6 + $0x58] sm:$0xff] }
 0xfe1   : > { %v2983_v11 = vpop.xlane.xlu1 %2982 }
 0xfe2   : > { %v2984_v12 = vsub.f32 %v2977_v0, %v2983_v11 }
 0xfe4   : > { %v8989_v14 = vpop.eup %8988  ;;  %v2985_v16 = vmul.f32 1.442695, %v2984_v12  ;;  %v7803_v12 = vld [vmem:[%s10259_s24 + $0x20] sm:$0xff] }
 0xfe5   : > { %v8991_v17 = vpop.eup %8990  ;;  %v2492_v18 = vsel %vm1150_vm0, %v8989_v14, 0.0  ;;  %v2663_v27 = vpop.permute.xlu1 %2662 }
 0xfe6   : > { %8992 = vpow2.f32 %v2985_v16  ;;  %2493 = vadd.xlane.f32.xlu0 %v2492_v18  ;;  %v2657_v19 = vsel %vm1150_vm0, %v8991_v17, 0.0 }
 0xfe7   : > { %2658 = vadd.xlane.f32.xlu1 %v2657_v19  ;;  %8994 = vpow2.f32 %v2820_v24  ;;  %v7810_v19 = vld [vmem:[%s10265_s6 + $0x40] sm:$0xff] }
 0xff0   : > { %v8993_v20 = vpop.eup %8992 }
 0xff1   : > { %v2987_v21 = vsel %vm1150_vm0, %v8993_v20, 0.0  ;;  %v8995_v25 = vpop.eup %8994 }
 0xff2   : > { %2988 = vadd.xlane.f32.xlu1 %v2987_v21  ;;  %v2822_v26 = vsel %vm1150_vm0, %v8995_v25, 0.0  ;;  %v7812_v21 = vld [vmem:[%s10265_s6 + $0x50] sm:$0xff] }
 0xff3   : > { %v8776_v24 = vpack.c.bf16 %v7813_v23, %v7812_v21 }
 0xffc   : > { %2497 = vrot.lane.b32.xlu0 %v9515_v46, %s10273_s2 }
0x1003   : > { %2827 = vrot.lane.b32.xlu1 %v9515_v46, %s10274_s1 }
0x101b   : > { %2823 = vadd.xlane.f32.xlu0 %v2822_v26  ;;  %v7815_v26 = vld [vmem:[%s10265_s6 + $0x68] sm:$0xff] }
0x1031   : > { %2992 = vrot.lane.b32.xlu0 %v9515_v46, %s10275_s28  ;;  %v8761_v46 = vpack.c.bf16 %v7779_v45, %v7778_v44  ;;  %v7816_v44 = vld [vmem:[%s10265_s6 + $0x70] sm:$0xff]  ;;  %v7817_v45 = vld [vmem:[%s10265_s6 + $0x78] sm:$0xff] }
0x1033   : > { %8762 = vmatpush3.bf16.msra.mxu1 %v8761_v46  ;;  %v8782_v46 = vpack.c.bf16 %v7817_v45, %v7816_v44 }
0x1034   : > { %8763 = vmatprep.subr.bf16.mxu1 %v9133_v3 }
0x1037   : > { %8765 = vmatpush3.bf16.msra.mxu1 %v8764_v52 }
0x1038   : > { %8772 = vmatprep.subr.bf16.mxu1 %v9133_v3 }
0x1073   : > { %v2494_v28 = vpop.xlane.xlu0 %2493 }
0x1074   : > { %8996 = vrcp.f32 %v2494_v28  ;;  %v2659_v29 = vpop.xlane.xlu1 %2658 }
0x1075   : > { %8998 = vrcp.f32 %v2659_v29 }
0x1077   : > { %v2498_v30 = vpop.permute.xlu0 %2497 }
0x1078   : > { %8308 = vmatpush3.msra.mxu0 %v2498_v30 }
0x1079   : > { %8317 = vmatprep.subr.mxu0 %v9135_v10 }
0x107e   : > { %v8997_v31 = vpop.eup %8996 }
0x107f   : > { %v2989_v32 = vpop.xlane.xlu1 %2988  ;;  %v2496_v33 = vmul.f32 %v8997_v31, %v8989_v14  ;;  %v8999_v34 = vpop.eup %8998  ;;  %v7804_v14 = vld [vmem:[%s10259_s24 + $0x28] sm:$0xff] }
0x1080   : > { %v2661_v36 = vmul.f32 %v8999_v34, %v8991_v17  ;;  %v8767_v16 = vpack.c.bf16 %v7804_v14, %v7803_v12  ;;  %v7806_v17 = vld [vmem:[%s10259_s24 + $0x38] sm:$0xff] }
0x1081   : > { %8310 = vmatmul.mubr.msk.f32.vlgmr.msra.gmra.mrb[20].mxu0 %vm1150_vm0, %v2496_v33 }
0x1082   : > { %8318 = vmatpush3.msra.mxu0 %v2663_v27  ;;  %8319 = vmatprep.mubr.msk.f32.mxu0 %vm9134_vm1, %v9135_v10 }
0x1083   : > { %v2828_v35 = vpop.permute.xlu1 %2827  ;;  %8327 = vmatprep.subr.mxu0 %v9135_v10 }
0x1085   : > { %8320 = vmatmul.mubr.msk.f32.vlgmr.msra.gmra.mrb[22].mxu0 %vm1150_vm0, %v2661_v36  ;;  %v7802_v36 = vld [vmem:[%s10261_s19 + $0x1] ss:$0 sm:$0xff]  ;;  %s10292_s19 = sld [smem:[#allocation23_spill]] }
0x1086   : > { %8328 = vmatpush3.msra.mxu0 %v2828_v35  ;;  %8329 = vmatprep.mubr.msk.f32.mxu0 %vm9134_vm1, %v9135_v10 }
0x1087   : > { %8337 = vmatprep.subr.mxu0 %v9135_v10 }
0x10a8   : > { %v2824_v37 = vpop.xlane.xlu0 %2823 }
0x10a9   : > { %9000 = vrcp.f32 %v2824_v37 }
0x10aa   : > { %9002 = vrcp.f32 %v2989_v32  ;;  %v7801_v32 = vld [vmem:[%s10262_s14 + $0x1] ss:$0 sm:$0xff]  ;;  %s10290_s14 = smov 96  }
0x10ac   : > { %v2993_v41 = vpop.permute.xlu0 %2992 }
0x10b3   : > { %v9001_v38 = vpop.eup %9000 }
0x10b4   : > { %v2826_v39 = vmul.f32 %v9001_v38, %v8995_v25  ;;  %v9003_v40 = vpop.eup %9002  ;;  %v7814_v25 = vld [vmem:[%s10265_s6 + $0x60] sm:$0xff] }
0x10b5   : > { %v2991_v42 = vmul.f32 %v9003_v40, %v8993_v20  ;;  %v7811_v20 = vld [vmem:[%s10265_s6 + $0x48] sm:$0xff]  ;;  %v8779_v27 = vpack.c.bf16 %v7815_v26, %v7814_v25  ;;  %s10281_s6 = smov 104  }
0x10b6   : > { %8330 = vmatmul.mubr.msk.f32.vlgmr.msra.gmra.mrb[24].mxu0 %vm1150_vm0, %v2826_v39  ;;  %v8773_v22 = vpack.c.bf16 %v7811_v20, %v7810_v19 }
0x10b7   : > { %8338 = vmatpush3.msra.mxu0 %v2993_v41  ;;  %8339 = vmatprep.mubr.msk.f32.mxu0 %vm9134_vm1, %v9135_v10 }
0x10b8   : > { %8766 = vmatprep.subr.bf16.mxu0 %v9133_v3 }
0x10ba   : > { %8340 = vmatmul.mubr.msk.f32.vlgmr.msra.gmra.mrb[26].mxu0 %vm1150_vm0, %v2991_v42 }
0x10bb   : > { %8361 = vmatprep.mubr.msk.f32.mxu0 %vm9134_vm1, %v9135_v10  ;;  %8768 = vmatpush3.bf16.msra.mxu0 %v8767_v16 }
0x10bc   : > { %8769 = vmatprep.subr.bf16.mxu0 %v9133_v3 }
0x1154   : > { %v2569_v47 = vpop.f32.mrb[20].mxu0 }
0x1155   : > { %v8311_v48 = vpop.f32.mrb[21].mxu0 }
0x1158   : > { %v2734_v49 = vpop.f32.mrb[22].mxu0 }
0x1159   : > { %3069 = vrot.lane.b32.xlu1 %v2734_v49, %s10192_s11  ;;  %v8321_v15 = vpop.f32.mrb[23].mxu0  ;;  %s10278_s11 = sld [smem:[#allocation20_spill]] }
0x115f   : > { %v7825_v51 = vld [vmem:[%s10278_s11] ss:$0 sm:$0xff] }
0x1189   : > { %v2899_v53 = vpop.f32.mrb[24].mxu0 }
0x118a   : > { %3073 = vrot.lane.b32.xlu0 %v2899_v53, %s10190_s0  ;;  %v8331_v54 = vpop.f32.mrb[25].mxu0  ;;  %s10277_s0 = sld [smem:[#allocation19_spill]] }
0x118d   : > { %v3064_v55 = vpop.f32.mrb[26].mxu0 }
0x118e   : > { %3077 = vrot.lane.b32.xlu1 %v3064_v55, %s10276_s26  ;;  %v8341_v56 = vpop.f32.mrb[27].mxu0 }
0x1190   : > { %v3408_v34 = vld [vmem:[%s10277_s0] sm:$0xff]  ;;  %v3409_v35 = vld [vmem:[%s10277_s0 + $0x8] sm:$0xff]  ;;  %v3410_v40 = vld [vmem:[%s10277_s0 + $0x10] sm:$0xff] }
0x1191   : > { %v8785_v38 = vpack.c.bf16 %v3409_v35, %v3408_v34  ;;  %v3411_v41 = vld [vmem:[%s10277_s0 + $0x18] sm:$0xff] }
0x1192   : > { %v8788_v42 = vpack.c.bf16 %v3411_v41, %v3410_v40 }
0x11cb   : > { %v3070_v57 = vpop.permute.xlu1 %3069 }
0x11cc   : > { %v3080_v59 = vsel %vm1150_vm0, %v2569_v47, %v3070_v57  ;;  %v7808_v47 = vld [vmem:[%s10256_s30 + $0x1] ss:$0 sm:$0xff]  ;;  %s10299_s30 = sld [smem:[#allocation31_spill]] }
0x11fc   : > { %v3074_v58 = vpop.permute.xlu0 %3073 }
0x11fd   : > { %v3081_v60 = vsel %vm1996_vm3, %v3080_v59, %v3074_v58 }
0x1200   : > { %v3078_v61 = vpop.permute.xlu1 %3077 }
0x1201   : > { %v3082_v62 = vsel %vm1998_vm4, %v3081_v60, %v3078_v61 }
0x1202   : > { %8351 = vmatmul.mubr.msk.f32.vlgmr.msra.gmra.mrb[16].mxu1 %vm1248_vm2, %v3082_v62 }
0x1203   : > { %8380 = vmatprep.mubr.msk.f32.mxu1 %vm9134_vm1, %v9135_v10  ;;  %8774 = vmatpush3.bf16.msra.mxu1 %v8773_v22 }
0x1204   : > { %8775 = vmatprep.subr.bf16.mxu1 %v9133_v3 }
0x1207   : > { %8777 = vmatpush3.bf16.msra.mxu1 %v8776_v24 }
0x1208   : > { %8778 = vmatprep.subr.bf16.mxu1 %v9133_v3 }
0x120b   : > { %8780 = vmatpush3.bf16.msra.mxu1 %v8779_v27 }
0x120c   : > { %8781 = vmatprep.subr.bf16.mxu1 %v9133_v3 }
0x120f   : > { %8783 = vmatpush3.bf16.msra.mxu1 %v8782_v46 }
0x1210   : > { %8404 = vmatprep.subr.mxu1 %v9135_v10 }
0x12d5   : > { %v3158_v0 = vpop.f32.mrb[16].mxu1 }
0x12d6   : > { %v3159_v1 = vadd.f32 %v7797_v63, %v3158_v0  ;;  %v8352_v2 = vpop.f32.mrb[17].mxu1 }
0x12d8   : > { %v3162_v4 = vadd.f32 %v3159_v1, %v9508_v43  ;;  %v7805_v43 = vld [vmem:[%s10259_s24 + $0x30] sm:$0xff]  ;;  %v3403_v1 = vlaneseq  ;;  %s10296_s24 = smov 80  }
0x12d9   : > { %v8770_v18 = vpack.c.bf16 %v7806_v17, %v7805_v43 }
0x12da   : > { %v3167_v5 = vsel %vm1248_vm2, %v3162_v4, 0.0  ;;  %v3404_v2 = vshrl.u32 %v3403_v1, 7 }
0x12db   : > { %3168 = vadd.xlane.f32.xlu0 %v3167_v5  ;;  %8771 = vmatpush3.bf16.msra.mxu0 %v8770_v18 }
0x12dc   : > { %8784 = vmatprep.subr.bf16.mxu0 %v9133_v3 }
0x1368   : > { %v3169_v6 = vpop.xlane.xlu0 %3168 }
0x1369   : > { %v3170_v7 = vmul.f32 0.03125, %v3169_v6 }
0x136b   : > { %v3171_v8 = vsub.f32 %v3162_v4, %v3170_v7  ;;  %v3406_v4 = vand.u32 127, %v3403_v1 }
0x136d   : > { %v3172_v9 = vmul.f32 %v3171_v8, %v3171_v8  ;;  %vm9677_vm6 = vcmp.le.s32.totalorder %v3406_v4, %v3404_v2 }
0x136f   : > { %v3173_v11 = vsel %vm1248_vm2, %v3172_v9, 0.0 }
0x1370   : > { %3174 = vadd.xlane.f32.xlu1 %v3173_v11 }
0x13fd   : > { %v3175_v28 = vpop.xlane.xlu1 %3174 }
0x13fe   : > { %v3176_v29 = vmul.f32 0.03125, %v3175_v28 }
0x1400   : > { %v3177_v30 = vadd.f32 1e-05, %v3176_v29 }
0x1402   : > { %9004 = vrsqrt.f32 %v3177_v30 }
0x140c   : > { %v9005_v31 = vpop.eup %9004 }
0x140d   : > { %v3179_v33 = vmul.f32 %v9005_v31, %v3171_v8 }
0x140f   : > { %v3186_v37 = vmul.f32 %v7801_v32, %v3179_v33 }
0x1411   : > { %v9619_v39 = vadd.f32 %v7802_v36, %v3186_v37 }
0x1413   : > { %8362 = vmatmul.mubr.msk.f32.vlgmr.msra.gmra.mrb[28].mxu0 %vm1248_vm2, %v9619_v39 }
0x1414   : > { %8786 = vmatpush3.bf16.msra.mxu0 %v8785_v38  ;;  %8391 = vmatprep.mubr.msk.f32.mxu0 %vm9134_vm1, %v9135_v10 }
0x1415   : > { %8787 = vmatprep.subr.bf16.mxu0 %v9133_v3 }
0x1418   : > { %8789 = vmatpush3.bf16.msra.mxu0 %v8788_v42 }
0x1419   : > { %8394 = vmatprep.subr.mxu0 %v9135_v10 }
0x141b   : > { %8392 = vmatmul.mubr.msk.f32.vlgmr.msra.gmra.mrb[30].mxu0 %vm1248_vm2, %v9373_v13 }
0x141c   : > { %8396 = vmatprep.mubr.msk.f32.mxu0 %vm9134_vm1, %v9135_v10 }
0x14e6   : > { %v3276_v48 = vpop.f32.mrb[28].mxu0 }
0x14e7   : > { %v3277_v49 = vadd.f32 %v7808_v47, %v3276_v48  ;;  %v8363_v15 = vpop.f32.mrb[29].mxu0 }
0x14e9   : > { %v3280_v50 = vmax.f32 %v3277_v49, 0.0 }
0x14eb   : > { %8381 = vmatmul.mubr.msk.f32.vlgmr.msra.gmra.mrb[18].mxu1 %vm2210_vm5, %v3280_v50 }
0x14ec   : > { %8406 = vmatprep.mubr.msk.f32.mxu1 %vm9134_vm1, %v9135_v10 }
0x14ee   : > { %v3493_v52 = vpop.f32.mrb[30].mxu0 }
0x14ef   : > { %v9641_v53 = vadd.f32 %v7825_v51, %v3493_v52  ;;  %v8393_v54 = vpop.f32.mrb[31].mxu0 }
0x14f1   : > { %3670 = vrot.lane.b32.xlu1 %v9641_v53, %s10198_s18  ;;  %3499 = vrot.lane.b32.xlu0 %v9641_v53, %s10202_s16  ;;  %v3497_v55 = vmul.f32 0.35355338, %v9641_v53  ;;  %s10285_s18 = sld [smem:[#allocation21_spill]]  ;;  %s10287_s16 = smov 16  }
0x14f5   : > { %3837 = vrot.lane.b32.xlu1 %v9641_v53, %s10196_s23  ;;  %3668 = vrot.lane.b32.xlu0 %v3497_v55, %s10200_s22  ;;  %s10284_s23 = smov 56   ;;  %s10286_s22 = smov 8  }
0x14f9   : > { %4004 = vrot.lane.b32.xlu1 %v9641_v53, %s10279_s3  ;;  %3835 = vrot.lane.b32.xlu0 %v3497_v55, %s10280_s5 }
0x14fd   : > { %4002 = vrot.lane.b32.xlu0 %v3497_v55, %s10281_s6 }
0x1563   : > { %v3671_v56 = vpop.permute.xlu1 %3670  ;;  %v3500_v57 = vpop.permute.xlu0 %3499 }
0x1564   : > { %8395 = vmatpush3.xpose.msk.msra.mxu0 %vm1150_vm0, %v3500_v57  ;;  %8405 = vmatpush3.xpose.msk.msra.mxu1 %vm1150_vm0, %v3671_v56 }
0x1565   : > { %8414 = vmatprep.subr.mxu1 %v9135_v10  ;;  %8399 = vmatprep.subr.mxu0 %v9135_v10 }
0x1567   : > { %v3838_v58 = vpop.permute.xlu1 %3837  ;;  %v3669_v59 = vpop.permute.xlu0 %3668  ;;  %8397 = vmatmul.mubr.msk.f32.vlgmr.msra.gmra.mrb[32].mxu0 %vm1150_vm0, %v3497_v55 }
0x1568   : > { %8407 = vmatmul.mubr.msk.f32.vlgmr.msra.gmra.mrb[20].mxu1 %vm1150_vm0, %v3669_v59  ;;  %8401 = vmatprep.mubr.msk.f32.mxu0 %vm9134_vm1, %v9135_v10 }
0x1569   : > { %8415 = vmatpush3.xpose.msk.msra.mxu1 %vm1150_vm0, %v3838_v58  ;;  %8416 = vmatprep.mubr.msk.f32.mxu1 %vm9134_vm1, %v9135_v10 }
0x156a   : > { %8424 = vmatprep.subr.mxu1 %v9135_v10 }
0x156b   : > { %v4005_v60 = vpop.permute.xlu1 %4004  ;;  %v3836_v61 = vpop.permute.xlu0 %3835 }
0x156c   : > { %8417 = vmatmul.mubr.msk.f32.vlgmr.msra.gmra.mrb[22].mxu1 %vm1150_vm0, %v3836_v61  ;;  %v3413_v61 = vld [vmem:[%s10285_s18] sm:$0xff] }
0x156d   : > { %8425 = vmatpush3.xpose.msk.msra.mxu1 %vm1150_vm0, %v4005_v60  ;;  %8426 = vmatprep.mubr.msk.f32.mxu1 %vm9134_vm1, %v9135_v10 }
0x156e   : > { %8790 = vmatprep.subr.bf16.mxu1 %v9133_v3 }
0x156f   : > { %v4003_v62 = vpop.permute.xlu0 %4002 }
0x1570   : > { %8427 = vmatmul.mubr.msk.f32.vlgmr.msra.gmra.mrb[24].mxu1 %vm1150_vm0, %v4003_v62  ;;  %v3414_v62 = vld [vmem:[%s10285_s18 + $0x8] sm:$0xff] }
0x1571   : > { %8442 = vmatprep.mubr.msk.f32.mxu1 %vm9134_vm1, %v9135_v10 }
0x15be   : > { %v9675_v63 = vpop.f32.mrb[18].mxu1 }
0x15bf   : > { %v8382_v0 = vpop.f32.mrb[19].mxu1 }
0x15c0   : > { %v8791_v0 = vpack.c.bf16 %v3414_v62, %v3413_v61  ;;  %v7823_v61 = vld [vmem:[%s10260_s20 + $0x1] ss:$0 sm:$0xff]  ;;  %s10295_s20 = smov 88  }
0x15c2   : > { %8792 = vmatpush3.bf16.msra.mxu1 %v8791_v0 }
0x15c3   : > { %8793 = vmatprep.subr.bf16.mxu1 %v9133_v3 }
0x163a   : > { %v3572_v6 = vpop.f32.mrb[32].mxu0 }
0x163b   : > { %v3576_v7 = vsel %vm9677_vm6, %v3572_v6, -1e+30  ;;  %v8398_v8 = vpop.f32.mrb[33].mxu0  ;;  %v3742_v9 = vpop.f32.mrb[20].mxu1 }
0x163c   : > { %v3746_v11 = vsel %vm9677_vm6, %v3742_v9, -1e+30  ;;  %v8408_v12 = vpop.f32.mrb[21].mxu1  ;;  %v3578_v14 = vsel %vm3577_vm7, %v3576_v7, -inf  ;;  %v3416_v8 = vld [vmem:[%s10285_s18 + $0x18] sm:$0xff] }
0x163d   : > { %3579 = vmax.xlane.f32.xlu1 %v3578_v14  ;;  %v3747_v16 = vsel %vm3577_vm7, %v3746_v11, -inf }
0x163e   : > { %3748 = vmax.xlane.f32.xlu0 %v3747_v16 }
0x163f   : > { %v3909_v43 = vpop.f32.mrb[22].mxu1 }
0x1640   : > { %v3913_v17 = vsel %vm9677_vm6, %v3909_v43, -1e+30  ;;  %v8418_v18 = vpop.f32.mrb[23].mxu1  ;;  %v7819_v43 = vld [vmem:[%s10263_s12 + $0x1] ss:$0 sm:$0xff]  ;;  %s10289_s12 = sld [smem:[#allocation25_spill]] }
0x1641   : > { %v3914_v19 = vsel %vm3577_vm7, %v3913_v17, -inf }
0x1642   : > { %3915 = vmax.xlane.f32.xlu0 %v3914_v19 }
0x1643   : > { %v4076_v20 = vpop.f32.mrb[24].mxu1 }
0x1644   : > { %v4080_v21 = vsel %vm9677_vm6, %v4076_v20, -1e+30  ;;  %v8428_v22 = vpop.f32.mrb[25].mxu1 }
0x1645   : > { %v4081_v23 = vsel %vm3577_vm7, %v4080_v21, -inf }
0x1646   : > { %4082 = vmax.xlane.f32.xlu1 %v4081_v23 }
0x1657   : > { %3758 = vrot.lane.b32.xlu1 %v9641_v53, %s10284_s23 }
0x16ca   : > { %v3580_v24 = vpop.xlane.xlu1 %3579 }
0x16cb   : > { %v3581_v25 = vsub.f32 %v3576_v7, %v3580_v24  ;;  %v3749_v26 = vpop.xlane.xlu0 %3748  ;;  %v3415_v7 = vld [vmem:[%s10285_s18 + $0x10] sm:$0xff] }
0x16cc   : > { %v3750_v27 = vsub.f32 %v3746_v11, %v3749_v26  ;;  %v8794_v9 = vpack.c.bf16 %v3416_v8, %v3415_v7 }
0x16cd   : > { %v3582_v28 = vmul.f32 1.442695, %v3581_v25 }
0x16ce   : > { %v3751_v29 = vmul.f32 1.442695, %v3750_v27  ;;  %8795 = vmatpush3.bf16.msra.mxu1 %v8794_v9  ;;  %v7845_v9 = vld [vmem:[%s10292_s19] ss:$0 sm:$0xff] }
0x16cf   : > { %9006 = vpow2.f32 %v3582_v28  ;;  %v3916_v40 = vpop.xlane.xlu0 %3915  ;;  %8802 = vmatprep.subr.bf16.mxu1 %v9133_v3 }
0x16d0   : > { %9008 = vpow2.f32 %v3751_v29  ;;  %v3917_v41 = vsub.f32 %v3913_v17, %v3916_v40  ;;  %v3368_v17 = vadd.f32 %v7819_v43, %v9675_v63  ;;  %v7843_v29 = vld [vmem:[%s10288_s8] ss:$0 sm:$0xff] }
0x16d2   : > { %v3918_v42 = vmul.f32 1.442695, %v3917_v41  ;;  %v3371_v18 = vadd.f32 %v3368_v17, %v9619_v39  ;;  %v4297_v41 = vld [vmem:[%s10289_s12 + $0x18] sm:$0xff] }
0x16d3   : > { %v4083_v30 = vpop.xlane.xlu1 %4082 }
0x16d4   : > { %v4084_v31 = vsub.f32 %v4080_v21, %v4083_v30  ;;  %v3376_v19 = vsel %vm1248_vm2, %v3371_v18, 0.0 }
0x16d6   : > { %v4085_v32 = vmul.f32 1.442695, %v4084_v31 }
0x16d7   : > { %v3759_v46 = vpop.permute.xlu1 %3758 }
0x16d8   : > { %9010 = vpow2.f32 %v4085_v32 }
0x16d9   : > { %v9007_v33 = vpop.eup %9006  ;;  %9012 = vpow2.f32 %v3918_v42 }
0x16da   : > { %v9009_v34 = vpop.eup %9008  ;;  %v3584_v35 = vsel %vm3577_vm7, %v9007_v33, 0.0 }
0x16db   : > { %3585 = vadd.xlane.f32.xlu0 %v3584_v35  ;;  %v3753_v36 = vsel %vm3577_vm7, %v9009_v34, 0.0  ;;  %v4294_v35 = vld [vmem:[%s10289_s12] sm:$0xff] }
0x16dc   : > { %3754 = vadd.xlane.f32.xlu1 %v3753_v36  ;;  %v4295_v36 = vld [vmem:[%s10289_s12 + $0x8] sm:$0xff] }
0x16dd   : > { %v8797_v40 = vpack.c.bf16 %v4295_v36, %v4294_v35 }
0x16e2   : > { %v9011_v37 = vpop.eup %9010 }
0x16e3   : > { %v4087_v38 = vsel %vm3577_vm7, %v9011_v37, 0.0  ;;  %v9013_v44 = vpop.eup %9012 }
0x16e4   : > { %4088 = vadd.xlane.f32.xlu1 %v4087_v38  ;;  %v3920_v45 = vsel %vm3577_vm7, %v9013_v44, 0.0  ;;  %v8948_v38 = vpack.i.bf16 %v4295_v36, %v4294_v35 }
0x16f1   : > { %3589 = vrot.lane.b32.xlu0 %v9641_v53, %s10273_s2 }
0x16f5   : > { %3925 = vrot.lane.b32.xlu1 %v9641_v53, %s10274_s1 }
0x1710   : > { %3921 = vadd.xlane.f32.xlu0 %v3920_v45 }
0x1726   : > { %4092 = vrot.lane.b32.xlu0 %v9641_v53, %s10275_s28 }
0x1768   : > { %v3586_v47 = vpop.xlane.xlu0 %3585 }
0x1769   : > { %9014 = vrcp.f32 %v3586_v47  ;;  %v3755_v48 = vpop.xlane.xlu1 %3754 }
0x176a   : > { %9016 = vrcp.f32 %v3755_v48 }
0x176c   : > { %v3590_v49 = vpop.permute.xlu0 %3589 }
0x176d   : > { %8400 = vmatpush3.msk.msra.mxu0 %vm3595_vm8, %v3590_v49 }
0x176e   : > { %8409 = vmatprep.subr.mxu0 %v9135_v10 }
0x1771   : > { %v4089_v51 = vpop.xlane.xlu1 %4088 }
0x1773   : > { %v9015_v15 = vpop.eup %9014 }
0x1774   : > { %v3588_v50 = vmul.f32 %v9015_v15, %v9007_v33  ;;  %v9017_v52 = vpop.eup %9016 }
0x1775   : > { %v3757_v53 = vmul.f32 %v9017_v52, %v9009_v34  ;;  %v3926_v54 = vpop.permute.xlu1 %3925  ;;  %v7847_v52 = vld [vmem:[%s10291_s17] ss:$0 sm:$0xff] }
0x1776   : > { %8402 = vmatmul.mubr.msk.f32.vlgmr.msra.gmra.mrb[34].mxu0 %vm3591_vm9, %v3588_v50 }
0x1777   : > { %8410 = vmatpush3.msk.msra.mxu0 %vm3595_vm8, %v3759_v46  ;;  %8411 = vmatprep.mubr.msk.f32.mxu0 %vm9134_vm1, %v9135_v10 }
0x1778   : > { %8419 = vmatprep.subr.mxu0 %v9135_v10 }
0x177a   : > { %8412 = vmatmul.mubr.msk.f32.vlgmr.msra.gmra.mrb[36].mxu0 %vm3591_vm9, %v3757_v53 }
0x177b   : > { %8420 = vmatpush3.msk.msra.mxu0 %vm3595_vm8, %v3926_v54  ;;  %8421 = vmatprep.mubr.msk.f32.mxu0 %vm9134_vm1, %v9135_v10 }
0x177c   : > { %8429 = vmatprep.subr.mxu0 %v9135_v10 }
0x179d   : > { %v3922_v55 = vpop.xlane.xlu0 %3921 }
0x179e   : > { %9018 = vrcp.f32 %v3922_v55 }
0x179f   : > { %9020 = vrcp.f32 %v4089_v51 }
0x17a1   : > { %v4093_v59 = vpop.permute.xlu0 %4092 }
0x17a8   : > { %v9019_v56 = vpop.eup %9018 }
0x17a9   : > { %v3924_v57 = vmul.f32 %v9019_v56, %v9013_v44  ;;  %v9021_v58 = vpop.eup %9020 }
0x17aa   : > { %v4091_v60 = vmul.f32 %v9021_v58, %v9011_v37  ;;  %v4296_v37 = vld [vmem:[%s10289_s12 + $0x10] sm:$0xff] }
0x17ab   : > { %8422 = vmatmul.mubr.msk.f32.vlgmr.msra.gmra.mrb[38].mxu0 %vm3591_vm9, %v3924_v57  ;;  %v8953_v42 = vpack.i.bf16 %v4297_v41, %v4296_v37  ;;  %v8800_v44 = vpack.c.bf16 %v4297_v41, %v4296_v37 }
0x17ac   : > { %8430 = vmatpush3.msk.msra.mxu0 %vm3595_vm8, %v4093_v59  ;;  %8431 = vmatprep.mubr.msk.f32.mxu0 %vm9134_vm1, %v9135_v10 }
0x17ad   : > { %8796 = vmatprep.subr.bf16.mxu0 %v9133_v3 }
0x17af   : > { %8432 = vmatmul.mubr.msk.f32.vlgmr.msra.gmra.mrb[40].mxu0 %vm3591_vm9, %v4091_v60 }
0x17b0   : > { %8453 = vmatprep.mubr.msk.f32.mxu0 %vm9134_vm1, %v9135_v10  ;;  %8798 = vmatpush3.bf16.msra.mxu0 %v8797_v40 }
0x17b1   : > { %8799 = vmatprep.subr.bf16.mxu0 %v9133_v3 }
0x17b4   : > { %8801 = vmatpush3.bf16.msra.mxu0 %v8800_v44 }
0x17b5   : > { %8467 = vmatprep.subr.mxu0 %v9135_v10 }
0x1849   : > { %v3664_v1 = vpop.f32.mrb[34].mxu0 }
0x184a   : > { %v8403_v2 = vpop.f32.mrb[35].mxu0 }
0x184d   : > { %v3831_v4 = vpop.f32.mrb[36].mxu0 }
0x184e   : > { %4170 = vrot.lane.b32.xlu1 %v3831_v4, %s10286_s22  ;;  %v8413_v6 = vpop.f32.mrb[37].mxu0 }
0x184f   : > { %v7824_v6 = vld [vmem:[%s10272_s15 + $0x1] ss:$0 sm:$0xff]  ;;  %s10294_s15 = smov 120  }
0x187e   : > { %v3998_v11 = vpop.f32.mrb[38].mxu0 }
0x187f   : > { %4174 = vrot.lane.b32.xlu0 %v3998_v11, %s10287_s16  ;;  %v8423_v12 = vpop.f32.mrb[39].mxu0 }
0x1880   : > { %v7846_v12 = vld [vmem:[%s10293_s21] ss:$0 sm:$0xff] }
0x1882   : > { %v4165_v14 = vpop.f32.mrb[40].mxu0 }
0x1883   : > { %4178 = vrot.lane.b32.xlu1 %v4165_v14, %s10276_s26  ;;  %v8433_v16 = vpop.f32.mrb[41].mxu0 }
0x189e   : > { %3377 = vadd.xlane.f32.xlu0 %v3376_v19 }
0x18c0   : > { %v4171_v20 = vpop.permute.xlu1 %4170 }
0x18c1   : > { %v4181_v22 = vsel %vm1150_vm0, %v3664_v1, %v4171_v20 }
0x18f1   : > { %v4175_v21 = vpop.permute.xlu0 %4174 }
0x18f2   : > { %v4182_v23 = vsel %vm1996_vm3, %v4181_v22, %v4175_v21 }
0x18f5   : > { %v4179_v24 = vpop.permute.xlu1 %4178 }
0x18f6   : > { %v4183_v25 = vsel %vm1998_vm4, %v4182_v23, %v4179_v24 }
0x18f7   : > { %8443 = vmatmul.mubr.msk.f32.vlgmr.msra.gmra.mrb[26].mxu1 %vm1248_vm2, %v4183_v25 }
0x18f8   : > { %8464 = vmatprep.mubr.msk.f32.mxu1 %vm9134_vm1, %v9135_v10 }
0x192b   : > { %v3378_v39 = vpop.xlane.xlu0 %3377 }
0x192c   : > { %v3379_v63 = vmul.f32 0.03125, %v3378_v39 }
0x192e   : > { %v3380_v26 = vsub.f32 %v3371_v18, %v3379_v63 }
0x1930   : > { %v3381_v27 = vmul.f32 %v3380_v26, %v3380_v26 }
0x1932   : > { %v3382_v28 = vsel %vm1248_vm2, %v3381_v27, 0.0 }
0x1933   : > { %3383 = vadd.xlane.f32.xlu0 %v3382_v28 }
0x19c0   : > { %v3384_v53 = vpop.xlane.xlu0 %3383 }
0x19c1   : > { %v3385_v54 = vmul.f32 0.03125, %v3384_v53 }
0x19c3   : > { %v3386_v55 = vadd.f32 1e-05, %v3385_v54 }
0x19c5   : > { %9022 = vrsqrt.f32 %v3386_v55 }
0x19ca   : > { %v4259_v30 = vpop.f32.mrb[26].mxu1 }
0x19cb   : > { %v4260_v31 = vadd.f32 %v7843_v29, %v4259_v30  ;;  %v8444_v32 = vpop.f32.mrb[27].mxu1 }
0x19cd   : > { %v4263_v33 = vadd.f32 %v4260_v31, %v9373_v13 }
0x19cf   : > { %v4267_v34 = vsel %vm4266_vm10, %v4263_v33, 0.0  ;;  %v9023_v56 = vpop.eup %9022 }
0x19d0   : > { %4268 = vadd.xlane.f32.xlu1 %v4267_v34  ;;  %v3388_v59 = vmul.f32 %v9023_v56, %v3380_v26 }
0x19d2   : > { %v3395_v2 = vmul.f32 %v7823_v61, %v3388_v59 }
0x19d4   : > { %v9762_v7 = vadd.f32 %v7824_v6, %v3395_v2 }
0x19e1   : > { %8949 = vrot.lane.b32.xlu1 %v8948_v38, %s10290_s14 }
0x19e5   : > { %4400 = vrot.lane.b32.xlu1 %v7847_v52, %s10290_s14 }
0x1a5d   : > { %v4269_v13 = vpop.xlane.xlu1 %4268 }
0x1a5e   : > { %v4270_v45 = vmul.f32 0.03125, %v4269_v13 }
0x1a60   : > { %v4271_v46 = vsub.f32 %v4263_v33, %v4270_v45 }
0x1a61   : > { %v8950_v49 = vpop.permute.xlu1 %8949 }
0x1a62   : > { %v4272_v47 = vmul.f32 %v4271_v46, %v4271_v46  ;;  %v8952_v15 = vunpack.i.h.bf16 %v8950_v49  ;;  %v8951_v50 = vunpack.i.l.bf16 %v8950_v49 }
0x1a64   : > { %v4273_v48 = vsel %vm4266_vm10, %v4272_v47, 0.0  ;;  %v8803_v51 = vpack.c.bf16 %v8952_v15, %v8951_v50 }
0x1a65   : > { %4274 = vadd.xlane.f32.xlu0 %v4273_v48  ;;  %v4401_v43 = vpop.permute.xlu1 %4400 }
0x1a66   : > { %8804 = vmatpush3.bf16.msra.mxu1 %v8803_v51 }
0x1a67   : > { %8805 = vmatprep.subr.bf16.mxu1 %v9133_v3 }
0x1a7b   : > { %8954 = vrot.lane.b32.xlu0 %v8953_v42, %s10290_s14 }
0x1af2   : > { %v4275_v57 = vpop.xlane.xlu0 %4274 }
0x1af3   : > { %v4276_v58 = vmul.f32 0.03125, %v4275_v57 }
0x1af5   : > { %v4277_v60 = vadd.f32 1e-05, %v4276_v58 }
0x1af6   : > { %v8955_v62 = vpop.permute.xlu0 %8954 }
0x1af7   : > { %9024 = vrsqrt.f32 %v4277_v60  ;;  %v8957_v0 = vunpack.i.h.bf16 %v8955_v62  ;;  %v8956_v1 = vunpack.i.l.bf16 %v8955_v62 }
0x1af9   : > { %v8806_v4 = vpack.c.bf16 %v8957_v0, %v8956_v1 }
0x1afb   : > { %8807 = vmatpush3.bf16.msra.mxu1 %v8806_v4 }
0x1afc   : > { %8477 = vmatprep.subr.mxu1 %v9135_v10 }
0x1afe   : > { %8465 = vmatmul.mubr.msk.f32.vlgmr.msra.gmra.mrb[28].mxu1 %vm1248_vm2, %v9762_v7 }
0x1aff   : > { %8479 = vmatprep.mubr.msk.f32.mxu1 %vm9134_vm1, %v9135_v10 }
0x1b01   : > { %v9025_v8 = vpop.eup %9024 }
0x1b02   : > { %v4279_v11 = vmul.f32 %v9025_v8, %v4271_v46 }
0x1b04   : > { %v4286_v14 = vmul.f32 %v7845_v9, %v4279_v11 }
0x1b06   : > { %v9771_v16 = vadd.f32 %v7846_v12, %v4286_v14 }
0x1b08   : > { %8454 = vmatmul.mubr.msk.f32.vlgmr.msra.gmra.mrb[42].mxu0 %vm1248_vm2, %v9771_v16 }
0x1b09   : > { %8469 = vmatprep.mubr.msk.f32.mxu0 %vm9134_vm1, %v9135_v10 }
0x1bd1   : > { %v4472_v17 = vpop.f32.mrb[28].mxu1 }
0x1bd2   : > { %v9777_v18 = vadd.f32 %v4472_v17, %v4401_v43  ;;  %v8466_v19 = vpop.f32.mrb[29].mxu1 }
0x1bd4   : > { %4642 = vrot.lane.b32.xlu1 %v9777_v18, %s10294_s15  ;;  %8468 = vmatpush3.xpose.msk.msra.mxu0 %vm1150_vm0, %v9777_v18 }
0x1bd5   : > { %8472 = vmatprep.subr.mxu0 %v9135_v10 }
0x1bd8   : > { %4807 = vrot.lane.b32.xlu1 %v9777_v18, %s10280_s5 }
0x1bdb   : > { %v4379_v20 = vpop.f32.mrb[42].mxu0 }
0x1bdc   : > { %v4380_v21 = vadd.f32 %v7847_v52, %v4379_v20  ;;  %v8455_v22 = vpop.f32.mrb[43].mxu0  ;;  %4972 = vrot.lane.b32.xlu1 %v9777_v18, %s10281_s6 }
0x1bdd   : > { %v4300_v22 = vld [vmem:[%s10297_s25 + $0x8] sm:$0xff] }
0x1bde   : > { %v4383_v23 = vmul.f32 0.35355338, %v4380_v21  ;;  %v4299_v21 = vld [vmem:[%s10297_s25] sm:$0xff] }
0x1be0   : > { %4640 = vrot.lane.b32.xlu0 %v4383_v23, %s10294_s15  ;;  %8470 = vmatmul.mubr.msk.f32.vlgmr.msra.gmra.mrb[44].mxu0 %vm1150_vm0, %v4383_v23 }
0x1be1   : > { %8474 = vmatprep.mubr.msk.f32.mxu0 %vm9134_vm1, %v9135_v10 }
0x1be4   : > { %4805 = vrot.lane.b32.xlu0 %v4383_v23, %s10280_s5 }
0x1be8   : > { %4970 = vrot.lane.b32.xlu0 %v4383_v23, %s10281_s6  ;;  %v8809_v23 = vpack.c.bf16 %v4300_v22, %v4299_v21 }
0x1c46   : > { %v4643_v24 = vpop.permute.xlu1 %4642 }
0x1c47   : > { %8478 = vmatpush3.xpose.msk.msra.mxu1 %vm1150_vm0, %v4643_v24  ;;  %v4301_v24 = vld [vmem:[%s10297_s25 + $0x10] sm:$0xff] }
0x1c48   : > { %8487 = vmatprep.subr.mxu1 %v9135_v10 }
0x1c4a   : > { %v4808_v25 = vpop.permute.xlu1 %4807 }
0x1c4e   : > { %v4973_v26 = vpop.permute.xlu1 %4972 }
0x1c52   : > { %v4641_v39 = vpop.permute.xlu0 %4640 }
0x1c53   : > { %8480 = vmatmul.mubr.msk.f32.vlgmr.msra.gmra.mrb[30].mxu1 %vm1150_vm0, %v4641_v39 }
0x1c54   : > { %8488 = vmatpush3.xpose.msk.msra.mxu1 %vm1150_vm0, %v4808_v25  ;;  %8489 = vmatprep.mubr.msk.f32.mxu1 %vm9134_vm1, %v9135_v10  ;;  %v4302_v25 = vld [vmem:[%s10297_s25 + $0x18] sm:$0xff] }
0x1c55   : > { %8497 = vmatprep.subr.mxu1 %v9135_v10  ;;  %v8812_v39 = vpack.c.bf16 %v4302_v25, %v4301_v24 }
0x1c56   : > { %v4806_v63 = vpop.permute.xlu0 %4805 }
0x1c57   : > { %8490 = vmatmul.mubr.msk.f32.vlgmr.msra.gmra.mrb[32].mxu1 %vm1150_vm0, %v4806_v63 }
0x1c58   : > { %8498 = vmatpush3.xpose.msk.msra.mxu1 %vm1150_vm0, %v4973_v26  ;;  %8499 = vmatprep.mubr.msk.f32.mxu1 %vm9134_vm1, %v9135_v10 }
0x1c59   : > { %8808 = vmatprep.subr.bf16.mxu1 %v9133_v3 }
0x1c5a   : > { %v4971_v27 = vpop.permute.xlu0 %4970 }
0x1c5b   : > { %8500 = vmatmul.mubr.msk.f32.vlgmr.msra.gmra.mrb[34].mxu1 %vm1150_vm0, %v4971_v27 }
0x1c5c   : > { %8515 = vmatprep.mubr.msk.f32.mxu1 %vm9134_vm1, %v9135_v10  ;;  %8810 = vmatpush3.bf16.msra.mxu1 %v8809_v23 }
0x1c5d   : > { %8811 = vmatprep.subr.bf16.mxu1 %v9133_v3 }
0x1c60   : > { %8813 = vmatpush3.bf16.msra.mxu1 %v8812_v39 }
0x1c61   : > { %8820 = vmatprep.subr.bf16.mxu1 %v9133_v3 }
0x1cb3   : > { %v4548_v28 = vpop.f32.mrb[44].mxu0 }
0x1cb4   : > { %v8471_v29 = vpop.f32.mrb[45].mxu0  ;;  %v4553_v30 = vsel %vm4552_vm11, %v4548_v28, -inf }
0x1cb5   : > { %4554 = vmax.xlane.f32.xlu1 %v4553_v30 }
0x1d26   : > { %v4714_v31 = vpop.f32.mrb[30].mxu1 }
0x1d27   : > { %v8481_v32 = vpop.f32.mrb[31].mxu1  ;;  %v4718_v33 = vsel %vm4552_vm11, %v4714_v31, -inf }
0x1d28   : > { %4719 = vmax.xlane.f32.xlu0 %v4718_v33 }
0x1d2a   : > { %v4879_v34 = vpop.f32.mrb[32].mxu1 }
0x1d2b   : > { %v8491_v35 = vpop.f32.mrb[33].mxu1  ;;  %v4883_v36 = vsel %vm4552_vm11, %v4879_v34, -inf }
0x1d2c   : > { %4884 = vmax.xlane.f32.xlu0 %v4883_v36 }
0x1d2e   : > { %v5044_v37 = vpop.f32.mrb[34].mxu1 }
0x1d2f   : > { %v8501_v38 = vpop.f32.mrb[35].mxu1  ;;  %v5048_v40 = vsel %vm4552_vm11, %v5044_v37, -inf }
0x1d30   : > { %5049 = vmax.xlane.f32.xlu1 %v5048_v40 }
0x1d41   : > { %4729 = vrot.lane.b32.xlu1 %v9777_v18, %s10295_s20 }
0x1d42   : > { %v4555_v41 = vpop.xlane.xlu1 %4554 }
0x1d43   : > { %v4556_v42 = vsub.f32 %v4548_v28, %v4555_v41 }
0x1d45   : > { %v4557_v44 = vmul.f32 1.442695, %v4556_v42 }
0x1d47   : > { %9026 = vpow2.f32 %v4557_v44 }
0x1d51   : > { %v9027_v13 = vpop.eup %9026 }
0x1d52   : > { %v4559_v45 = vsel %vm4552_vm11, %v9027_v13, 0.0 }
0x1d53   : > { %4560 = vadd.xlane.f32.xlu0 %v4559_v45 }
0x1d69   : > { %4564 = vrot.lane.b32.xlu0 %v9777_v18, %s10290_s14 }
0x1db5   : > { %v4720_v46 = vpop.xlane.xlu0 %4719 }
0x1db6   : > { %v4721_v47 = vsub.f32 %v4714_v31, %v4720_v46 }
0x1db8   : > { %v4722_v48 = vmul.f32 1.442695, %v4721_v47 }
0x1db9   : > { %v4885_v49 = vpop.xlane.xlu0 %4884 }
0x1dba   : > { %9028 = vpow2.f32 %v4722_v48  ;;  %v4886_v15 = vsub.f32 %v4879_v34, %v4885_v49  ;;  %v5259_v49 = vld [vmem:[%s10299_s30] sm:$0xff] }
0x1dbc   : > { %v4887_v50 = vmul.f32 1.442695, %v4886_v15  ;;  %v5260_v15 = vld [vmem:[%s10299_s30 + $0x8] sm:$0xff] }
0x1dbd   : > { %v5050_v51 = vpop.xlane.xlu1 %5049 }
0x1dbe   : > { %9030 = vpow2.f32 %v4887_v50  ;;  %v5051_v52 = vsub.f32 %v5044_v37, %v5050_v51  ;;  %v7862_v37 = vld [vmem:[%s10298_s29] ss:$0 sm:$0xff]  ;;  %v8815_v50 = vpack.c.bf16 %v5260_v15, %v5259_v49  ;;  %v5262_v51 = vld [vmem:[%s10299_s30 + $0x18] sm:$0xff] }
0x1dc0   : > { %v5052_v53 = vmul.f32 1.442695, %v5051_v52 }
0x1dc1   : > { %v4730_v1 = vpop.permute.xlu1 %4729 }
0x1dc2   : > { %9032 = vpow2.f32 %v5052_v53  ;;  %v5344_v53 = vld [vmem:[%s10300_s7] sm:$0xff]  ;;  %s10304_s7 = sld [smem:[#allocation32_spill]] }
0x1dc4   : > { %v9029_v54 = vpop.eup %9028 }
0x1dc5   : > { %v4724_v55 = vsel %vm4552_vm11, %v9029_v54, 0.0 }
0x1dc6   : > { %4725 = vadd.xlane.f32.xlu1 %v4724_v55  ;;  %v5346_v55 = vld [vmem:[%s10301_s4 + $0x10] sm:$0xff] }
0x1dc8   : > { %v9031_v56 = vpop.eup %9030 }
0x1dc9   : > { %v4889_v57 = vsel %vm4552_vm11, %v9031_v56, 0.0 }
0x1dca   : > { %4890 = vadd.xlane.f32.xlu0 %v4889_v57  ;;  %v5347_v57 = vld [vmem:[%s10301_s4 + $0x18] sm:$0xff] }
0x1dcc   : > { %v9033_v58 = vpop.eup %9032 }
0x1dcd   : > { %v5054_v59 = vsel %vm4552_vm11, %v9033_v58, 0.0 }
0x1dce   : > { %5055 = vadd.xlane.f32.xlu1 %v5054_v59  ;;  %v5348_v59 = vld [vmem:[%s10301_s4 + $0x20] sm:$0xff] }
0x1ddf   : > { %4894 = vrot.lane.b32.xlu1 %v9777_v18, %s10296_s24 }
0x1de0   : > { %5059 = vrot.lane.b32.xlu0 %v9777_v18, %s10279_s3  ;;  %v4561_v60 = vpop.xlane.xlu0 %4560 }
0x1de1   : > { %9034 = vrcp.f32 %v4561_v60  ;;  %v5349_v60 = vld [vmem:[%s10301_s4 + $0x28] sm:$0xff] }
0x1de4   : > { %v4565_v61 = vpop.permute.xlu0 %4564 }
0x1de5   : > { %8473 = vmatpush3.msra.mxu0 %v4565_v61  ;;  %v8827_v61 = vpack.c.bf16 %v5349_v60, %v5348_v59 }
0x1de6   : > { %8482 = vmatprep.subr.mxu0 %v9135_v10 }
0x1deb   : > { %v9035_v62 = vpop.eup %9034 }
0x1dec   : > { %v4563_v0 = vmul.f32 %v9035_v62, %v9027_v13 }
0x1dee   : > { %8475 = vmatmul.mubr.msk.f32.vlgmr.msra.gmra.mrb[46].mxu0 %vm1150_vm0, %v4563_v0 }
0x1def   : > { %8483 = vmatpush3.msra.mxu0 %v4730_v1  ;;  %8484 = vmatprep.mubr.msk.f32.mxu0 %vm9134_vm1, %v9135_v10 }
0x1df0   : > { %8492 = vmatprep.subr.mxu0 %v9135_v10 }
0x1e53   : > { %v4726_v2 = vpop.xlane.xlu1 %4725 }
0x1e54   : > { %9036 = vrcp.f32 %v4726_v2 }
0x1e57   : > { %v4891_v4 = vpop.xlane.xlu0 %4890 }
0x1e58   : > { %9038 = vrcp.f32 %v4891_v4  ;;  %v7864_v4 = vld [vmem:[%s10302_s10] ss:$0 sm:$0xff] }
0x1e5b   : > { %v5056_v6 = vpop.xlane.xlu1 %5055  ;;  %v5060_v43 = vpop.permute.xlu0 %5059 }
0x1e5c   : > { %9040 = vrcp.f32 %v5056_v6 }
0x1e5e   : > { %v9037_v8 = vpop.eup %9036 }
0x1e5f   : > { %v4728_v9 = vmul.f32 %v9037_v8, %v9029_v54  ;;  %v4895_v11 = vpop.permute.xlu1 %4894  ;;  %v5345_v54 = vld [vmem:[%s10301_s4 + $0x8] sm:$0xff]  ;;  %v7865_v8 = vld [vmem:[%s10303_s27] ss:$0 sm:$0xff] }
0x1e61   : > { %8485 = vmatmul.mubr.msk.f32.vlgmr.msra.gmra.mrb[48].mxu0 %vm1150_vm0, %v4728_v9 }
0x1e62   : > { %v9039_v12 = vpop.eup %9038  ;;  %8493 = vmatpush3.msra.mxu0 %v4895_v11  ;;  %8494 = vmatprep.mubr.msk.f32.mxu0 %vm9134_vm1, %v9135_v10 }
0x1e63   : > { %v4893_v14 = vmul.f32 %v9039_v12, %v9031_v56  ;;  %8502 = vmatprep.subr.mxu0 %v9135_v10  ;;  %v8821_v56 = vpack.c.bf16 %v5345_v54, %v5344_v53  ;;  %v5350_v12 = vld [vmem:[%s10301_s4 + $0x30] sm:$0xff] }
0x1e65   : > { %8495 = vmatmul.mubr.msk.f32.vlgmr.msra.gmra.mrb[50].mxu0 %vm1150_vm0, %v4893_v14  ;;  %v5351_v14 = vld [vmem:[%s10301_s4 + $0x38] sm:$0xff] }
0x1e66   : > { %v9041_v17 = vpop.eup %9040  ;;  %8503 = vmatpush3.msra.mxu0 %v5060_v43  ;;  %8504 = vmatprep.mubr.msk.f32.mxu0 %vm9134_vm1, %v9135_v10  ;;  %v8830_v43 = vpack.c.bf16 %v5351_v14, %v5350_v12 }
0x1e67   : > { %v5058_v18 = vmul.f32 %v9041_v17, %v9033_v58  ;;  %8814 = vmatprep.subr.bf16.mxu0 %v9133_v3  ;;  %v8824_v58 = vpack.c.bf16 %v5347_v57, %v5346_v55  ;;  %v7866_v17 = vld [vmem:[%s10304_s7] ss:$0 sm:$0xff]  ;;  %s10306_s7 = sld [smem:[#allocation35_spill]] }
0x1e69   : > { %8505 = vmatmul.mubr.msk.f32.vlgmr.msra.gmra.mrb[52].mxu0 %vm1150_vm0, %v5058_v18 }
0x1e6a   : > { %8526 = vmatprep.mubr.msk.f32.mxu0 %vm9134_vm1, %v9135_v10  ;;  %8816 = vmatpush3.bf16.msra.mxu0 %v8815_v50 }
0x1e6b   : > { %8817 = vmatprep.subr.bf16.mxu0 %v9133_v3 }
0x1e6d   : > { %s10307_s9 = smov %s10306_s7 }
0x1ec1   : > { %v4636_v19 = vpop.f32.mrb[46].mxu0 }
0x1ec2   : > { %v8476_v20 = vpop.f32.mrb[47].mxu0 }
0x1f34   : > { %v4801_v63 = vpop.f32.mrb[48].mxu0 }
0x1f35   : > { %5136 = vrot.lane.b32.xlu1 %v4801_v63, %s10286_s22  ;;  %v8486_v26 = vpop.f32.mrb[49].mxu0 }
0x1f38   : > { %v4966_v27 = vpop.f32.mrb[50].mxu0 }
0x1f39   : > { %5140 = vrot.lane.b32.xlu0 %v4966_v27, %s10287_s16  ;;  %v8496_v28 = vpop.f32.mrb[51].mxu0 }
0x1f3c   : > { %v5131_v29 = vpop.f32.mrb[52].mxu0 }
0x1f3d   : > { %5144 = vrot.lane.b32.xlu1 %v5131_v29, %s10276_s26  ;;  %v8506_v30 = vpop.f32.mrb[53].mxu0 }
0x1fa7   : > { %v5137_v31 = vpop.permute.xlu1 %5136 }
0x1fa8   : > { %v5147_v33 = vsel %vm1150_vm0, %v4636_v19, %v5137_v31  ;;  %v7872_v31 = vld [vmem:[%s10277_s0 + $0x20] sm:$0xff] }
0x1fab   : > { %v5141_v32 = vpop.permute.xlu0 %5140 }
0x1fac   : > { %v5148_v34 = vsel %vm1996_vm3, %v5147_v33, %v5141_v32  ;;  %v7873_v32 = vld [vmem:[%s10277_s0 + $0x28] sm:$0xff] }
0x1fad   : > { %v8833_v33 = vpack.c.bf16 %v7873_v32, %v7872_v31 }
0x1faf   : > { %v5145_v35 = vpop.permute.xlu1 %5144 }
0x1fb0   : > { %v5149_v36 = vsel %vm1998_vm4, %v5148_v34, %v5145_v35  ;;  %v7874_v34 = vld [vmem:[%s10277_s0 + $0x30] sm:$0xff]  ;;  %v7875_v35 = vld [vmem:[%s10277_s0 + $0x38] sm:$0xff] }
0x1fb1   : > { %8516 = vmatmul.mubr.msk.f32.vlgmr.msra.gmra.mrb[36].mxu1 %vm1248_vm2, %v5149_v36  ;;  %v8836_v36 = vpack.c.bf16 %v7875_v35, %v7874_v34 }
0x1fb2   : > { %8545 = vmatprep.mubr.msk.f32.mxu1 %vm9134_vm1, %v9135_v10  ;;  %8822 = vmatpush3.bf16.msra.mxu1 %v8821_v56 }
0x1fb3   : > { %8823 = vmatprep.subr.bf16.mxu1 %v9133_v3 }
0x1fb6   : > { %8825 = vmatpush3.bf16.msra.mxu1 %v8824_v58 }
0x1fb7   : > { %8826 = vmatprep.subr.bf16.mxu1 %v9133_v3 }
0x1fba   : > { %8828 = vmatpush3.bf16.msra.mxu1 %v8827_v61 }
0x1fbb   : > { %8829 = vmatprep.subr.bf16.mxu1 %v9133_v3 }
0x1fbe   : > { %8831 = vmatpush3.bf16.msra.mxu1 %v8830_v43 }
0x1fbf   : > { %8569 = vmatprep.subr.mxu1 %v9135_v10 }
0x2084   : > { %v5225_v38 = vpop.f32.mrb[36].mxu1 }
0x2085   : > { %v5226_v40 = vadd.f32 %v7862_v37, %v5225_v38  ;;  %v8517_v41 = vpop.f32.mrb[37].mxu1 }
0x2087   : > { %v5229_v42 = vadd.f32 %v5226_v40, %v9771_v16  ;;  %v5261_v16 = vld [vmem:[%s10299_s30 + $0x10] sm:$0xff]  ;;  %s10305_s30 = sld [smem:[#allocation34_spill]] }
0x2088   : > { %v8818_v52 = vpack.c.bf16 %v5262_v51, %v5261_v16 }
0x2089   : > { %v5232_v44 = vsel %vm4266_vm10, %v5229_v42, 0.0 }
0x208a   : > { %5233 = vadd.xlane.f32.xlu0 %v5232_v44  ;;  %8819 = vmatpush3.bf16.msra.mxu0 %v8818_v52 }
0x208b   : > { %8832 = vmatprep.subr.bf16.mxu0 %v9133_v3 }
0x208d   : > { %v7868_v22 = vld [vmem:[%s10305_s30] ss:$0 sm:$0xff] }
0x2117   : > { %v5234_v13 = vpop.xlane.xlu0 %5233 }
0x2118   : > { %v5235_v45 = vmul.f32 0.03125, %v5234_v13  ;;  %v7871_v13 = vld [vmem:[%s9328_s13] ss:$0 sm:$0xff] }
0x211a   : > { %v5236_v46 = vsub.f32 %v5229_v42, %v5235_v45  ;;  %v7870_v42 = vld [vmem:[%s10306_s7] ss:$0 sm:$0xff] }
0x211c   : > { %v5237_v47 = vmul.f32 %v5236_v46, %v5236_v46 }
0x211e   : > { %v5238_v48 = vsel %vm4266_vm10, %v5237_v47, 0.0  ;;  %v7882_v47 = vld [vmem:[%s10278_s11 + $0x1] ss:$0 sm:$0xff] }
0x211f   : > { %5239 = vadd.xlane.f32.xlu1 %v5238_v48 }
0x21ac   : > { %v5240_v62 = vpop.xlane.xlu1 %5239 }
0x21ad   : > { %v5241_v0 = vmul.f32 0.03125, %v5240_v62 }
0x21af   : > { %v5242_v1 = vadd.f32 1e-05, %v5241_v0 }
0x21b1   : > { %9042 = vrsqrt.f32 %v5242_v1 }
0x21bb   : > { %v9043_v2 = vpop.eup %9042 }
0x21bc   : > { %v5244_v6 = vmul.f32 %v9043_v2, %v5236_v46 }
0x21be   : > { %v5251_v9 = vmul.f32 %v7864_v4, %v5244_v6 }
0x21c0   : > { %v5258_v11 = vadd.f32 %v7865_v8, %v5251_v9 }
0x21c2   : > { %8527 = vmatmul.mubr.msk.f32.vlgmr.msra.gmra.mrb[54].mxu0 %vm1248_vm2, %v5258_v11 }
0x21c3   : > { %8556 = vmatprep.mubr.msk.f32.mxu0 %vm9134_vm1, %v9135_v10  ;;  %8834 = vmatpush3.bf16.msra.mxu0 %v8833_v33 }
0x21c4   : > { %8835 = vmatprep.subr.bf16.mxu0 %v9133_v3 }
0x21c7   : > { %8837 = vmatpush3.bf16.msra.mxu0 %v8836_v36 }
0x21c8   : > { %8559 = vmatprep.subr.mxu0 %v9135_v10 }
0x2295   : > { %v5339_v18 = vpop.f32.mrb[54].mxu0 }
0x2296   : > { %v5340_v19 = vadd.f32 %v7866_v17, %v5339_v18  ;;  %v8528_v20 = vpop.f32.mrb[55].mxu0 }
0x2298   : > { %v5343_v21 = vmax.f32 %v5340_v19, 0.0 }
0x229a   : > { %8546 = vmatmul.mubr.msk.f32.vlgmr.msra.gmra.mrb[38].mxu1 %vm2210_vm5, %v5343_v21 }
0x229b   : > { %8571 = vmatprep.mubr.msk.f32.mxu1 %vm9134_vm1, %v9135_v10 }
0x236d   : > { %v5428_v23 = vpop.f32.mrb[38].mxu1 }
0x236e   : > { %v5429_v24 = vadd.f32 %v7868_v22, %v5428_v23  ;;  %v8547_v25 = vpop.f32.mrb[39].mxu1 }
0x2370   : > { %v5432_v39 = vadd.f32 %v5429_v24, %v5258_v11 }
0x2372   : > { %v5435_v63 = vsel %vm4266_vm10, %v5432_v39, 0.0 }
0x2373   : > { %5436 = vadd.xlane.f32.xlu0 %v5435_v63 }
0x2400   : > { %v5437_v26 = vpop.xlane.xlu0 %5436 }
0x2401   : > { %v5438_v27 = vmul.f32 0.03125, %v5437_v26 }
0x2403   : > { %v5439_v28 = vsub.f32 %v5432_v39, %v5438_v27 }
0x2405   : > { %v5440_v29 = vmul.f32 %v5439_v28, %v5439_v28 }
0x2407   : > { %v5441_v30 = vsel %vm4266_vm10, %v5440_v29, 0.0 }
0x2408   : > { %5442 = vadd.xlane.f32.xlu0 %v5441_v30 }
0x2495   : > { %v5443_v37 = vpop.xlane.xlu0 %5442 }
0x2496   : > { %v5444_v38 = vmul.f32 0.03125, %v5443_v37 }
0x2498   : > { %v5445_v40 = vadd.f32 1e-05, %v5444_v38 }
0x249a   : > { %9044 = vrsqrt.f32 %v5445_v40 }
0x24a4   : > { %v9045_v41 = vpop.eup %9044 }
0x24a5   : > { %v5447_v44 = vmul.f32 %v9045_v41, %v5439_v28 }
0x24a7   : > { %v5454_v45 = vmul.f32 %v7870_v42, %v5447_v44 }
0x24a9   : > { %v9898_v46 = vadd.f32 %v7871_v13, %v5454_v45 }
0x24ab   : > { %8557 = vmatmul.mubr.msk.f32.vlgmr.msra.gmra.mrb[56].mxu0 %vm1248_vm2, %v9898_v46 }
0x24ac   : > { %8561 = vmatprep.mubr.msk.f32.mxu0 %vm9134_vm1, %v9135_v10 }
0x257e   : > { %v5551_v48 = vpop.f32.mrb[56].mxu0 }
0x257f   : > { %v9905_v49 = vadd.f32 %v7882_v47, %v5551_v48  ;;  %v8558_v15 = vpop.f32.mrb[57].mxu0 }
0x2581   : > { %5725 = vrot.lane.b32.xlu0 %v9905_v49, %s10295_s20  ;;  %5557 = vrot.lane.b32.xlu1 %v9905_v49, %s10290_s14  ;;  %v5555_v50 = vmul.f32 0.35355338, %v9905_v49 }
0x2585   : > { %5890 = vrot.lane.b32.xlu0 %v5555_v50, %s10280_s5  ;;  %5723 = vrot.lane.b32.xlu1 %v5555_v50, %s10294_s15 }
0x2589   : > { %6057 = vrot.lane.b32.xlu0 %v5555_v50, %s10281_s6  ;;  %5892 = vrot.lane.b32.xlu1 %v9905_v49, %s10296_s24 }
0x258d   : > { %6059 = vrot.lane.b32.xlu1 %v9905_v49, %s10279_s3 }
0x25f3   : > { %v5726_v16 = vpop.permute.xlu0 %5725  ;;  %v5558_v51 = vpop.permute.xlu1 %5557 }
0x25f4   : > { %8560 = vmatpush3.xpose.msk.msra.mxu0 %vm1150_vm0, %v5558_v51  ;;  %8570 = vmatpush3.xpose.msk.msra.mxu1 %vm1150_vm0, %v5726_v16  ;;  %v7878_v16 = vld [vmem:[%s10285_s18 + $0x28] sm:$0xff] }
0x25f5   : > { %8579 = vmatprep.subr.mxu1 %v9135_v10  ;;  %8564 = vmatprep.subr.mxu0 %v9135_v10 }
0x25f7   : > { %v5724_v52 = vpop.permute.xlu1 %5723  ;;  %8562 = vmatmul.mubr.msk.f32.vlgmr.msra.gmra.mrb[58].mxu0 %vm1150_vm0, %v5555_v50  ;;  %v5891_v54 = vpop.permute.xlu0 %5890  ;;  %v7877_v50 = vld [vmem:[%s10285_s18 + $0x20] sm:$0xff] }
0x25f8   : > { %8572 = vmatmul.mubr.msk.f32.vlgmr.msra.gmra.mrb[40].mxu1 %vm1150_vm0, %v5724_v52  ;;  %8566 = vmatprep.mubr.msk.f32.mxu0 %vm9134_vm1, %v9135_v10  ;;  %v8839_v51 = vpack.c.bf16 %v7878_v16, %v7877_v50 }
0x25f9   : > { %8581 = vmatprep.mubr.msk.f32.mxu1 %vm9134_vm1, %v9135_v10 }
0x25fb   : > { %v5893_v53 = vpop.permute.xlu1 %5892  ;;  %v6058_v56 = vpop.permute.xlu0 %6057 }
0x25fc   : > { %8580 = vmatpush3.xpose.msk.msra.mxu1 %vm1150_vm0, %v5893_v53 }
0x25fd   : > { %8589 = vmatprep.subr.mxu1 %v9135_v10 }
0x25ff   : > { %8582 = vmatmul.mubr.msk.f32.vlgmr.msra.gmra.mrb[42].mxu1 %vm1150_vm0, %v5891_v54  ;;  %v6060_v55 = vpop.permute.xlu1 %6059 }
0x2600   : > { %8590 = vmatpush3.xpose.msk.msra.mxu1 %vm1150_vm0, %v6060_v55  ;;  %8591 = vmatprep.mubr.msk.f32.mxu1 %vm9134_vm1, %v9135_v10 }
0x2601   : > { %8838 = vmatprep.subr.bf16.mxu1 %v9133_v3 }
0x2603   : > { %8592 = vmatmul.mubr.msk.f32.vlgmr.msra.gmra.mrb[44].mxu1 %vm1150_vm0, %v6058_v56  ;;  %v7879_v56 = vld [vmem:[%s10285_s18 + $0x30] sm:$0xff] }
0x2604   : > { %8607 = vmatprep.mubr.msk.f32.mxu1 %vm9134_vm1, %v9135_v10  ;;  %8840 = vmatpush3.bf16.msra.mxu1 %v8839_v51 }
0x2605   : > { %8841 = vmatprep.subr.bf16.mxu1 %v9133_v3 }
0x26ca   : > { %v5630_v57 = vpop.f32.mrb[58].mxu0 }
0x26cb   : > { %v5634_v58 = vsel %vm9677_vm6, %v5630_v57, -1e+30  ;;  %v8563_v59 = vpop.f32.mrb[59].mxu0  ;;  %v5797_v60 = vpop.f32.mrb[40].mxu1  ;;  %v7880_v57 = vld [vmem:[%s10285_s18 + $0x38] sm:$0xff] }
0x26cc   : > { %v5635_v61 = vsel %vm3577_vm7, %v5634_v58, -inf  ;;  %v5801_v62 = vsel %vm9677_vm6, %v5797_v60, -1e+30  ;;  %v8573_v0 = vpop.f32.mrb[41].mxu1 }
0x26cd   : > { %v5802_v1 = vsel %vm3577_vm7, %v5801_v62, -inf  ;;  %5636 = vmax.xlane.f32.xlu1 %v5635_v61 }
0x26ce   : > { %5803 = vmax.xlane.f32.xlu0 %v5802_v1 }
0x26d2   : > { %v5964_v2 = vpop.f32.mrb[42].mxu1 }
0x26d3   : > { %v5968_v4 = vsel %vm9677_vm6, %v5964_v2, -1e+30  ;;  %v8583_v6 = vpop.f32.mrb[43].mxu1 }
0x26d4   : > { %v5969_v8 = vsel %vm3577_vm7, %v5968_v4, -inf }
0x26d5   : > { %5970 = vmax.xlane.f32.xlu0 %v5969_v8 }
0x26d6   : > { %v6131_v9 = vpop.f32.mrb[44].mxu1 }
0x26d7   : > { %v6135_v11 = vsel %vm9677_vm6, %v6131_v9, -1e+30  ;;  %v8593_v12 = vpop.f32.mrb[45].mxu1  ;;  %v7900_v9 = vld [vmem:[%s10288_s8 + $0x1] ss:$0 sm:$0xff] }
0x26d8   : > { %v6136_v14 = vsel %vm3577_vm7, %v6135_v11, -inf }
0x26d9   : > { %6137 = vmax.xlane.f32.xlu1 %v6136_v14 }
0x26ea   : > { %5813 = vrot.lane.b32.xlu1 %v9905_v49, %s10284_s23  ;;  %s10315_s23 = sld [smem:[#allocation38_spill]] }
0x275a   : > { %v5637_v43 = vpop.xlane.xlu1 %5636 }
0x275b   : > { %v5638_v17 = vsub.f32 %v5634_v58, %v5637_v43  ;;  %v5804_v18 = vpop.xlane.xlu0 %5803  ;;  %v8842_v58 = vpack.c.bf16 %v7880_v57, %v7879_v56 }
0x275c   : > { %v5805_v19 = vsub.f32 %v5801_v62, %v5804_v18  ;;  %v7906_v18 = vld [vmem:[%s10289_s12 + $0x20] sm:$0xff] }
0x275d   : > { %v5639_v20 = vmul.f32 1.442695, %v5638_v17  ;;  %8843 = vmatpush3.bf16.msra.mxu1 %v8842_v58 }
0x275e   : > { %v5806_v21 = vmul.f32 1.442695, %v5805_v19  ;;  %8850 = vmatprep.subr.bf16.mxu1 %v9133_v3  ;;  %v7907_v19 = vld [vmem:[%s10289_s12 + $0x28] sm:$0xff] }
0x275f   : > { %9046 = vpow2.f32 %v5639_v20  ;;  %v8958_v20 = vpack.i.bf16 %v7907_v19, %v7906_v18 }
0x2760   : > { %9048 = vpow2.f32 %v5806_v21 }
0x2762   : > { %v5971_v28 = vpop.xlane.xlu0 %5970 }
0x2763   : > { %v5972_v29 = vsub.f32 %v5968_v4, %v5971_v28 }
0x2765   : > { %v5973_v30 = vmul.f32 1.442695, %v5972_v29  ;;  %v8845_v29 = vpack.c.bf16 %v7907_v19, %v7906_v18 }
0x2766   : > { %v6138_v22 = vpop.xlane.xlu1 %6137 }
0x2767   : > { %v6139_v23 = vsub.f32 %v6135_v11, %v6138_v22 }
0x2769   : > { %v9047_v24 = vpop.eup %9046  ;;  %v6140_v5 = vmul.f32 1.442695, %v6139_v23 }
0x276a   : > { %v9049_v25 = vpop.eup %9048  ;;  %v5641_v39 = vsel %vm3577_vm7, %v9047_v24, 0.0  ;;  %v5814_v33 = vpop.permute.xlu1 %5813 }
0x276b   : > { %9050 = vpow2.f32 %v6140_v5  ;;  %5642 = vadd.xlane.f32.xlu0 %v5641_v39  ;;  %v5808_v63 = vsel %vm3577_vm7, %v9049_v25, 0.0  ;;  %v7909_v39 = vld [vmem:[%s10289_s12 + $0x38] sm:$0xff] }
0x276c   : > { %5809 = vadd.xlane.f32.xlu1 %v5808_v63  ;;  %9052 = vpow2.f32 %v5973_v30 }
0x2775   : > { %v9051_v26 = vpop.eup %9050 }
0x2776   : > { %v6142_v27 = vsel %vm3577_vm7, %v9051_v26, 0.0  ;;  %v9053_v31 = vpop.eup %9052 }
0x2777   : > { %6143 = vadd.xlane.f32.xlu1 %v6142_v27  ;;  %v5975_v32 = vsel %vm3577_vm7, %v9053_v31, 0.0 }
0x2781   : > { %5646 = vrot.lane.b32.xlu0 %v9905_v49, %s10273_s2 }
0x2788   : > { %5980 = vrot.lane.b32.xlu1 %v9905_v49, %s10274_s1 }
0x27a0   : > { %5976 = vadd.xlane.f32.xlu0 %v5975_v32 }
0x27b6   : > { %6147 = vrot.lane.b32.xlu0 %v9905_v49, %s10275_s28 }
0x27f8   : > { %v5643_v34 = vpop.xlane.xlu0 %5642 }
0x27f9   : > { %9054 = vrcp.f32 %v5643_v34  ;;  %v5810_v35 = vpop.xlane.xlu1 %5809 }
0x27fa   : > { %9056 = vrcp.f32 %v5810_v35 }
0x27fc   : > { %v5647_v36 = vpop.permute.xlu0 %5646 }
0x27fd   : > { %8565 = vmatpush3.msk.msra.mxu0 %vm3595_vm8, %v5647_v36 }
0x27fe   : > { %8574 = vmatprep.subr.mxu0 %v9135_v10 }
0x2803   : > { %v9055_v37 = vpop.eup %9054 }
0x2804   : > { %v5645_v38 = vmul.f32 %v9055_v37, %v9047_v24  ;;  %v6144_v40 = vpop.xlane.xlu1 %6143  ;;  %v9057_v41 = vpop.eup %9056 }
0x2805   : > { %v5812_v42 = vmul.f32 %v9057_v41, %v9049_v25  ;;  %v7908_v25 = vld [vmem:[%s10289_s12 + $0x30] sm:$0xff]  ;;  %v7904_v41 = vld [vmem:[%s10292_s19 + $0x1] ss:$0 sm:$0xff] }
0x2806   : > { %8567 = vmatmul.mubr.msk.f32.vlgmr.msra.gmra.mrb[60].mxu0 %vm3591_vm9, %v5645_v38  ;;  %v8963_v63 = vpack.i.bf16 %v7909_v39, %v7908_v25  ;;  %v8848_v30 = vpack.c.bf16 %v7909_v39, %v7908_v25 }
0x2807   : > { %8575 = vmatpush3.msk.msra.mxu0 %vm3595_vm8, %v5814_v33  ;;  %8576 = vmatprep.mubr.msk.f32.mxu0 %vm9134_vm1, %v9135_v10 }
0x2808   : > { %v5981_v44 = vpop.permute.xlu1 %5980  ;;  %8584 = vmatprep.subr.mxu0 %v9135_v10 }
0x280a   : > { %8577 = vmatmul.mubr.msk.f32.vlgmr.msra.gmra.mrb[62].mxu0 %vm3591_vm9, %v5812_v42 }
0x280b   : > { %8585 = vmatpush3.msk.msra.mxu0 %vm3595_vm8, %v5981_v44  ;;  %8586 = vmatprep.mubr.msk.f32.mxu0 %vm9134_vm1, %v9135_v10  ;;  %v7905_v44 = vld [vmem:[%s10293_s21 + $0x1] ss:$0 sm:$0xff] }
0x280c   : > { %8594 = vmatprep.subr.mxu0 %v9135_v10 }
0x282d   : > { %v5977_v13 = vpop.xlane.xlu0 %5976 }
0x282e   : > { %9058 = vrcp.f32 %v5977_v13 }
0x282f   : > { %9060 = vrcp.f32 %v6144_v40 }
0x2831   : > { %v6148_v49 = vpop.permute.xlu0 %6147 }
0x2838   : > { %v9059_v45 = vpop.eup %9058 }
0x2839   : > { %v5979_v47 = vmul.f32 %v9059_v45, %v9053_v31  ;;  %v9061_v48 = vpop.eup %9060  ;;  %v7916_v31 = vld [vmem:[%s10291_s17 + $0x1] ss:$0 sm:$0xff] }
0x283a   : > { %v6146_v15 = vmul.f32 %v9061_v48, %v9051_v26 }
0x283b   : > { %8587 = vmatmul.mubr.msk.f32.vlgmr.msra.gmra.mrb[64].mxu0 %vm3591_vm9, %v5979_v47 }
0x283c   : > { %8595 = vmatpush3.msk.msra.mxu0 %vm3595_vm8, %v6148_v49  ;;  %8596 = vmatprep.mubr.msk.f32.mxu0 %vm9134_vm1, %v9135_v10 }
0x283d   : > { %8844 = vmatprep.subr.bf16.mxu0 %v9133_v3 }
0x283f   : > { %8597 = vmatmul.mubr.msk.f32.vlgmr.msra.gmra.mrb[66].mxu0 %vm3591_vm9, %v6146_v15 }
0x2840   : > { %8618 = vmatprep.mubr.msk.f32.mxu0 %vm9134_vm1, %v9135_v10  ;;  %8846 = vmatpush3.bf16.msra.mxu0 %v8845_v29 }
0x2841   : > { %8847 = vmatprep.subr.bf16.mxu0 %v9133_v3 }
0x2844   : > { %8849 = vmatpush3.bf16.msra.mxu0 %v8848_v30 }
0x2845   : > { %8632 = vmatprep.subr.mxu0 %v9135_v10 }
0x28d9   : > { %v5719_v52 = vpop.f32.mrb[60].mxu0 }
0x28da   : > { %v8568_v53 = vpop.f32.mrb[61].mxu0 }
0x28dd   : > { %v5886_v54 = vpop.f32.mrb[62].mxu0 }
0x28de   : > { %6225 = vrot.lane.b32.xlu1 %v5886_v54, %s10286_s22  ;;  %v8578_v55 = vpop.f32.mrb[63].mxu0 }
0x290e   : > { %v6053_v59 = vpop.f32.mrb[64].mxu0 }
0x290f   : > { %6229 = vrot.lane.b32.xlu0 %v6053_v59, %s10287_s16  ;;  %v8588_v60 = vpop.f32.mrb[65].mxu0 }
0x2912   : > { %v6220_v61 = vpop.f32.mrb[66].mxu0 }
0x2913   : > { %6233 = vrot.lane.b32.xlu1 %v6220_v61, %s10276_s26  ;;  %v8598_v62 = vpop.f32.mrb[67].mxu0 }
0x2950   : > { %v6226_v0 = vpop.permute.xlu1 %6225 }
0x2951   : > { %v6236_v2 = vsel %vm1150_vm0, %v5719_v52, %v6226_v0 }
0x2981   : > { %v6230_v1 = vpop.permute.xlu0 %6229 }
0x2982   : > { %v6237_v4 = vsel %vm1996_vm3, %v6236_v2, %v6230_v1 }
0x2985   : > { %v6234_v6 = vpop.permute.xlu1 %6233 }
0x2986   : > { %v6238_v8 = vsel %vm1998_vm4, %v6237_v4, %v6234_v6 }
0x2987   : > { %8608 = vmatmul.mubr.msk.f32.vlgmr.msra.gmra.mrb[46].mxu1 %vm1248_vm2, %v6238_v8 }
0x2988   : > { %8629 = vmatprep.mubr.msk.f32.mxu1 %vm9134_vm1, %v9135_v10 }
0x2a5a   : > { %v6314_v11 = vpop.f32.mrb[46].mxu1 }
0x2a5b   : > { %v6315_v12 = vadd.f32 %v7900_v9, %v6314_v11  ;;  %v8609_v14 = vpop.f32.mrb[47].mxu1 }
0x2a5d   : > { %v6318_v43 = vadd.f32 %v6315_v12, %v9898_v46 }
0x2a5f   : > { %v6323_v17 = vsel %vm4266_vm10, %v6318_v43, 0.0 }
0x2a60   : > { %6324 = vadd.xlane.f32.xlu0 %v6323_v17 }
0x2a76   : > { %8959 = vrot.lane.b32.xlu0 %v8958_v20, %s10290_s14 }
0x2a7a   : > { %6460 = vrot.lane.b32.xlu0 %v7916_v31, %s10290_s14 }
0x2aed   : > { %v6325_v21 = vpop.xlane.xlu0 %6324 }
0x2aee   : > { %v6326_v22 = vmul.f32 0.03125, %v6325_v21 }
0x2af0   : > { %v6327_v23 = vsub.f32 %v6318_v43, %v6326_v22 }
0x2af1   : > { %v8960_v46 = vpop.permute.xlu0 %8959 }
0x2af2   : > { %v6328_v24 = vmul.f32 %v6327_v23, %v6327_v23  ;;  %v8962_v26 = vunpack.i.h.bf16 %v8960_v46  ;;  %v8961_v27 = vunpack.i.l.bf16 %v8960_v46 }
0x2af4   : > { %v6329_v5 = vsel %vm4266_vm10, %v6328_v24, 0.0  ;;  %v8851_v28 = vpack.c.bf16 %v8962_v26, %v8961_v27 }
0x2af5   : > { %6330 = vadd.xlane.f32.xlu1 %v6329_v5  ;;  %v6461_v47 = vpop.permute.xlu0 %6460 }
0x2af6   : > { %8852 = vmatpush3.bf16.msra.mxu1 %v8851_v28 }
0x2af7   : > { %8853 = vmatprep.subr.bf16.mxu1 %v9133_v3 }
0x2b06   : > { %8964 = vrot.lane.b32.xlu1 %v8963_v63, %s10290_s14 }
0x2b82   : > { %v6331_v32 = vpop.xlane.xlu1 %6330 }
0x2b83   : > { %v6332_v33 = vmul.f32 0.03125, %v6331_v32 }
0x2b85   : > { %v6333_v34 = vadd.f32 1e-05, %v6332_v33 }
0x2b86   : > { %v8965_v35 = vpop.permute.xlu1 %8964 }
0x2b87   : > { %9062 = vrsqrt.f32 %v6333_v34  ;;  %v8967_v36 = vunpack.i.h.bf16 %v8965_v35  ;;  %v8966_v37 = vunpack.i.l.bf16 %v8965_v35 }
0x2b89   : > { %v8854_v38 = vpack.c.bf16 %v8967_v36, %v8966_v37 }
0x2b8b   : > { %8855 = vmatpush3.bf16.msra.mxu1 %v8854_v38 }
0x2b8c   : > { %8642 = vmatprep.subr.mxu1 %v9135_v10 }
0x2b8e   : > { %8630 = vmatmul.mubr.msk.f32.vlgmr.msra.gmra.mrb[48].mxu1 %vm1248_vm2, %v9762_v7 }
0x2b8f   : > { %8644 = vmatprep.mubr.msk.f32.mxu1 %vm9134_vm1, %v9135_v10 }
0x2b91   : > { %v9063_v40 = vpop.eup %9062 }
0x2b92   : > { %v6335_v42 = vmul.f32 %v9063_v40, %v6327_v23 }
0x2b94   : > { %v6342_v13 = vmul.f32 %v7904_v41, %v6335_v42 }
0x2b96   : > { %v10020_v45 = vadd.f32 %v7905_v44, %v6342_v13 }
0x2b98   : > { %8619 = vmatmul.mubr.msk.f32.vlgmr.msra.gmra.mrb[68].mxu0 %vm1248_vm2, %v10020_v45 }
0x2b99   : > { %8634 = vmatprep.mubr.msk.f32.mxu0 %vm9134_vm1, %v9135_v10 }
0x2c61   : > { %v6529_v48 = vpop.f32.mrb[48].mxu1 }
0x2c62   : > { %v10026_v49 = vadd.f32 %v6529_v48, %v6461_v47  ;;  %v8631_v7 = vpop.f32.mrb[49].mxu1 }
0x2c63   : > { %v7911_v7 = vld [vmem:[%s10297_s25 + $0x20] sm:$0xff] }
0x2c64   : > { %6698 = vrot.lane.b32.xlu1 %v10026_v49, %s10294_s15  ;;  %8633 = vmatpush3.xpose.msk.msra.mxu0 %vm1150_vm0, %v10026_v49 }
0x2c65   : > { %8637 = vmatprep.subr.mxu0 %v9135_v10 }
0x2c68   : > { %6863 = vrot.lane.b32.xlu1 %v10026_v49, %s10280_s5 }
0x2c6b   : > { %v6439_v15 = vpop.f32.mrb[68].mxu0 }
0x2c6c   : > { %v6440_v50 = vadd.f32 %v7916_v31, %v6439_v15  ;;  %v8620_v16 = vpop.f32.mrb[69].mxu0  ;;  %7028 = vrot.lane.b32.xlu1 %v10026_v49, %s10281_s6  ;;  %v7912_v15 = vld [vmem:[%s10297_s25 + $0x28] sm:$0xff] }
0x2c6d   : > { %v7913_v16 = vld [vmem:[%s10297_s25 + $0x30] sm:$0xff] }
0x2c6e   : > { %v6443_v51 = vmul.f32 0.35355338, %v6440_v50  ;;  %v8857_v50 = vpack.c.bf16 %v7912_v15, %v7911_v7 }
0x2c70   : > { %6696 = vrot.lane.b32.xlu0 %v6443_v51, %s10294_s15  ;;  %8635 = vmatmul.mubr.msk.f32.vlgmr.msra.gmra.mrb[70].mxu0 %vm1150_vm0, %v6443_v51  ;;  %s10314_s15 = sld [smem:[#allocation4_spill]] }
0x2c71   : > { %8639 = vmatprep.mubr.msk.f32.mxu0 %vm9134_vm1, %v9135_v10 }
0x2c74   : > { %6861 = vrot.lane.b32.xlu0 %v6443_v51, %s10280_s5  ;;  %s10308_s5 = sld [smem:[#allocation31_spill]] }
0x2c78   : > { %7026 = vrot.lane.b32.xlu0 %v6443_v51, %s10281_s6  ;;  %v7914_v51 = vld [vmem:[%s10297_s25 + $0x38] sm:$0xff]  ;;  %s10312_s6 = sld [smem:[#allocation40_spill]] }
0x2cd6   : > { %v6699_v52 = vpop.permute.xlu1 %6698 }
0x2cd7   : > { %8643 = vmatpush3.xpose.msk.msra.mxu1 %vm1150_vm0, %v6699_v52  ;;  %v8860_v52 = vpack.c.bf16 %v7914_v51, %v7913_v16 }
0x2cd8   : > { %8652 = vmatprep.subr.mxu1 %v9135_v10 }
0x2cda   : > { %v6864_v53 = vpop.permute.xlu1 %6863 }
0x2cde   : > { %v7029_v56 = vpop.permute.xlu1 %7028 }
0x2ce2   : > { %v6697_v54 = vpop.permute.xlu0 %6696 }
0x2ce3   : > { %8645 = vmatmul.mubr.msk.f32.vlgmr.msra.gmra.mrb[50].mxu1 %vm1150_vm0, %v6697_v54 }
0x2ce4   : > { %8653 = vmatpush3.xpose.msk.msra.mxu1 %vm1150_vm0, %v6864_v53  ;;  %8654 = vmatprep.mubr.msk.f32.mxu1 %vm9134_vm1, %v9135_v10 }
0x2ce5   : > { %8662 = vmatprep.subr.mxu1 %v9135_v10 }
0x2ce6   : > { %v6862_v55 = vpop.permute.xlu0 %6861 }
0x2ce7   : > { %8655 = vmatmul.mubr.msk.f32.vlgmr.msra.gmra.mrb[52].mxu1 %vm1150_vm0, %v6862_v55 }
0x2ce8   : > { %8663 = vmatpush3.xpose.msk.msra.mxu1 %vm1150_vm0, %v7029_v56  ;;  %8664 = vmatprep.mubr.msk.f32.mxu1 %vm9134_vm1, %v9135_v10 }
0x2ce9   : > { %8856 = vmatprep.subr.bf16.mxu1 %v9133_v3 }
0x2cea   : > { %v7027_v57 = vpop.permute.xlu0 %7026 }
0x2ceb   : > { %8665 = vmatmul.mubr.msk.f32.vlgmr.msra.gmra.mrb[54].mxu1 %vm1150_vm0, %v7027_v57 }
0x2cec   : > { %8680 = vmatprep.mubr.msk.f32.mxu1 %vm9134_vm1, %v9135_v10  ;;  %8858 = vmatpush3.bf16.msra.mxu1 %v8857_v50 }
0x2ced   : > { %8859 = vmatprep.subr.bf16.mxu1 %v9133_v3 }
0x2cf0   : > { %8861 = vmatpush3.bf16.msra.mxu1 %v8860_v52 }
0x2cf1   : > { %8868 = vmatprep.subr.bf16.mxu1 %v9133_v3 }
0x2d43   : > { %v6605_v58 = vpop.f32.mrb[70].mxu0 }
0x2d44   : > { %v8636_v59 = vpop.f32.mrb[71].mxu0  ;;  %v6609_v60 = vsel %vm4552_vm11, %v6605_v58, -inf }
0x2d45   : > { %6610 = vmax.xlane.f32.xlu1 %v6609_v60 }
0x2db6   : > { %v6770_v61 = vpop.f32.mrb[50].mxu1 }
0x2db7   : > { %v8646_v62 = vpop.f32.mrb[51].mxu1  ;;  %v6774_v0 = vsel %vm4552_vm11, %v6770_v61, -inf }
0x2db8   : > { %6775 = vmax.xlane.f32.xlu0 %v6774_v0 }
0x2dba   : > { %v6935_v1 = vpop.f32.mrb[52].mxu1 }
0x2dbb   : > { %v8656_v2 = vpop.f32.mrb[53].mxu1  ;;  %v6939_v4 = vsel %vm4552_vm11, %v6935_v1, -inf }
0x2dbc   : > { %6940 = vmax.xlane.f32.xlu0 %v6939_v4  ;;  %v7931_v2 = vld [vmem:[%s10298_s29 + $0x1] ss:$0 sm:$0xff] }
0x2dbe   : > { %v7100_v6 = vpop.f32.mrb[54].mxu1 }
0x2dbf   : > { %v8666_v8 = vpop.f32.mrb[55].mxu1  ;;  %v7104_v9 = vsel %vm4552_vm11, %v7100_v6, -inf }
0x2dc0   : > { %7105 = vmax.xlane.f32.xlu1 %v7104_v9 }
0x2dd1   : > { %6785 = vrot.lane.b32.xlu1 %v10026_v49, %s10295_s20  ;;  %s10313_s20 = sld [smem:[#allocation3_spill]] }
0x2dd2   : > { %v6611_v11 = vpop.xlane.xlu1 %6610 }
0x2dd3   : > { %v6612_v12 = vsub.f32 %v6605_v58, %v6611_v11 }
0x2dd5   : > { %v6613_v14 = vmul.f32 1.442695, %v6612_v12 }
0x2dd7   : > { %9064 = vpow2.f32 %v6613_v14 }
0x2de1   : > { %v9065_v43 = vpop.eup %9064 }
0x2de2   : > { %v6615_v17 = vsel %vm4552_vm11, %v9065_v43, 0.0 }
0x2de3   : > { %6616 = vadd.xlane.f32.xlu0 %v6615_v17 }
0x2df9   : > { %6620 = vrot.lane.b32.xlu0 %v10026_v49, %s10290_s14  ;;  %s10310_s14 = sld [smem:[#allocation36_spill]] }
0x2e45   : > { %v6776_v18 = vpop.xlane.xlu0 %6775 }
0x2e46   : > { %v6777_v19 = vsub.f32 %v6770_v61, %v6776_v18 }
0x2e48   : > { %v6778_v20 = vmul.f32 1.442695, %v6777_v19  ;;  %v7937_v19 = vld [vmem:[%s10308_s5 + $0x20] sm:$0xff] }
0x2e49   : > { %v6941_v21 = vpop.xlane.xlu0 %6940 }
0x2e4a   : > { %9066 = vpow2.f32 %v6778_v20  ;;  %v6942_v22 = vsub.f32 %v6935_v1, %v6941_v21  ;;  %v7938_v20 = vld [vmem:[%s10308_s5 + $0x28] sm:$0xff] }
0x2e4b   : > { %v8863_v21 = vpack.c.bf16 %v7938_v20, %v7937_v19 }
0x2e4c   : > { %v6943_v23 = vmul.f32 1.442695, %v6942_v22  ;;  %v7940_v22 = vld [vmem:[%s10308_s5 + $0x38] sm:$0xff] }
0x2e4d   : > { %v7106_v24 = vpop.xlane.xlu1 %7105 }
0x2e4e   : > { %9068 = vpow2.f32 %v6943_v23  ;;  %v7107_v5 = vsub.f32 %v7100_v6, %v7106_v24  ;;  %v7944_v24 = vld [vmem:[%s10301_s4 + $0x40] sm:$0xff] }
0x2e50   : > { %v7108_v25 = vmul.f32 1.442695, %v7107_v5  ;;  %v7945_v5 = vld [vmem:[%s10301_s4 + $0x48] sm:$0xff] }
0x2e51   : > { %v6786_v33 = vpop.permute.xlu1 %6785 }
0x2e52   : > { %9070 = vpow2.f32 %v7108_v25  ;;  %v7946_v25 = vld [vmem:[%s10301_s4 + $0x50] sm:$0xff] }
0x2e54   : > { %v9067_v39 = vpop.eup %9066 }
0x2e55   : > { %v6780_v63 = vsel %vm4552_vm11, %v9067_v39, 0.0 }
0x2e56   : > { %6781 = vadd.xlane.f32.xlu1 %v6780_v63  ;;  %v7947_v63 = vld [vmem:[%s10301_s4 + $0x58] sm:$0xff] }
0x2e58   : > { %v9069_v46 = vpop.eup %9068 }
0x2e59   : > { %v6945_v26 = vsel %vm4552_vm11, %v9069_v46, 0.0 }
0x2e5a   : > { %6946 = vadd.xlane.f32.xlu0 %v6945_v26  ;;  %v7948_v26 = vld [vmem:[%s10301_s4 + $0x60] sm:$0xff] }
0x2e5c   : > { %v9071_v27 = vpop.eup %9070 }
0x2e5d   : > { %v7110_v28 = vsel %vm4552_vm11, %v9071_v27, 0.0 }
0x2e5e   : > { %7111 = vadd.xlane.f32.xlu1 %v7110_v28 }
0x2e6f   : > { %6950 = vrot.lane.b32.xlu1 %v10026_v49, %s10296_s24  ;;  %s10311_s24 = sld [smem:[#allocation37_spill]] }
0x2e70   : > { %7115 = vrot.lane.b32.xlu0 %v10026_v49, %s10279_s3  ;;  %v6617_v29 = vpop.xlane.xlu0 %6616  ;;  %s10309_s3 = sld [smem:[#allocation32_spill]] }
0x2e71   : > { %9072 = vrcp.f32 %v6617_v29 }
0x2e74   : > { %v6621_v30 = vpop.permute.xlu0 %6620 }
0x2e75   : > { %8638 = vmatpush3.msra.mxu0 %v6621_v30 }
0x2e76   : > { %8647 = vmatprep.subr.mxu0 %v9135_v10 }
0x2e7b   : > { %v9073_v31 = vpop.eup %9072 }
0x2e7c   : > { %v6619_v32 = vmul.f32 %v9073_v31, %v9065_v43 }
0x2e7e   : > { %8640 = vmatmul.mubr.msk.f32.vlgmr.msra.gmra.mrb[72].mxu0 %vm1150_vm0, %v6619_v32 }
0x2e7f   : > { %8648 = vmatpush3.msra.mxu0 %v6786_v33  ;;  %8649 = vmatprep.mubr.msk.f32.mxu0 %vm9134_vm1, %v9135_v10  ;;  %v7935_v33 = vld [vmem:[%s10302_s10 + $0x1] ss:$0 sm:$0xff] }
0x2e80   : > { %8657 = vmatprep.subr.mxu0 %v9135_v10 }
0x2ee3   : > { %v6782_v34 = vpop.xlane.xlu1 %6781 }
0x2ee4   : > { %9074 = vrcp.f32 %v6782_v34 }
0x2ee7   : > { %v6947_v35 = vpop.xlane.xlu0 %6946 }
0x2ee8   : > { %9076 = vrcp.f32 %v6947_v35  ;;  %v7936_v35 = vld [vmem:[%s10303_s27 + $0x1] ss:$0 sm:$0xff] }
0x2eeb   : > { %v7112_v36 = vpop.xlane.xlu1 %7111  ;;  %v7116_v44 = vpop.permute.xlu0 %7115 }
0x2eec   : > { %9078 = vrcp.f32 %v7112_v36 }
0x2eee   : > { %v9075_v37 = vpop.eup %9074 }
0x2eef   : > { %v6784_v38 = vmul.f32 %v9075_v37, %v9067_v39  ;;  %v6951_v40 = vpop.permute.xlu1 %6950  ;;  %v8869_v39 = vpack.c.bf16 %v7945_v5, %v7944_v24 }
0x2ef1   : > { %8650 = vmatmul.mubr.msk.f32.vlgmr.msra.gmra.mrb[74].mxu0 %vm1150_vm0, %v6784_v38  ;;  %v7950_v38 = vld [vmem:[%s10301_s4 + $0x70] sm:$0xff] }
0x2ef2   : > { %v9077_v41 = vpop.eup %9076  ;;  %8658 = vmatpush3.msra.mxu0 %v6951_v40  ;;  %8659 = vmatprep.mubr.msk.f32.mxu0 %vm9134_vm1, %v9135_v10  ;;  %v7951_v40 = vld [vmem:[%s10301_s4 + $0x78] sm:$0xff] }
0x2ef3   : > { %v6949_v42 = vmul.f32 %v9077_v41, %v9069_v46  ;;  %8667 = vmatprep.subr.mxu0 %v9135_v10  ;;  %v8872_v46 = vpack.c.bf16 %v7947_v63, %v7946_v25  ;;  %v8878_v41 = vpack.c.bf16 %v7951_v40, %v7950_v38 }
0x2ef5   : > { %8660 = vmatmul.mubr.msk.f32.vlgmr.msra.gmra.mrb[76].mxu0 %vm1150_vm0, %v6949_v42  ;;  %v7942_v42 = vld [vmem:[%s10309_s3 + $0x1] ss:$0 sm:$0xff] }
0x2ef6   : > { %v9079_v13 = vpop.eup %9078  ;;  %8668 = vmatpush3.msra.mxu0 %v7116_v44  ;;  %8669 = vmatprep.mubr.msk.f32.mxu0 %vm9134_vm1, %v9135_v10 }
0x2ef7   : > { %v7114_v47 = vmul.f32 %v9079_v13, %v9071_v27  ;;  %8862 = vmatprep.subr.bf16.mxu0 %v9133_v3  ;;  %v7949_v27 = vld [vmem:[%s10301_s4 + $0x68] sm:$0xff] }
0x2ef8   : > { %v8875_v28 = vpack.c.bf16 %v7949_v27, %v7948_v26 }
0x2ef9   : > { %8670 = vmatmul.mubr.msk.f32.vlgmr.msra.gmra.mrb[78].mxu0 %vm1150_vm0, %v7114_v47 }
0x2efa   : > { %8691 = vmatprep.mubr.msk.f32.mxu0 %vm9134_vm1, %v9135_v10  ;;  %8864 = vmatpush3.bf16.msra.mxu0 %v8863_v21 }
0x2efb   : > { %8865 = vmatprep.subr.bf16.mxu0 %v9133_v3 }
0x2f51   : > { %v6692_v48 = vpop.f32.mrb[72].mxu0 }
0x2f52   : > { %v8641_v49 = vpop.f32.mrb[73].mxu0 }
0x2f53   : > { %v7953_v49 = vld [vmem:[%s10305_s30 + $0x1] ss:$0 sm:$0xff] }
0x2fc4   : > { %v6857_v53 = vpop.f32.mrb[74].mxu0 }
0x2fc5   : > { %7192 = vrot.lane.b32.xlu1 %v6857_v53, %s10286_s22  ;;  %v8651_v54 = vpop.f32.mrb[75].mxu0 }
0x2fc8   : > { %v7022_v55 = vpop.f32.mrb[76].mxu0 }
0x2fc9   : > { %7196 = vrot.lane.b32.xlu0 %v7022_v55, %s10287_s16  ;;  %v8661_v56 = vpop.f32.mrb[77].mxu0  ;;  %s7745_s16 = sshll.u32 %s10312_s6, 3 }
0x2fca   : > { %v7526_v56 = vld [vmem:[%s10310_s14] sm:$0xff]  ;;  %s1136_s22 = scalar_lea.vmem %s10313_s20, %s7745_s16 }
0x2fcc   : > { %v7187_v57 = vpop.f32.mrb[78].mxu0 }
0x2fcd   : > { %7200 = vrot.lane.b32.xlu1 %v7187_v57, %s10276_s26  ;;  %v8671_v58 = vpop.f32.mrb[79].mxu0  ;;  %v7527_v57 = vld [vmem:[%s10310_s14 + $0x8] sm:$0xff]  ;;  %s1139_s26 = scalar_lea.vmem %s10315_s23, %s10312_s6 }
0x2fce   : > { %v8881_v58 = vpack.c.bf16 %v7527_v57, %v7526_v56 }
0x3037   : > { %v7193_v59 = vpop.permute.xlu1 %7192 }
0x3038   : > { %v7203_v61 = vsel %vm1150_vm0, %v6692_v48, %v7193_v59  ;;  %v7528_v59 = vld [vmem:[%s10310_s14 + $0x10] sm:$0xff] }
0x303b   : > { %v7197_v60 = vpop.permute.xlu0 %7196 }
0x303c   : > { %v7204_v62 = vsel %vm1996_vm3, %v7203_v61, %v7197_v60  ;;  %v7529_v60 = vld [vmem:[%s10310_s14 + $0x18] sm:$0xff] }
0x303d   : > { %v8884_v61 = vpack.c.bf16 %v7529_v60, %v7528_v59 }
0x303f   : > { %v7201_v0 = vpop.permute.xlu1 %7200 }
0x3040   : > { %v7205_v1 = vsel %vm1998_vm4, %v7204_v62, %v7201_v0 }
0x3041   : > { %8681 = vmatmul.mubr.msk.f32.vlgmr.msra.gmra.mrb[56].mxu1 %vm1248_vm2, %v7205_v1 }
0x3042   : > { %8710 = vmatprep.mubr.msk.f32.mxu1 %vm9134_vm1, %v9135_v10  ;;  %8870 = vmatpush3.bf16.msra.mxu1 %v8869_v39 }
0x3043   : > { %8871 = vmatprep.subr.bf16.mxu1 %v9133_v3 }
0x3046   : > { %8873 = vmatpush3.bf16.msra.mxu1 %v8872_v46 }
0x3047   : > { %8874 = vmatprep.subr.bf16.mxu1 %v9133_v3 }
0x304a   : > { %8876 = vmatpush3.bf16.msra.mxu1 %v8875_v28  ;;  %v7628_v28 = vld [vmem:[%s10314_s15] sm:$0x7f] }
0x304b   : > { %8877 = vmatprep.subr.bf16.mxu1 %v9133_v3 }
0x304e   : > { %8879 = vmatpush3.bf16.msra.mxu1 %v8878_v41 }
0x3114   : > { %v7281_v4 = vpop.f32.mrb[56].mxu1 }
0x3115   : > { %v7282_v6 = vadd.f32 %v7931_v2, %v7281_v4  ;;  %v8682_v8 = vpop.f32.mrb[57].mxu1  ;;  %v7957_v4 = vld [vmem:[%s10307_s9 + $0x1] ss:$0 sm:$0xff] }
0x3116   : > { %v7958_v8 = vld [vmem:[%s9328_s13 + $0x1] ss:$0 sm:$0xff] }
0x3117   : > { %v7285_v9 = vadd.f32 %v7282_v6, %v10020_v45  ;;  %v7939_v45 = vld [vmem:[%s10308_s5 + $0x30] sm:$0xff] }
0x3118   : > { %v8866_v23 = vpack.c.bf16 %v7940_v22, %v7939_v45  ;;  %v7610_v22 = vld [vmem:[%s1136_s22] sm:$0x7f] }
0x3119   : > { %v7290_v11 = vsel %vm4266_vm10, %v7285_v9, 0.0 }
0x311a   : > { %7291 = vadd.xlane.f32.xlu0 %v7290_v11  ;;  %8867 = vmatpush3.bf16.msra.mxu0 %v8866_v23 }
0x311b   : > { %8880 = vmatprep.subr.bf16.mxu0 %v9133_v3 }
0x31a7   : > { %v7292_v12 = vpop.xlane.xlu0 %7291 }
0x31a8   : > { %v7293_v14 = vmul.f32 0.03125, %v7292_v12 }
0x31aa   : > { %v7294_v43 = vsub.f32 %v7285_v9, %v7293_v14 }
0x31ac   : > { %v7295_v17 = vmul.f32 %v7294_v43, %v7294_v43 }
0x31ae   : > { %v7296_v18 = vsel %vm4266_vm10, %v7295_v17, 0.0 }
0x31af   : > { %7297 = vadd.xlane.f32.xlu1 %v7296_v18 }
0x323c   : > { %v7298_v29 = vpop.xlane.xlu1 %7297 }
0x323d   : > { %v7299_v30 = vmul.f32 0.03125, %v7298_v29 }
0x323f   : > { %v7300_v31 = vadd.f32 1e-05, %v7299_v30 }
0x3241   : > { %9080 = vrsqrt.f32 %v7300_v31 }
0x324b   : > { %v9081_v32 = vpop.eup %9080 }
0x324c   : > { %v7302_v34 = vmul.f32 %v9081_v32, %v7294_v43 }
0x324e   : > { %v7309_v36 = vmul.f32 %v7935_v33, %v7302_v34 }
0x3250   : > { %v7316_v37 = vadd.f32 %v7936_v35, %v7309_v36 }
0x3252   : > { %8692 = vmatmul.mubr.msk.f32.vlgmr.msra.gmra.mrb[80].mxu0 %vm1248_vm2, %v7316_v37 }
0x3253   : > { %8721 = vmatprep.mubr.msk.f32.mxu0 %vm9134_vm1, %v9135_v10  ;;  %8882 = vmatpush3.bf16.msra.mxu0 %v8881_v58 }
0x3254   : > { %8883 = vmatprep.subr.bf16.mxu0 %v9133_v3  ;;  %v7959_v3 = vld [vmem:[%s10311_s24] ss:$0 sm:$0xff] }
0x3257   : > { %8885 = vmatpush3.bf16.msra.mxu0 %v8884_v61 }
0x3325   : > { %v7399_v44 = vpop.f32.mrb[80].mxu0 }
0x3326   : > { %v7400_v13 = vadd.f32 %v7942_v42, %v7399_v44  ;;  %v8693_v47 = vpop.f32.mrb[81].mxu0 }
0x3328   : > { %v7403_v48 = vmax.f32 %v7400_v13, 0.0 }
0x332a   : > { %8711 = vmatmul.mubr.msk.f32.vlgmr.msra.gmra.mrb[58].mxu1 %vm2210_vm5, %v7403_v48 }
0x33fd   : > { %v7490_v7 = vpop.f32.mrb[58].mxu1 }
0x33fe   : > { %v7491_v15 = vadd.f32 %v7953_v49, %v7490_v7  ;;  %v8712_v50 = vpop.f32.mrb[59].mxu1 }
0x3400   : > { %v7494_v10 = vadd.f32 %v7491_v15, %v7316_v37 }
0x3402   : > { %v7499_v16 = vsel %vm4266_vm10, %v7494_v10, 0.0 }
0x3403   : > { %7500 = vadd.xlane.f32.xlu0 %v7499_v16 }
0x3490   : > { %v7501_v51 = vpop.xlane.xlu0 %7500 }
0x3491   : > { %v7502_v52 = vmul.f32 0.03125, %v7501_v51 }
0x3493   : > { %v7503_v53 = vsub.f32 %v7494_v10, %v7502_v52 }
0x3495   : > { %v7504_v54 = vmul.f32 %v7503_v53, %v7503_v53 }
0x3497   : > { %v7505_v55 = vsel %vm4266_vm10, %v7504_v54, 0.0 }
0x3498   : > { %7506 = vadd.xlane.f32.xlu0 %v7505_v55 }
0x3525   : > { %v7507_v62 = vpop.xlane.xlu0 %7506 }
0x3526   : > { %v7508_v0 = vmul.f32 0.03125, %v7507_v62 }
0x3528   : > { %v7509_v1 = vadd.f32 1e-05, %v7508_v0 }
0x352a   : > { %9082 = vrsqrt.f32 %v7509_v1 }
0x3534   : > { %v9083_v2 = vpop.eup %9082 }
0x3535   : > { %v7511_v6 = vmul.f32 %v9083_v2, %v7503_v53 }
0x3537   : > { %v7518_v9 = vmul.f32 %v7957_v4, %v7511_v6 }
0x3539   : > { %v7525_v11 = vadd.f32 %v7958_v8, %v7518_v9 }
0x353b   : > { %8722 = vmatmul.mubr.msk.f32.vlgmr.msra.gmra.mrb[82].mxu0 %vm1248_vm2, %v7525_v11 }
0x360e   : > { %v7606_v12 = vpop.f32.mrb[82].mxu0 }
0x360f   : > { %v7607_v14 = vadd.f32 %v7959_v3, %v7606_v12  ;;  %v8723_v43 = vpop.f32.mrb[83].mxu0 }
0x3611   : > { %v7614_v17 = vand.u32 2147483647, %v7607_v14  ;;  %v7611_v24 = vmax.f32 %v7607_v14, 0.0  ;;  %v7612_v5 = vmul.f32 %v7610_v22, %v7607_v14 }
0x3613   : > { %v7615_v18 = vsub.f32 0.0, %v7614_v17  ;;  %v7613_v26 = vsub.f32 %v7611_v24, %v7612_v5 }
0x3615   : > { %v7616_v19 = vmul.f32 1.442695, %v7615_v18 }
0x3617   : > { %9084 = vpow2.f32 %v7616_v19 }
0x3621   : > { %v9085_v20 = vpop.eup %9084 }
0x3622   : > { %v7618_v21 = vadd.f32 1.0, %v9085_v20  ;;  %v7621_v45 = vmul.f32 -0.5, %v9085_v20  ;;  %v7624_v25 = vand.u32 2147483647, %v9085_v20 }
0x3624   : > { %9086 = vlog2.f32 %v7618_v21  ;;  %v7622_v23 = vadd.f32 1.0, %v7621_v45  ;;  %vm7625_vm12 = vcmp.lt.f32.partialorder %v7624_v25, 0.0004427343 }
0x3626   : > { %v7623_v46 = vmul.f32 %v9085_v20, %v7622_v23 }
0x362e   : > { %v9087_v39 = vpop.eup %9086 }
0x362f   : > { %v7620_v63 = vmul.f32 0.6931472, %v9087_v39 }
0x3631   : > { %v7626_v27 = vsel %vm7625_vm12, %v7623_v46, %v7620_v63 }
0x3632   : > { %v7627_v29 = vadd.f32 %v7626_v27, %v7613_v26 }
0x3634   : > { %v7629_v30 = vmul.f32 %v7628_v28, %v7627_v29 }
0x3636   : > { %v7630_v31 = vsel %vm4552_vm11, %v7629_v30, 0.0 }
0x3637   : > { %v7631_v32 = vrot.slane %v7630_v31, 4 }
0x3639   : > { %v7632_v33 = vadd.f32 %v7631_v32, %v7630_v31 }
0x363b   : > { %v7633_v34 = vrot.slane %v7632_v33, 2 }
0x363d   : > { %v7634_v35 = vadd.f32 %v7633_v34, %v7632_v33 }
0x363f   : > { %v7635_v36 = vrot.slane %v7634_v35, 1 }
0x3641   : > { %v7636_v37 = vadd.f32 %v7635_v36, %v7634_v35 }
0x3643   : > { %v7637_v38 = vsel %vm1150_vm0, %v7636_v37, 0.0 }
0x3644   : > { %7638 = vadd.xlane.f32.xlu1 %v7637_v38 }
0x36d1   : > { %v7639_v40 = vpop.xlane.xlu1 %7638 }
0x36d2   : > { %7641 = vst.msk [vmem:[%s1139_s26] sm:$0x1] %vm7640_vm13, %v7639_v40 }
0x36d3 PF: > { %s10316_s28 = sld [smem:[#allocation39_spill]] }
0x36d9   : > { %s85_s7 = sadd.s32 1, %s10316_s28  }
0x36da   : > { %p82_p4 = scmp.ge.s32.totalorder %s85_s7, 4  }
0x36dc   :  { %84 = sbr.rel (!%p82_p4) target bundleno = 87 (0x57), region = 268 }

</bundles_post_ra>
